<compile_context>
chip_gen: v7x
topology: tpu7x:2x2x1
jax: 0.10.0
libtpu: 0.0.40
codegen_flags: <defaults>
</compile_context>

<pallas_src>
import functools
import math

import jax
import jax.numpy as jnp
from jax.experimental import pallas as pl
from jax.experimental.pallas import tpu as pltpu

# ---------------- configuration (matches ViT defaults at small shapes) -------
PATCH = 4
IN_CH = 4
IMG = 16
D = 32                       # out_channels
HEADS = 8
HEAD_DIM = D // HEADS        # 4
DEPTH = 3
HIDDEN = D                   # MLP hidden width (hidden_dim=None -> D)
NUM_PATCHES = (IMG // PATCH) ** 2        # 16
PATCH_DIM = IN_CH * PATCH * PATCH        # 64
S = NUM_PATCHES + 1                      # 17 (cls token + patches)
SP = 24                                  # sequence padded to multiple of 8
KN = HEADS * SP                          # expanded all-heads key axis = 192
LN_EPS = 1e-5
NEG_INF = -1e30

assert SP % 8 == 0 and SP >= S
assert HIDDEN == D, "packed per-layer vector slab assumes hidden_dim == D"


def _layernorm(x, g, b):
    mu = jnp.mean(x, axis=-1, keepdims=True)
    var = jnp.mean((x - mu) ** 2, axis=-1, keepdims=True)
    return (x - mu) * jax.lax.rsqrt(var + LN_EPS) * g + b


# ---------------- Pallas kernel: ViT forward for one batch block -------------
def vit_kernel(patches_ref, w_emb_ref, bias_pos_ref, mask_ref, key_bias_ref,
               w_qkv_ref, w_o_ref, w_m1_ref, w_m2_ref, vec_ref, out_ref, *,
               bblk):
    rows = bblk * SP

    # Patch embedding: bf16 patches (cast in wrapper) x bf16 W_emb, f32 acc.
    # cls token, linear bias and positional embedding are folded into bias_pos
    # (SP, D) in the wrapper and broadcast over the bblk examples here.
    x = jnp.dot(patches_ref[...], w_emb_ref[...],
                preferred_element_type=jnp.float32)             # (rows, D) f32
    x = (x.reshape(bblk, SP, D) + bias_pos_ref[...][None]).reshape(rows, D)
    # emb_dropout: identity (eval mode)

    mask = mask_ref[...]            # (KN, D) 0/1 head indicator, f32
    key_bias = key_bias_ref[...]    # (1, KN): 0 real keys, -1e30 padded keys

    for l in range(DEPTH):                                      # static unroll
        # ---- fused QKV projection (q pre-scaled by 1/sqrt(head_dim)) --------
        qkv = jnp.dot(x.astype(jnp.bfloat16), w_qkv_ref[l],
                      preferred_element_type=jnp.float32)       # (rows, 3D)
        q = qkv[:, 0:D].reshape(bblk, SP, D)
        k = qkv[:, D:2 * D].reshape(bblk, SP, D)
        v = qkv[:, 2 * D:3 * D].reshape(bblk, SP, D)

        # ---- all heads at once via block-diagonal key/value expansion -------
        # kx[b, h*SP+j, c] = k[b, j, c] * [c // HEAD_DIM == h]  ->  q . kx
        # gives per-head scores without any per-head lane slicing.
        kx = jnp.tile(k, (1, HEADS, 1)) * mask[None]            # (bblk, KN, D)
        vx = jnp.tile(v, (1, HEADS, 1)) * mask[None]
        s = jax.lax.dot_general(q, kx, (((2,), (2,)), ((0,), (0,))),
                                preferred_element_type=jnp.float32)
        s = s + key_bias[None]                                  # (bblk, SP, KN)
        # Row-global max is constant within each head segment -> exact softmax.
        s = s - jnp.max(s, axis=-1, keepdims=True)
        p = jnp.exp(s)
        # Per-head denominators broadcast onto output channels: p @ mask.
        denom = jnp.dot(p.reshape(rows, KN), mask,
                        preferred_element_type=jnp.float32)     # (rows, D)
        pv = jax.lax.dot_general(p, vx, (((2,), (1,)), ((0,), (0,))),
                                 preferred_element_type=jnp.float32)
        o = pv.reshape(rows, D) * pl.reciprocal(denom, approx=True)
        attn = jnp.dot(o.astype(jnp.bfloat16), w_o_ref[l],
                       preferred_element_type=jnp.float32) + vec_ref[l, 0:1, :]
        a = _layernorm(attn, vec_ref[l, 1:2, :], vec_ref[l, 2:3, :]) + x

        # ---- MLP -------------------------------------------------------------
        m = jnp.dot(a.astype(jnp.bfloat16), w_m1_ref[l],
                    preferred_element_type=jnp.float32) + vec_ref[l, 3:4, :]
        m = jax.nn.gelu(m, approximate=True)                    # tanh-GELU
        m = jnp.dot(m.astype(jnp.bfloat16), w_m2_ref[l],
                    preferred_element_type=jnp.float32) + vec_ref[l, 4:5, :]
        x = _layernorm(m, vec_ref[l, 5:6, :], vec_ref[l, 6:7, :]) + a

    out_ref[...] = x.astype(out_ref.dtype)


# ---------------- wrapper -----------------------------------------------------
def vit_forward(x, params, bblk=128):
    """x: (B, C, H, W) float32 (NCHW, as in PyTorch). Returns (B, D, 1, S)."""
    B = x.shape[0]
    hp = IMG // PATCH
    # Rearrange 'b c (h p1) (w p2) -> b (h w) (p1 p2 c)'
    patches = x.reshape(B, IN_CH, hp, PATCH, hp, PATCH)
    patches = patches.transpose(0, 2, 4, 3, 5, 1).reshape(B, NUM_PATCHES,
                                                          PATCH_DIM)

    # Batch blocking: keep at least 2 grid steps when B >= 2 (both v7x
    # TensorCores get work); larger bblk amortizes per-step fixed cost.
    bblk = max(1, min(bblk, -(-B // 2)))
    nb = -(-B // bblk)
    Bp = nb * bblk
    rows = bblk * SP

    # Per-example padded layout: [cls slot, 16 patch rows, SP-S pad rows].
    pat = jnp.pad(patches, ((0, Bp - B), (1, SP - 1 - NUM_PATCHES), (0, 0)))
    pat_flat = pat.reshape(Bp * SP, PATCH_DIM).astype(jnp.bfloat16)  # bf16 DMA

    # Fold cls token, linear bias and positional embedding into one (SP, D) add.
    bias_pos = jnp.concatenate([
        params['cls'] + params['pos'][0:1],
        params['b_emb'] + params['pos'][1:S],
        jnp.zeros((SP - S, D), jnp.float32)], axis=0)                # (SP, D)

    scale = 1.0 / math.sqrt(HEAD_DIM)
    w_qkv = jnp.concatenate([params['Wq'] * scale, params['Wk'], params['Wv']],
                            axis=2).astype(jnp.bfloat16)             # (DEPTH,D,3D)
    w_o = params['Wo'].astype(jnp.bfloat16)                          # (DEPTH,D,D)
    w_m1 = params['Wm1'].astype(jnp.bfloat16)                        # (DEPTH,D,H)
    w_m2 = params['Wm2'].astype(jnp.bfloat16)                        # (DEPTH,H,D)
    vecs = jnp.concatenate([params['bo'], params['ln1g'], params['ln1b'],
                            params['bm1'], params['bm2'],
                            params['ln2g'], params['ln2b']], axis=1)  # (DEPTH,7,D)

    # Block-diagonal head-indicator mask and key-padding bias (constants).
    n_idx = jnp.arange(KN)
    c_idx = jnp.arange(D)
    mask_kv = (n_idx[:, None] // SP == c_idx[None, :] // HEAD_DIM
               ).astype(jnp.float32)                                 # (KN, D)
    key_bias = jnp.where((n_idx % SP) < S, 0.0, NEG_INF
                         ).astype(jnp.float32)[None, :]              # (1, KN)

    flops_per_row = (2 * PATCH_DIM * D + DEPTH * (
        2 * D * 3 * D            # qkv
        + 2 * D * KN             # scores
        + 2 * KN * D             # p @ v
        + 2 * KN * D             # denom
        + 2 * D * D              # wo
        + 2 * D * HIDDEN + 2 * HIDDEN * D))                          # mlp
    cost = pl.CostEstimate(
        flops=flops_per_row * Bp * SP,
        transcendentals=Bp * SP * DEPTH * (KN + HIDDEN),
        bytes_accessed=(pat_flat.size * 2 + Bp * SP * D * 4 + nb * (
            (params['W_emb'].size + w_qkv.size + w_o.size + w_m1.size
             + w_m2.size) * 2
            + (vecs.size + mask_kv.size + key_bias.size + bias_pos.size) * 4)))

    out = pl.pallas_call(
        functools.partial(vit_kernel, bblk=bblk),
        out_shape=jax.ShapeDtypeStruct((Bp * SP, D), jnp.float32),
        grid=(nb,),
        in_specs=[
            pl.BlockSpec((rows, PATCH_DIM), lambda i: (i, 0)),        # patches
            pl.BlockSpec((PATCH_DIM, D), lambda i: (0, 0)),           # W_emb
            pl.BlockSpec((SP, D), lambda i: (0, 0)),                  # bias_pos
            pl.BlockSpec((KN, D), lambda i: (0, 0)),                  # head mask
            pl.BlockSpec((1, KN), lambda i: (0, 0)),                  # key bias
            pl.BlockSpec((DEPTH, D, 3 * D), lambda i: (0, 0, 0)),     # Wqkv
            pl.BlockSpec((DEPTH, D, D), lambda i: (0, 0, 0)),         # Wo
            pl.BlockSpec((DEPTH, D, HIDDEN), lambda i: (0, 0, 0)),    # Wm1
            pl.BlockSpec((DEPTH, HIDDEN, D), lambda i: (0, 0, 0)),    # Wm2
            pl.BlockSpec((DEPTH, 7, D), lambda i: (0, 0, 0)),         # bias/LN
        ],
        out_specs=pl.BlockSpec((rows, D), lambda i: (i, 0)),
        compiler_params=pltpu.CompilerParams(
            dimension_semantics=("parallel",),
            vmem_limit_bytes=48 * 1024 * 1024),
        cost_estimate=cost,
    )(pat_flat, params['W_emb'].astype(jnp.bfloat16), bias_pos, mask_kv,
      key_bias, w_qkv, w_o, w_m1, w_m2, vecs)

    # Drop padded rows/examples; rearrange 'b (h w) c -> b c h w', h=1, w=S.
    out = out.reshape(Bp, SP, D)[:B, :S, :]
    return out.transpose(0, 2, 1).reshape(B, D, 1, S)


# ---------------- deterministic parameter init --------------------------------
def init_params(key):
    ks = jax.random.split(key, 12)
    n = lambda k, shape, s=0.02: (s * jax.random.normal(k, shape)).astype(jnp.float32)
    return dict(
        W_emb=n(ks[0], (PATCH_DIM, D)),
        b_emb=jnp.zeros((1, D), jnp.float32),
        cls=jax.random.normal(ks[1], (1, D), jnp.float32),       # torch.randn
        pos=jax.random.normal(ks[2], (S, D), jnp.float32),       # torch.randn
        Wq=n(ks[3], (DEPTH, D, D)),
        Wk=n(ks[4], (DEPTH, D, D)),
        Wv=n(ks[5], (DEPTH, D, D)),
        Wo=n(ks[6], (DEPTH, D, D)),
        bo=jnp.zeros((DEPTH, 1, D), jnp.float32),
        ln1g=jnp.ones((DEPTH, 1, D), jnp.float32),
        ln1b=jnp.zeros((DEPTH, 1, D), jnp.float32),
        Wm1=n(ks[7], (DEPTH, D, HIDDEN)),
        bm1=jnp.zeros((DEPTH, 1, HIDDEN), jnp.float32),
        Wm2=n(ks[8], (DEPTH, HIDDEN, D)),
        bm2=jnp.zeros((DEPTH, 1, D), jnp.float32),
        ln2g=jnp.ones((DEPTH, 1, D), jnp.float32),
        ln2b=jnp.zeros((DEPTH, 1, D), jnp.float32),
    )


if __name__ == "__main__":
    key = jax.random.PRNGKey(0)
    pkey, xkey = jax.random.split(key)
    params = init_params(pkey)
    # batch=2, channels=4, spatial=16x16  (NCHW, matching the PyTorch module)
    x = jax.random.normal(xkey, (2, IN_CH, IMG, IMG), jnp.float32)
    out = vit_forward(x, params)
    jax.block_until_ready(out)
    assert out.shape == (2, D, 1, S), out.shape
    assert bool(jnp.all(jnp.isfinite(out)))
    print("KERNEL_OK")
</pallas_src>

<mosaic_0001>
module attributes {stable_mosaic.version = 11 : i64} {
  func.func @vit_kernel(%arg0: i32, %arg1: memref<24x64xbf16, #tpu.memory_space<vmem>>, %arg2: memref<64x32xbf16, #tpu.memory_space<vmem>>, %arg3: memref<24x32xf32, #tpu.memory_space<vmem>>, %arg4: memref<192x32xf32, #tpu.memory_space<vmem>>, %arg5: memref<1x192xf32, #tpu.memory_space<vmem>>, %arg6: memref<3x32x96xbf16, #tpu.memory_space<vmem>>, %arg7: memref<3x32x32xbf16, #tpu.memory_space<vmem>>, %arg8: memref<3x32x32xbf16, #tpu.memory_space<vmem>>, %arg9: memref<3x32x32xbf16, #tpu.memory_space<vmem>>, %arg10: memref<3x7x32xf32, #tpu.memory_space<vmem>>, %arg11: memref<24x32xf32, #tpu.memory_space<vmem>>) attributes {dimension_semantics = [#tpu.dimension_semantics<parallel>], iteration_bounds = array<i64: 2>, scalar_prefetch = 0 : i64, scratch_operands = 0 : i64, tpu.core_type = #tpu.core_type<tc>, window_params = [{transform_indices = @transform_0, window_bounds = array<i64: 24, 64>}, {pipeline_mode = #tpu.pipeline_mode<synchronous>, transform_indices = @transform_1, window_bounds = array<i64: 64, 32>}, {pipeline_mode = #tpu.pipeline_mode<synchronous>, transform_indices = @transform_2, window_bounds = array<i64: 24, 32>}, {pipeline_mode = #tpu.pipeline_mode<synchronous>, transform_indices = @transform_3, window_bounds = array<i64: 192, 32>}, {pipeline_mode = #tpu.pipeline_mode<synchronous>, transform_indices = @transform_4, window_bounds = array<i64: 1, 192>}, {pipeline_mode = #tpu.pipeline_mode<synchronous>, transform_indices = @transform_5, window_bounds = array<i64: 3, 32, 96>}, {pipeline_mode = #tpu.pipeline_mode<synchronous>, transform_indices = @transform_6, window_bounds = array<i64: 3, 32, 32>}, {pipeline_mode = #tpu.pipeline_mode<synchronous>, transform_indices = @transform_7, window_bounds = array<i64: 3, 32, 32>}, {pipeline_mode = #tpu.pipeline_mode<synchronous>, transform_indices = @transform_8, window_bounds = array<i64: 3, 32, 32>}, {pipeline_mode = #tpu.pipeline_mode<synchronous>, transform_indices = @transform_9, window_bounds = array<i64: 3, 7, 32>}, {transform_indices = @transform_10, window_bounds = array<i64: 24, 32>}]} {
    %c0 = arith.constant 0 : index
    %c0_0 = arith.constant 0 : index
    %0 = vector.load %arg1[%c0, %c0_0] : memref<24x64xbf16, #tpu.memory_space<vmem>>, vector<24x64xbf16>
    %c0_1 = arith.constant 0 : index
    %c0_2 = arith.constant 0 : index
    %1 = vector.load %arg2[%c0_1, %c0_2] : memref<64x32xbf16, #tpu.memory_space<vmem>>, vector<64x32xbf16>
    %cst = arith.constant dense<0.000000e+00> : vector<24x32xf32>
    %2 = tpu.matmul %0, %1, %cst {dimension_numbers = #tpu.dot_dimension_numbers<[1], [0], [0], [1], [0, 0, 1, 1], [], []>} : vector<24x64xbf16>, vector<64x32xbf16>, vector<24x32xf32> -> vector<24x32xf32>
    %3 = vector.shape_cast %2 : vector<24x32xf32> to vector<1x24x32xf32>
    %c0_3 = arith.constant 0 : index
    %c0_4 = arith.constant 0 : index
    %4 = vector.load %arg3[%c0_3, %c0_4] : memref<24x32xf32, #tpu.memory_space<vmem>>, vector<24x32xf32>
    %5 = vector.shape_cast %4 : vector<24x32xf32> to vector<1x24x32xf32>
    %6 = arith.addf %3, %5 : vector<1x24x32xf32>
    %7 = vector.shape_cast %6 : vector<1x24x32xf32> to vector<24x32xf32>
    %c0_5 = arith.constant 0 : index
    %c0_6 = arith.constant 0 : index
    %8 = vector.load %arg4[%c0_5, %c0_6] : memref<192x32xf32, #tpu.memory_space<vmem>>, vector<192x32xf32>
    %c0_7 = arith.constant 0 : index
    %c0_8 = arith.constant 0 : index
    %9 = vector.load %arg5[%c0_7, %c0_8] : memref<1x192xf32, #tpu.memory_space<vmem>>, vector<1x192xf32>
    %10 = arith.truncf %7 : vector<24x32xf32> to vector<24x32xbf16>
    %c0_9 = arith.constant 0 : index
    %c0_10 = arith.constant 0 : index
    %c0_11 = arith.constant 0 : index
    %11 = vector.load %arg6[%c0_9, %c0_10, %c0_11] : memref<3x32x96xbf16, #tpu.memory_space<vmem>>, vector<1x32x96xbf16>
    %12 = vector.shape_cast %11 : vector<1x32x96xbf16> to vector<32x96xbf16>
    %cst_12 = arith.constant dense<0.000000e+00> : vector<24x96xf32>
    %13 = tpu.matmul %10, %12, %cst_12 {dimension_numbers = #tpu.dot_dimension_numbers<[1], [0], [0], [1], [0, 0, 1, 1], [], []>} : vector<24x32xbf16>, vector<32x96xbf16>, vector<24x96xf32> -> vector<24x96xf32>
    %14 = vector.extract_strided_slice %13 {offsets = [0, 0], sizes = [24, 32], strides = [1, 1]} : vector<24x96xf32> to vector<24x32xf32>
    %15 = vector.shape_cast %14 : vector<24x32xf32> to vector<1x24x32xf32>
    %16 = vector.extract_strided_slice %13 {offsets = [0, 32], sizes = [24, 32], strides = [1, 1]} : vector<24x96xf32> to vector<24x32xf32>
    %17 = vector.shape_cast %16 : vector<24x32xf32> to vector<1x24x32xf32>
    %18 = vector.extract_strided_slice %13 {offsets = [0, 64], sizes = [24, 32], strides = [1, 1]} : vector<24x96xf32> to vector<24x32xf32>
    %19 = vector.shape_cast %18 : vector<24x32xf32> to vector<1x24x32xf32>
    %20 = tpu.concatenate %17, %17, %17, %17, %17, %17, %17, %17 in 1 : vector<1x24x32xf32>, vector<1x24x32xf32>, vector<1x24x32xf32>, vector<1x24x32xf32>, vector<1x24x32xf32>, vector<1x24x32xf32>, vector<1x24x32xf32>, vector<1x24x32xf32> -> vector<1x192x32xf32>
    %21 = vector.shape_cast %8 : vector<192x32xf32> to vector<1x192x32xf32>
    %22 = arith.mulf %20, %21 : vector<1x192x32xf32>
    %23 = tpu.concatenate %19, %19, %19, %19, %19, %19, %19, %19 in 1 : vector<1x24x32xf32>, vector<1x24x32xf32>, vector<1x24x32xf32>, vector<1x24x32xf32>, vector<1x24x32xf32>, vector<1x24x32xf32>, vector<1x24x32xf32>, vector<1x24x32xf32> -> vector<1x192x32xf32>
    %24 = vector.shape_cast %8 : vector<192x32xf32> to vector<1x192x32xf32>
    %25 = arith.mulf %23, %24 : vector<1x192x32xf32>
    %cst_13 = arith.constant dense<0.000000e+00> : vector<1x24x192xf32>
    %26 = tpu.matmul %15, %22, %cst_13 {dimension_numbers = #tpu.dot_dimension_numbers<[2], [2], [1], [1], [0, 0, 0, 1, 1, 1], [0], [0]>} : vector<1x24x32xf32>, vector<1x192x32xf32>, vector<1x24x192xf32> -> vector<1x24x192xf32>
    %27 = vector.shape_cast %9 : vector<1x192xf32> to vector<1x1x192xf32>
    %28 = vector.broadcast %27 : vector<1x1x192xf32> to vector<1x24x192xf32>
    %29 = arith.addf %26, %28 : vector<1x24x192xf32>
    %cst_14 = arith.constant dense<0xFF800000> : vector<1x24xf32>
    %30 = vector.multi_reduction <maximumf>, %29, %cst_14 [2] : vector<1x24x192xf32> to vector<1x24xf32>
    %31 = vector.shape_cast %30 : vector<1x24xf32> to vector<1x24x1xf32>
    %32 = vector.broadcast %31 : vector<1x24x1xf32> to vector<1x24x192xf32>
    %33 = arith.subf %29, %32 : vector<1x24x192xf32>
    %34 = math.exp %33 : vector<1x24x192xf32>
    %35 = vector.shape_cast %34 : vector<1x24x192xf32> to vector<24x192xf32>
    %cst_15 = arith.constant dense<0.000000e+00> : vector<24x32xf32>
    %36 = tpu.matmul %35, %8, %cst_15 {dimension_numbers = #tpu.dot_dimension_numbers<[1], [0], [0], [1], [0, 0, 1, 1], [], []>} : vector<24x192xf32>, vector<192x32xf32>, vector<24x32xf32> -> vector<24x32xf32>
    %cst_16 = arith.constant dense<0.000000e+00> : vector<1x24x32xf32>
    %37 = tpu.matmul %34, %25, %cst_16 {dimension_numbers = #tpu.dot_dimension_numbers<[2], [1], [1], [2], [0, 0, 0, 1, 1, 2], [0], [0]>} : vector<1x24x192xf32>, vector<1x192x32xf32>, vector<1x24x32xf32> -> vector<1x24x32xf32>
    %38 = vector.shape_cast %37 : vector<1x24x32xf32> to vector<24x32xf32>
    %39 = tpu.reciprocal %36 {approx = true} : vector<24x32xf32> -> vector<24x32xf32>
    %40 = arith.mulf %38, %39 : vector<24x32xf32>
    %41 = arith.truncf %40 : vector<24x32xf32> to vector<24x32xbf16>
    %c0_17 = arith.constant 0 : index
    %c0_18 = arith.constant 0 : index
    %c0_19 = arith.constant 0 : index
    %42 = vector.load %arg7[%c0_17, %c0_18, %c0_19] : memref<3x32x32xbf16, #tpu.memory_space<vmem>>, vector<1x32x32xbf16>
    %43 = vector.shape_cast %42 : vector<1x32x32xbf16> to vector<32x32xbf16>
    %cst_20 = arith.constant dense<0.000000e+00> : vector<24x32xf32>
    %44 = tpu.matmul %41, %43, %cst_20 {dimension_numbers = #tpu.dot_dimension_numbers<[1], [0], [0], [1], [0, 0, 1, 1], [], []>} : vector<24x32xbf16>, vector<32x32xbf16>, vector<24x32xf32> -> vector<24x32xf32>
    %c0_21 = arith.constant 0 : index
    %c0_22 = arith.constant 0 : index
    %c0_23 = arith.constant 0 : index
    %45 = vector.load %arg10[%c0_21, %c0_22, %c0_23] : memref<3x7x32xf32, #tpu.memory_space<vmem>>, vector<1x1x32xf32>
    %46 = vector.shape_cast %45 : vector<1x1x32xf32> to vector<1x32xf32>
    %47 = vector.broadcast %46 : vector<1x32xf32> to vector<24x32xf32>
    %48 = arith.addf %44, %47 : vector<24x32xf32>
    %c0_24 = arith.constant 0 : index
    %c1 = arith.constant 1 : index
    %c0_25 = arith.constant 0 : index
    %49 = vector.load %arg10[%c0_24, %c1, %c0_25] : memref<3x7x32xf32, #tpu.memory_space<vmem>>, vector<1x1x32xf32>
    %50 = vector.shape_cast %49 : vector<1x1x32xf32> to vector<1x32xf32>
    %c0_26 = arith.constant 0 : index
    %c2 = arith.constant 2 : index
    %c0_27 = arith.constant 0 : index
    %51 = vector.load %arg10[%c0_26, %c2, %c0_27] : memref<3x7x32xf32, #tpu.memory_space<vmem>>, vector<1x1x32xf32>
    %52 = vector.shape_cast %51 : vector<1x1x32xf32> to vector<1x32xf32>
    %cst_28 = arith.constant dense<0.000000e+00> : vector<24xf32>
    %53 = vector.multi_reduction <add>, %48, %cst_28 [1] : vector<24x32xf32> to vector<24xf32>
    %54 = vector.shape_cast %53 : vector<24xf32> to vector<24x1xf32>
    %cst_29 = arith.constant 3.200000e+01 : f32
    %55 = vector.broadcast %cst_29 : f32 to vector<24x1xf32>
    %56 = arith.divf %54, %55 : vector<24x1xf32>
    %57 = vector.broadcast %56 : vector<24x1xf32> to vector<24x32xf32>
    %58 = arith.subf %48, %57 : vector<24x32xf32>
    %59 = arith.mulf %58, %58 : vector<24x32xf32>
    %cst_30 = arith.constant dense<0.000000e+00> : vector<24xf32>
    %60 = vector.multi_reduction <add>, %59, %cst_30 [1] : vector<24x32xf32> to vector<24xf32>
    %61 = vector.shape_cast %60 : vector<24xf32> to vector<24x1xf32>
    %cst_31 = arith.constant 3.200000e+01 : f32
    %62 = vector.broadcast %cst_31 : f32 to vector<24x1xf32>
    %63 = arith.divf %61, %62 : vector<24x1xf32>
    %64 = vector.broadcast %56 : vector<24x1xf32> to vector<24x32xf32>
    %65 = arith.subf %48, %64 : vector<24x32xf32>
    %cst_32 = arith.constant 9.99999974E-6 : f32
    %66 = vector.broadcast %cst_32 : f32 to vector<24x1xf32>
    %67 = arith.addf %63, %66 : vector<24x1xf32>
    %68 = math.rsqrt %67 : vector<24x1xf32>
    %69 = vector.broadcast %68 : vector<24x1xf32> to vector<24x32xf32>
    %70 = arith.mulf %65, %69 : vector<24x32xf32>
    %71 = vector.broadcast %50 : vector<1x32xf32> to vector<24x32xf32>
    %72 = arith.mulf %70, %71 : vector<24x32xf32>
    %73 = vector.broadcast %52 : vector<1x32xf32> to vector<24x32xf32>
    %74 = arith.addf %72, %73 : vector<24x32xf32>
    %75 = arith.addf %74, %7 : vector<24x32xf32>
    %76 = arith.truncf %75 : vector<24x32xf32> to vector<24x32xbf16>
    %c0_33 = arith.constant 0 : index
    %c0_34 = arith.constant 0 : index
    %c0_35 = arith.constant 0 : index
    %77 = vector.load %arg8[%c0_33, %c0_34, %c0_35] : memref<3x32x32xbf16, #tpu.memory_space<vmem>>, vector<1x32x32xbf16>
    %78 = vector.shape_cast %77 : vector<1x32x32xbf16> to vector<32x32xbf16>
    %cst_36 = arith.constant dense<0.000000e+00> : vector<24x32xf32>
    %79 = tpu.matmul %76, %78, %cst_36 {dimension_numbers = #tpu.dot_dimension_numbers<[1], [0], [0], [1], [0, 0, 1, 1], [], []>} : vector<24x32xbf16>, vector<32x32xbf16>, vector<24x32xf32> -> vector<24x32xf32>
    %c0_37 = arith.constant 0 : index
    %c3 = arith.constant 3 : index
    %c0_38 = arith.constant 0 : index
    %80 = vector.load %arg10[%c0_37, %c3, %c0_38] : memref<3x7x32xf32, #tpu.memory_space<vmem>>, vector<1x1x32xf32>
    %81 = vector.shape_cast %80 : vector<1x1x32xf32> to vector<1x32xf32>
    %82 = vector.broadcast %81 : vector<1x32xf32> to vector<24x32xf32>
    %83 = arith.addf %79, %82 : vector<24x32xf32>
    %84 = arith.mulf %83, %83 : vector<24x32xf32>
    %85 = arith.mulf %83, %84 : vector<24x32xf32>
    %cst_39 = arith.constant 4.471500e-02 : f32
    %86 = vector.broadcast %cst_39 : f32 to vector<24x32xf32>
    %87 = arith.mulf %86, %85 : vector<24x32xf32>
    %88 = arith.addf %83, %87 : vector<24x32xf32>
    %cst_40 = arith.constant 0.797884583 : f32
    %89 = vector.broadcast %cst_40 : f32 to vector<24x32xf32>
    %90 = arith.mulf %89, %88 : vector<24x32xf32>
    %91 = math.tanh %90 : vector<24x32xf32>
    %cst_41 = arith.constant 1.000000e+00 : f32
    %92 = vector.broadcast %cst_41 : f32 to vector<24x32xf32>
    %93 = arith.addf %92, %91 : vector<24x32xf32>
    %cst_42 = arith.constant 5.000000e-01 : f32
    %94 = vector.broadcast %cst_42 : f32 to vector<24x32xf32>
    %95 = arith.mulf %94, %93 : vector<24x32xf32>
    %96 = arith.mulf %83, %95 : vector<24x32xf32>
    %97 = arith.truncf %96 : vector<24x32xf32> to vector<24x32xbf16>
    %c0_43 = arith.constant 0 : index
    %c0_44 = arith.constant 0 : index
    %c0_45 = arith.constant 0 : index
    %98 = vector.load %arg9[%c0_43, %c0_44, %c0_45] : memref<3x32x32xbf16, #tpu.memory_space<vmem>>, vector<1x32x32xbf16>
    %99 = vector.shape_cast %98 : vector<1x32x32xbf16> to vector<32x32xbf16>
    %cst_46 = arith.constant dense<0.000000e+00> : vector<24x32xf32>
    %100 = tpu.matmul %97, %99, %cst_46 {dimension_numbers = #tpu.dot_dimension_numbers<[1], [0], [0], [1], [0, 0, 1, 1], [], []>} : vector<24x32xbf16>, vector<32x32xbf16>, vector<24x32xf32> -> vector<24x32xf32>
    %c0_47 = arith.constant 0 : index
    %c4 = arith.constant 4 : index
    %c0_48 = arith.constant 0 : index
    %101 = vector.load %arg10[%c0_47, %c4, %c0_48] : memref<3x7x32xf32, #tpu.memory_space<vmem>>, vector<1x1x32xf32>
    %102 = vector.shape_cast %101 : vector<1x1x32xf32> to vector<1x32xf32>
    %103 = vector.broadcast %102 : vector<1x32xf32> to vector<24x32xf32>
    %104 = arith.addf %100, %103 : vector<24x32xf32>
    %c0_49 = arith.constant 0 : index
    %c5 = arith.constant 5 : index
    %c0_50 = arith.constant 0 : index
    %105 = vector.load %arg10[%c0_49, %c5, %c0_50] : memref<3x7x32xf32, #tpu.memory_space<vmem>>, vector<1x1x32xf32>
    %106 = vector.shape_cast %105 : vector<1x1x32xf32> to vector<1x32xf32>
    %c0_51 = arith.constant 0 : index
    %c6 = arith.constant 6 : index
    %c0_52 = arith.constant 0 : index
    %107 = vector.load %arg10[%c0_51, %c6, %c0_52] : memref<3x7x32xf32, #tpu.memory_space<vmem>>, vector<1x1x32xf32>
    %108 = vector.shape_cast %107 : vector<1x1x32xf32> to vector<1x32xf32>
    %cst_53 = arith.constant dense<0.000000e+00> : vector<24xf32>
    %109 = vector.multi_reduction <add>, %104, %cst_53 [1] : vector<24x32xf32> to vector<24xf32>
    %110 = vector.shape_cast %109 : vector<24xf32> to vector<24x1xf32>
    %cst_54 = arith.constant 3.200000e+01 : f32
    %111 = vector.broadcast %cst_54 : f32 to vector<24x1xf32>
    %112 = arith.divf %110, %111 : vector<24x1xf32>
    %113 = vector.broadcast %112 : vector<24x1xf32> to vector<24x32xf32>
    %114 = arith.subf %104, %113 : vector<24x32xf32>
    %115 = arith.mulf %114, %114 : vector<24x32xf32>
    %cst_55 = arith.constant dense<0.000000e+00> : vector<24xf32>
    %116 = vector.multi_reduction <add>, %115, %cst_55 [1] : vector<24x32xf32> to vector<24xf32>
    %117 = vector.shape_cast %116 : vector<24xf32> to vector<24x1xf32>
    %cst_56 = arith.constant 3.200000e+01 : f32
    %118 = vector.broadcast %cst_56 : f32 to vector<24x1xf32>
    %119 = arith.divf %117, %118 : vector<24x1xf32>
    %120 = vector.broadcast %112 : vector<24x1xf32> to vector<24x32xf32>
    %121 = arith.subf %104, %120 : vector<24x32xf32>
    %cst_57 = arith.constant 9.99999974E-6 : f32
    %122 = vector.broadcast %cst_57 : f32 to vector<24x1xf32>
    %123 = arith.addf %119, %122 : vector<24x1xf32>
    %124 = math.rsqrt %123 : vector<24x1xf32>
    %125 = vector.broadcast %124 : vector<24x1xf32> to vector<24x32xf32>
    %126 = arith.mulf %121, %125 : vector<24x32xf32>
    %127 = vector.broadcast %106 : vector<1x32xf32> to vector<24x32xf32>
    %128 = arith.mulf %126, %127 : vector<24x32xf32>
    %129 = vector.broadcast %108 : vector<1x32xf32> to vector<24x32xf32>
    %130 = arith.addf %128, %129 : vector<24x32xf32>
    %131 = arith.addf %130, %75 : vector<24x32xf32>
    %132 = arith.truncf %131 : vector<24x32xf32> to vector<24x32xbf16>
    %c1_58 = arith.constant 1 : index
    %c0_59 = arith.constant 0 : index
    %c0_60 = arith.constant 0 : index
    %133 = vector.load %arg6[%c1_58, %c0_59, %c0_60] : memref<3x32x96xbf16, #tpu.memory_space<vmem>>, vector<1x32x96xbf16>
    %134 = vector.shape_cast %133 : vector<1x32x96xbf16> to vector<32x96xbf16>
    %cst_61 = arith.constant dense<0.000000e+00> : vector<24x96xf32>
    %135 = tpu.matmul %132, %134, %cst_61 {dimension_numbers = #tpu.dot_dimension_numbers<[1], [0], [0], [1], [0, 0, 1, 1], [], []>} : vector<24x32xbf16>, vector<32x96xbf16>, vector<24x96xf32> -> vector<24x96xf32>
    %136 = vector.extract_strided_slice %135 {offsets = [0, 0], sizes = [24, 32], strides = [1, 1]} : vector<24x96xf32> to vector<24x32xf32>
    %137 = vector.shape_cast %136 : vector<24x32xf32> to vector<1x24x32xf32>
    %138 = vector.extract_strided_slice %135 {offsets = [0, 32], sizes = [24, 32], strides = [1, 1]} : vector<24x96xf32> to vector<24x32xf32>
    %139 = vector.shape_cast %138 : vector<24x32xf32> to vector<1x24x32xf32>
    %140 = vector.extract_strided_slice %135 {offsets = [0, 64], sizes = [24, 32], strides = [1, 1]} : vector<24x96xf32> to vector<24x32xf32>
    %141 = vector.shape_cast %140 : vector<24x32xf32> to vector<1x24x32xf32>
    %142 = tpu.concatenate %139, %139, %139, %139, %139, %139, %139, %139 in 1 : vector<1x24x32xf32>, vector<1x24x32xf32>, vector<1x24x32xf32>, vector<1x24x32xf32>, vector<1x24x32xf32>, vector<1x24x32xf32>, vector<1x24x32xf32>, vector<1x24x32xf32> -> vector<1x192x32xf32>
    %143 = vector.shape_cast %8 : vector<192x32xf32> to vector<1x192x32xf32>
    %144 = arith.mulf %142, %143 : vector<1x192x32xf32>
    %145 = tpu.concatenate %141, %141, %141, %141, %141, %141, %141, %141 in 1 : vector<1x24x32xf32>, vector<1x24x32xf32>, vector<1x24x32xf32>, vector<1x24x32xf32>, vector<1x24x32xf32>, vector<1x24x32xf32>, vector<1x24x32xf32>, vector<1x24x32xf32> -> vector<1x192x32xf32>
    %146 = vector.shape_cast %8 : vector<192x32xf32> to vector<1x192x32xf32>
    %147 = arith.mulf %145, %146 : vector<1x192x32xf32>
    %cst_62 = arith.constant dense<0.000000e+00> : vector<1x24x192xf32>
    %148 = tpu.matmul %137, %144, %cst_62 {dimension_numbers = #tpu.dot_dimension_numbers<[2], [2], [1], [1], [0, 0, 0, 1, 1, 1], [0], [0]>} : vector<1x24x32xf32>, vector<1x192x32xf32>, vector<1x24x192xf32> -> vector<1x24x192xf32>
    %149 = vector.shape_cast %9 : vector<1x192xf32> to vector<1x1x192xf32>
    %150 = vector.broadcast %149 : vector<1x1x192xf32> to vector<1x24x192xf32>
    %151 = arith.addf %148, %150 : vector<1x24x192xf32>
    %cst_63 = arith.constant dense<0xFF800000> : vector<1x24xf32>
    %152 = vector.multi_reduction <maximumf>, %151, %cst_63 [2] : vector<1x24x192xf32> to vector<1x24xf32>
    %153 = vector.shape_cast %152 : vector<1x24xf32> to vector<1x24x1xf32>
    %154 = vector.broadcast %153 : vector<1x24x1xf32> to vector<1x24x192xf32>
    %155 = arith.subf %151, %154 : vector<1x24x192xf32>
    %156 = math.exp %155 : vector<1x24x192xf32>
    %157 = vector.shape_cast %156 : vector<1x24x192xf32> to vector<24x192xf32>
    %cst_64 = arith.constant dense<0.000000e+00> : vector<24x32xf32>
    %158 = tpu.matmul %157, %8, %cst_64 {dimension_numbers = #tpu.dot_dimension_numbers<[1], [0], [0], [1], [0, 0, 1, 1], [], []>} : vector<24x192xf32>, vector<192x32xf32>, vector<24x32xf32> -> vector<24x32xf32>
    %cst_65 = arith.constant dense<0.000000e+00> : vector<1x24x32xf32>
    %159 = tpu.matmul %156, %147, %cst_65 {dimension_numbers = #tpu.dot_dimension_numbers<[2], [1], [1], [2], [0, 0, 0, 1, 1, 2], [0], [0]>} : vector<1x24x192xf32>, vector<1x192x32xf32>, vector<1x24x32xf32> -> vector<1x24x32xf32>
    %160 = vector.shape_cast %159 : vector<1x24x32xf32> to vector<24x32xf32>
    %161 = tpu.reciprocal %158 {approx = true} : vector<24x32xf32> -> vector<24x32xf32>
    %162 = arith.mulf %160, %161 : vector<24x32xf32>
    %163 = arith.truncf %162 : vector<24x32xf32> to vector<24x32xbf16>
    %c1_66 = arith.constant 1 : index
    %c0_67 = arith.constant 0 : index
    %c0_68 = arith.constant 0 : index
    %164 = vector.load %arg7[%c1_66, %c0_67, %c0_68] : memref<3x32x32xbf16, #tpu.memory_space<vmem>>, vector<1x32x32xbf16>
    %165 = vector.shape_cast %164 : vector<1x32x32xbf16> to vector<32x32xbf16>
    %cst_69 = arith.constant dense<0.000000e+00> : vector<24x32xf32>
    %166 = tpu.matmul %163, %165, %cst_69 {dimension_numbers = #tpu.dot_dimension_numbers<[1], [0], [0], [1], [0, 0, 1, 1], [], []>} : vector<24x32xbf16>, vector<32x32xbf16>, vector<24x32xf32> -> vector<24x32xf32>
    %c1_70 = arith.constant 1 : index
    %c0_71 = arith.constant 0 : index
    %c0_72 = arith.constant 0 : index
    %167 = vector.load %arg10[%c1_70, %c0_71, %c0_72] : memref<3x7x32xf32, #tpu.memory_space<vmem>>, vector<1x1x32xf32>
    %168 = vector.shape_cast %167 : vector<1x1x32xf32> to vector<1x32xf32>
    %169 = vector.broadcast %168 : vector<1x32xf32> to vector<24x32xf32>
    %170 = arith.addf %166, %169 : vector<24x32xf32>
    %c1_73 = arith.constant 1 : index
    %c1_74 = arith.constant 1 : index
    %c0_75 = arith.constant 0 : index
    %171 = vector.load %arg10[%c1_73, %c1_74, %c0_75] : memref<3x7x32xf32, #tpu.memory_space<vmem>>, vector<1x1x32xf32>
    %172 = vector.shape_cast %171 : vector<1x1x32xf32> to vector<1x32xf32>
    %c1_76 = arith.constant 1 : index
    %c2_77 = arith.constant 2 : index
    %c0_78 = arith.constant 0 : index
    %173 = vector.load %arg10[%c1_76, %c2_77, %c0_78] : memref<3x7x32xf32, #tpu.memory_space<vmem>>, vector<1x1x32xf32>
    %174 = vector.shape_cast %173 : vector<1x1x32xf32> to vector<1x32xf32>
    %cst_79 = arith.constant dense<0.000000e+00> : vector<24xf32>
    %175 = vector.multi_reduction <add>, %170, %cst_79 [1] : vector<24x32xf32> to vector<24xf32>
    %176 = vector.shape_cast %175 : vector<24xf32> to vector<24x1xf32>
    %cst_80 = arith.constant 3.200000e+01 : f32
    %177 = vector.broadcast %cst_80 : f32 to vector<24x1xf32>
    %178 = arith.divf %176, %177 : vector<24x1xf32>
    %179 = vector.broadcast %178 : vector<24x1xf32> to vector<24x32xf32>
    %180 = arith.subf %170, %179 : vector<24x32xf32>
    %181 = arith.mulf %180, %180 : vector<24x32xf32>
    %cst_81 = arith.constant dense<0.000000e+00> : vector<24xf32>
    %182 = vector.multi_reduction <add>, %181, %cst_81 [1] : vector<24x32xf32> to vector<24xf32>
    %183 = vector.shape_cast %182 : vector<24xf32> to vector<24x1xf32>
    %cst_82 = arith.constant 3.200000e+01 : f32
    %184 = vector.broadcast %cst_82 : f32 to vector<24x1xf32>
    %185 = arith.divf %183, %184 : vector<24x1xf32>
    %186 = vector.broadcast %178 : vector<24x1xf32> to vector<24x32xf32>
    %187 = arith.subf %170, %186 : vector<24x32xf32>
    %cst_83 = arith.constant 9.99999974E-6 : f32
    %188 = vector.broadcast %cst_83 : f32 to vector<24x1xf32>
    %189 = arith.addf %185, %188 : vector<24x1xf32>
    %190 = math.rsqrt %189 : vector<24x1xf32>
    %191 = vector.broadcast %190 : vector<24x1xf32> to vector<24x32xf32>
    %192 = arith.mulf %187, %191 : vector<24x32xf32>
    %193 = vector.broadcast %172 : vector<1x32xf32> to vector<24x32xf32>
    %194 = arith.mulf %192, %193 : vector<24x32xf32>
    %195 = vector.broadcast %174 : vector<1x32xf32> to vector<24x32xf32>
    %196 = arith.addf %194, %195 : vector<24x32xf32>
    %197 = arith.addf %196, %131 : vector<24x32xf32>
    %198 = arith.truncf %197 : vector<24x32xf32> to vector<24x32xbf16>
    %c1_84 = arith.constant 1 : index
    %c0_85 = arith.constant 0 : index
    %c0_86 = arith.constant 0 : index
    %199 = vector.load %arg8[%c1_84, %c0_85, %c0_86] : memref<3x32x32xbf16, #tpu.memory_space<vmem>>, vector<1x32x32xbf16>
    %200 = vector.shape_cast %199 : vector<1x32x32xbf16> to vector<32x32xbf16>
    %cst_87 = arith.constant dense<0.000000e+00> : vector<24x32xf32>
    %201 = tpu.matmul %198, %200, %cst_87 {dimension_numbers = #tpu.dot_dimension_numbers<[1], [0], [0], [1], [0, 0, 1, 1], [], []>} : vector<24x32xbf16>, vector<32x32xbf16>, vector<24x32xf32> -> vector<24x32xf32>
    %c1_88 = arith.constant 1 : index
    %c3_89 = arith.constant 3 : index
    %c0_90 = arith.constant 0 : index
    %202 = vector.load %arg10[%c1_88, %c3_89, %c0_90] : memref<3x7x32xf32, #tpu.memory_space<vmem>>, vector<1x1x32xf32>
    %203 = vector.shape_cast %202 : vector<1x1x32xf32> to vector<1x32xf32>
    %204 = vector.broadcast %203 : vector<1x32xf32> to vector<24x32xf32>
    %205 = arith.addf %201, %204 : vector<24x32xf32>
    %206 = arith.mulf %205, %205 : vector<24x32xf32>
    %207 = arith.mulf %205, %206 : vector<24x32xf32>
    %cst_91 = arith.constant 4.471500e-02 : f32
    %208 = vector.broadcast %cst_91 : f32 to vector<24x32xf32>
    %209 = arith.mulf %208, %207 : vector<24x32xf32>
    %210 = arith.addf %205, %209 : vector<24x32xf32>
    %cst_92 = arith.constant 0.797884583 : f32
    %211 = vector.broadcast %cst_92 : f32 to vector<24x32xf32>
    %212 = arith.mulf %211, %210 : vector<24x32xf32>
    %213 = math.tanh %212 : vector<24x32xf32>
    %cst_93 = arith.constant 1.000000e+00 : f32
    %214 = vector.broadcast %cst_93 : f32 to vector<24x32xf32>
    %215 = arith.addf %214, %213 : vector<24x32xf32>
    %cst_94 = arith.constant 5.000000e-01 : f32
    %216 = vector.broadcast %cst_94 : f32 to vector<24x32xf32>
    %217 = arith.mulf %216, %215 : vector<24x32xf32>
    %218 = arith.mulf %205, %217 : vector<24x32xf32>
    %219 = arith.truncf %218 : vector<24x32xf32> to vector<24x32xbf16>
    %c1_95 = arith.constant 1 : index
    %c0_96 = arith.constant 0 : index
    %c0_97 = arith.constant 0 : index
    %220 = vector.load %arg9[%c1_95, %c0_96, %c0_97] : memref<3x32x32xbf16, #tpu.memory_space<vmem>>, vector<1x32x32xbf16>
    %221 = vector.shape_cast %220 : vector<1x32x32xbf16> to vector<32x32xbf16>
    %cst_98 = arith.constant dense<0.000000e+00> : vector<24x32xf32>
    %222 = tpu.matmul %219, %221, %cst_98 {dimension_numbers = #tpu.dot_dimension_numbers<[1], [0], [0], [1], [0, 0, 1, 1], [], []>} : vector<24x32xbf16>, vector<32x32xbf16>, vector<24x32xf32> -> vector<24x32xf32>
    %c1_99 = arith.constant 1 : index
    %c4_100 = arith.constant 4 : index
    %c0_101 = arith.constant 0 : index
    %223 = vector.load %arg10[%c1_99, %c4_100, %c0_101] : memref<3x7x32xf32, #tpu.memory_space<vmem>>, vector<1x1x32xf32>
    %224 = vector.shape_cast %223 : vector<1x1x32xf32> to vector<1x32xf32>
    %225 = vector.broadcast %224 : vector<1x32xf32> to vector<24x32xf32>
    %226 = arith.addf %222, %225 : vector<24x32xf32>
    %c1_102 = arith.constant 1 : index
    %c5_103 = arith.constant 5 : index
    %c0_104 = arith.constant 0 : index
    %227 = vector.load %arg10[%c1_102, %c5_103, %c0_104] : memref<3x7x32xf32, #tpu.memory_space<vmem>>, vector<1x1x32xf32>
    %228 = vector.shape_cast %227 : vector<1x1x32xf32> to vector<1x32xf32>
    %c1_105 = arith.constant 1 : index
    %c6_106 = arith.constant 6 : index
    %c0_107 = arith.constant 0 : index
    %229 = vector.load %arg10[%c1_105, %c6_106, %c0_107] : memref<3x7x32xf32, #tpu.memory_space<vmem>>, vector<1x1x32xf32>
    %230 = vector.shape_cast %229 : vector<1x1x32xf32> to vector<1x32xf32>
    %cst_108 = arith.constant dense<0.000000e+00> : vector<24xf32>
    %231 = vector.multi_reduction <add>, %226, %cst_108 [1] : vector<24x32xf32> to vector<24xf32>
    %232 = vector.shape_cast %231 : vector<24xf32> to vector<24x1xf32>
    %cst_109 = arith.constant 3.200000e+01 : f32
    %233 = vector.broadcast %cst_109 : f32 to vector<24x1xf32>
    %234 = arith.divf %232, %233 : vector<24x1xf32>
    %235 = vector.broadcast %234 : vector<24x1xf32> to vector<24x32xf32>
    %236 = arith.subf %226, %235 : vector<24x32xf32>
    %237 = arith.mulf %236, %236 : vector<24x32xf32>
    %cst_110 = arith.constant dense<0.000000e+00> : vector<24xf32>
    %238 = vector.multi_reduction <add>, %237, %cst_110 [1] : vector<24x32xf32> to vector<24xf32>
    %239 = vector.shape_cast %238 : vector<24xf32> to vector<24x1xf32>
    %cst_111 = arith.constant 3.200000e+01 : f32
    %240 = vector.broadcast %cst_111 : f32 to vector<24x1xf32>
    %241 = arith.divf %239, %240 : vector<24x1xf32>
    %242 = vector.broadcast %234 : vector<24x1xf32> to vector<24x32xf32>
    %243 = arith.subf %226, %242 : vector<24x32xf32>
    %cst_112 = arith.constant 9.99999974E-6 : f32
    %244 = vector.broadcast %cst_112 : f32 to vector<24x1xf32>
    %245 = arith.addf %241, %244 : vector<24x1xf32>
    %246 = math.rsqrt %245 : vector<24x1xf32>
    %247 = vector.broadcast %246 : vector<24x1xf32> to vector<24x32xf32>
    %248 = arith.mulf %243, %247 : vector<24x32xf32>
    %249 = vector.broadcast %228 : vector<1x32xf32> to vector<24x32xf32>
    %250 = arith.mulf %248, %249 : vector<24x32xf32>
    %251 = vector.broadcast %230 : vector<1x32xf32> to vector<24x32xf32>
    %252 = arith.addf %250, %251 : vector<24x32xf32>
    %253 = arith.addf %252, %197 : vector<24x32xf32>
    %254 = arith.truncf %253 : vector<24x32xf32> to vector<24x32xbf16>
    %c2_113 = arith.constant 2 : index
    %c0_114 = arith.constant 0 : index
    %c0_115 = arith.constant 0 : index
    %255 = vector.load %arg6[%c2_113, %c0_114, %c0_115] : memref<3x32x96xbf16, #tpu.memory_space<vmem>>, vector<1x32x96xbf16>
    %256 = vector.shape_cast %255 : vector<1x32x96xbf16> to vector<32x96xbf16>
    %cst_116 = arith.constant dense<0.000000e+00> : vector<24x96xf32>
    %257 = tpu.matmul %254, %256, %cst_116 {dimension_numbers = #tpu.dot_dimension_numbers<[1], [0], [0], [1], [0, 0, 1, 1], [], []>} : vector<24x32xbf16>, vector<32x96xbf16>, vector<24x96xf32> -> vector<24x96xf32>
    %258 = vector.extract_strided_slice %257 {offsets = [0, 0], sizes = [24, 32], strides = [1, 1]} : vector<24x96xf32> to vector<24x32xf32>
    %259 = vector.shape_cast %258 : vector<24x32xf32> to vector<1x24x32xf32>
    %260 = vector.extract_strided_slice %257 {offsets = [0, 32], sizes = [24, 32], strides = [1, 1]} : vector<24x96xf32> to vector<24x32xf32>
    %261 = vector.shape_cast %260 : vector<24x32xf32> to vector<1x24x32xf32>
    %262 = vector.extract_strided_slice %257 {offsets = [0, 64], sizes = [24, 32], strides = [1, 1]} : vector<24x96xf32> to vector<24x32xf32>
    %263 = vector.shape_cast %262 : vector<24x32xf32> to vector<1x24x32xf32>
    %264 = tpu.concatenate %261, %261, %261, %261, %261, %261, %261, %261 in 1 : vector<1x24x32xf32>, vector<1x24x32xf32>, vector<1x24x32xf32>, vector<1x24x32xf32>, vector<1x24x32xf32>, vector<1x24x32xf32>, vector<1x24x32xf32>, vector<1x24x32xf32> -> vector<1x192x32xf32>
    %265 = vector.shape_cast %8 : vector<192x32xf32> to vector<1x192x32xf32>
    %266 = arith.mulf %264, %265 : vector<1x192x32xf32>
    %267 = tpu.concatenate %263, %263, %263, %263, %263, %263, %263, %263 in 1 : vector<1x24x32xf32>, vector<1x24x32xf32>, vector<1x24x32xf32>, vector<1x24x32xf32>, vector<1x24x32xf32>, vector<1x24x32xf32>, vector<1x24x32xf32>, vector<1x24x32xf32> -> vector<1x192x32xf32>
    %268 = vector.shape_cast %8 : vector<192x32xf32> to vector<1x192x32xf32>
    %269 = arith.mulf %267, %268 : vector<1x192x32xf32>
    %cst_117 = arith.constant dense<0.000000e+00> : vector<1x24x192xf32>
    %270 = tpu.matmul %259, %266, %cst_117 {dimension_numbers = #tpu.dot_dimension_numbers<[2], [2], [1], [1], [0, 0, 0, 1, 1, 1], [0], [0]>} : vector<1x24x32xf32>, vector<1x192x32xf32>, vector<1x24x192xf32> -> vector<1x24x192xf32>
    %271 = vector.shape_cast %9 : vector<1x192xf32> to vector<1x1x192xf32>
    %272 = vector.broadcast %271 : vector<1x1x192xf32> to vector<1x24x192xf32>
    %273 = arith.addf %270, %272 : vector<1x24x192xf32>
    %cst_118 = arith.constant dense<0xFF800000> : vector<1x24xf32>
    %274 = vector.multi_reduction <maximumf>, %273, %cst_118 [2] : vector<1x24x192xf32> to vector<1x24xf32>
    %275 = vector.shape_cast %274 : vector<1x24xf32> to vector<1x24x1xf32>
    %276 = vector.broadcast %275 : vector<1x24x1xf32> to vector<1x24x192xf32>
    %277 = arith.subf %273, %276 : vector<1x24x192xf32>
    %278 = math.exp %277 : vector<1x24x192xf32>
    %279 = vector.shape_cast %278 : vector<1x24x192xf32> to vector<24x192xf32>
    %cst_119 = arith.constant dense<0.000000e+00> : vector<24x32xf32>
    %280 = tpu.matmul %279, %8, %cst_119 {dimension_numbers = #tpu.dot_dimension_numbers<[1], [0], [0], [1], [0, 0, 1, 1], [], []>} : vector<24x192xf32>, vector<192x32xf32>, vector<24x32xf32> -> vector<24x32xf32>
    %cst_120 = arith.constant dense<0.000000e+00> : vector<1x24x32xf32>
    %281 = tpu.matmul %278, %269, %cst_120 {dimension_numbers = #tpu.dot_dimension_numbers<[2], [1], [1], [2], [0, 0, 0, 1, 1, 2], [0], [0]>} : vector<1x24x192xf32>, vector<1x192x32xf32>, vector<1x24x32xf32> -> vector<1x24x32xf32>
    %282 = vector.shape_cast %281 : vector<1x24x32xf32> to vector<24x32xf32>
    %283 = tpu.reciprocal %280 {approx = true} : vector<24x32xf32> -> vector<24x32xf32>
    %284 = arith.mulf %282, %283 : vector<24x32xf32>
    %285 = arith.truncf %284 : vector<24x32xf32> to vector<24x32xbf16>
    %c2_121 = arith.constant 2 : index
    %c0_122 = arith.constant 0 : index
    %c0_123 = arith.constant 0 : index
    %286 = vector.load %arg7[%c2_121, %c0_122, %c0_123] : memref<3x32x32xbf16, #tpu.memory_space<vmem>>, vector<1x32x32xbf16>
    %287 = vector.shape_cast %286 : vector<1x32x32xbf16> to vector<32x32xbf16>
    %cst_124 = arith.constant dense<0.000000e+00> : vector<24x32xf32>
    %288 = tpu.matmul %285, %287, %cst_124 {dimension_numbers = #tpu.dot_dimension_numbers<[1], [0], [0], [1], [0, 0, 1, 1], [], []>} : vector<24x32xbf16>, vector<32x32xbf16>, vector<24x32xf32> -> vector<24x32xf32>
    %c2_125 = arith.constant 2 : index
    %c0_126 = arith.constant 0 : index
    %c0_127 = arith.constant 0 : index
    %289 = vector.load %arg10[%c2_125, %c0_126, %c0_127] : memref<3x7x32xf32, #tpu.memory_space<vmem>>, vector<1x1x32xf32>
    %290 = vector.shape_cast %289 : vector<1x1x32xf32> to vector<1x32xf32>
    %291 = vector.broadcast %290 : vector<1x32xf32> to vector<24x32xf32>
    %292 = arith.addf %288, %291 : vector<24x32xf32>
    %c2_128 = arith.constant 2 : index
    %c1_129 = arith.constant 1 : index
    %c0_130 = arith.constant 0 : index
    %293 = vector.load %arg10[%c2_128, %c1_129, %c0_130] : memref<3x7x32xf32, #tpu.memory_space<vmem>>, vector<1x1x32xf32>
    %294 = vector.shape_cast %293 : vector<1x1x32xf32> to vector<1x32xf32>
    %c2_131 = arith.constant 2 : index
    %c2_132 = arith.constant 2 : index
    %c0_133 = arith.constant 0 : index
    %295 = vector.load %arg10[%c2_131, %c2_132, %c0_133] : memref<3x7x32xf32, #tpu.memory_space<vmem>>, vector<1x1x32xf32>
    %296 = vector.shape_cast %295 : vector<1x1x32xf32> to vector<1x32xf32>
    %cst_134 = arith.constant dense<0.000000e+00> : vector<24xf32>
    %297 = vector.multi_reduction <add>, %292, %cst_134 [1] : vector<24x32xf32> to vector<24xf32>
    %298 = vector.shape_cast %297 : vector<24xf32> to vector<24x1xf32>
    %cst_135 = arith.constant 3.200000e+01 : f32
    %299 = vector.broadcast %cst_135 : f32 to vector<24x1xf32>
    %300 = arith.divf %298, %299 : vector<24x1xf32>
    %301 = vector.broadcast %300 : vector<24x1xf32> to vector<24x32xf32>
    %302 = arith.subf %292, %301 : vector<24x32xf32>
    %303 = arith.mulf %302, %302 : vector<24x32xf32>
    %cst_136 = arith.constant dense<0.000000e+00> : vector<24xf32>
    %304 = vector.multi_reduction <add>, %303, %cst_136 [1] : vector<24x32xf32> to vector<24xf32>
    %305 = vector.shape_cast %304 : vector<24xf32> to vector<24x1xf32>
    %cst_137 = arith.constant 3.200000e+01 : f32
    %306 = vector.broadcast %cst_137 : f32 to vector<24x1xf32>
    %307 = arith.divf %305, %306 : vector<24x1xf32>
    %308 = vector.broadcast %300 : vector<24x1xf32> to vector<24x32xf32>
    %309 = arith.subf %292, %308 : vector<24x32xf32>
    %cst_138 = arith.constant 9.99999974E-6 : f32
    %310 = vector.broadcast %cst_138 : f32 to vector<24x1xf32>
    %311 = arith.addf %307, %310 : vector<24x1xf32>
    %312 = math.rsqrt %311 : vector<24x1xf32>
    %313 = vector.broadcast %312 : vector<24x1xf32> to vector<24x32xf32>
    %314 = arith.mulf %309, %313 : vector<24x32xf32>
    %315 = vector.broadcast %294 : vector<1x32xf32> to vector<24x32xf32>
    %316 = arith.mulf %314, %315 : vector<24x32xf32>
    %317 = vector.broadcast %296 : vector<1x32xf32> to vector<24x32xf32>
    %318 = arith.addf %316, %317 : vector<24x32xf32>
    %319 = arith.addf %318, %253 : vector<24x32xf32>
    %320 = arith.truncf %319 : vector<24x32xf32> to vector<24x32xbf16>
    %c2_139 = arith.constant 2 : index
    %c0_140 = arith.constant 0 : index
    %c0_141 = arith.constant 0 : index
    %321 = vector.load %arg8[%c2_139, %c0_140, %c0_141] : memref<3x32x32xbf16, #tpu.memory_space<vmem>>, vector<1x32x32xbf16>
    %322 = vector.shape_cast %321 : vector<1x32x32xbf16> to vector<32x32xbf16>
    %cst_142 = arith.constant dense<0.000000e+00> : vector<24x32xf32>
    %323 = tpu.matmul %320, %322, %cst_142 {dimension_numbers = #tpu.dot_dimension_numbers<[1], [0], [0], [1], [0, 0, 1, 1], [], []>} : vector<24x32xbf16>, vector<32x32xbf16>, vector<24x32xf32> -> vector<24x32xf32>
    %c2_143 = arith.constant 2 : index
    %c3_144 = arith.constant 3 : index
    %c0_145 = arith.constant 0 : index
    %324 = vector.load %arg10[%c2_143, %c3_144, %c0_145] : memref<3x7x32xf32, #tpu.memory_space<vmem>>, vector<1x1x32xf32>
    %325 = vector.shape_cast %324 : vector<1x1x32xf32> to vector<1x32xf32>
    %326 = vector.broadcast %325 : vector<1x32xf32> to vector<24x32xf32>
    %327 = arith.addf %323, %326 : vector<24x32xf32>
    %328 = arith.mulf %327, %327 : vector<24x32xf32>
    %329 = arith.mulf %327, %328 : vector<24x32xf32>
    %cst_146 = arith.constant 4.471500e-02 : f32
    %330 = vector.broadcast %cst_146 : f32 to vector<24x32xf32>
    %331 = arith.mulf %330, %329 : vector<24x32xf32>
    %332 = arith.addf %327, %331 : vector<24x32xf32>
    %cst_147 = arith.constant 0.797884583 : f32
    %333 = vector.broadcast %cst_147 : f32 to vector<24x32xf32>
    %334 = arith.mulf %333, %332 : vector<24x32xf32>
    %335 = math.tanh %334 : vector<24x32xf32>
    %cst_148 = arith.constant 1.000000e+00 : f32
    %336 = vector.broadcast %cst_148 : f32 to vector<24x32xf32>
    %337 = arith.addf %336, %335 : vector<24x32xf32>
    %cst_149 = arith.constant 5.000000e-01 : f32
    %338 = vector.broadcast %cst_149 : f32 to vector<24x32xf32>
    %339 = arith.mulf %338, %337 : vector<24x32xf32>
    %340 = arith.mulf %327, %339 : vector<24x32xf32>
    %341 = arith.truncf %340 : vector<24x32xf32> to vector<24x32xbf16>
    %c2_150 = arith.constant 2 : index
    %c0_151 = arith.constant 0 : index
    %c0_152 = arith.constant 0 : index
    %342 = vector.load %arg9[%c2_150, %c0_151, %c0_152] : memref<3x32x32xbf16, #tpu.memory_space<vmem>>, vector<1x32x32xbf16>
    %343 = vector.shape_cast %342 : vector<1x32x32xbf16> to vector<32x32xbf16>
    %cst_153 = arith.constant dense<0.000000e+00> : vector<24x32xf32>
    %344 = tpu.matmul %341, %343, %cst_153 {dimension_numbers = #tpu.dot_dimension_numbers<[1], [0], [0], [1], [0, 0, 1, 1], [], []>} : vector<24x32xbf16>, vector<32x32xbf16>, vector<24x32xf32> -> vector<24x32xf32>
    %c2_154 = arith.constant 2 : index
    %c4_155 = arith.constant 4 : index
    %c0_156 = arith.constant 0 : index
    %345 = vector.load %arg10[%c2_154, %c4_155, %c0_156] : memref<3x7x32xf32, #tpu.memory_space<vmem>>, vector<1x1x32xf32>
    %346 = vector.shape_cast %345 : vector<1x1x32xf32> to vector<1x32xf32>
    %347 = vector.broadcast %346 : vector<1x32xf32> to vector<24x32xf32>
    %348 = arith.addf %344, %347 : vector<24x32xf32>
    %c2_157 = arith.constant 2 : index
    %c5_158 = arith.constant 5 : index
    %c0_159 = arith.constant 0 : index
    %349 = vector.load %arg10[%c2_157, %c5_158, %c0_159] : memref<3x7x32xf32, #tpu.memory_space<vmem>>, vector<1x1x32xf32>
    %350 = vector.shape_cast %349 : vector<1x1x32xf32> to vector<1x32xf32>
    %c2_160 = arith.constant 2 : index
    %c6_161 = arith.constant 6 : index
    %c0_162 = arith.constant 0 : index
    %351 = vector.load %arg10[%c2_160, %c6_161, %c0_162] : memref<3x7x32xf32, #tpu.memory_space<vmem>>, vector<1x1x32xf32>
    %352 = vector.shape_cast %351 : vector<1x1x32xf32> to vector<1x32xf32>
    %cst_163 = arith.constant dense<0.000000e+00> : vector<24xf32>
    %353 = vector.multi_reduction <add>, %348, %cst_163 [1] : vector<24x32xf32> to vector<24xf32>
    %354 = vector.shape_cast %353 : vector<24xf32> to vector<24x1xf32>
    %cst_164 = arith.constant 3.200000e+01 : f32
    %355 = vector.broadcast %cst_164 : f32 to vector<24x1xf32>
    %356 = arith.divf %354, %355 : vector<24x1xf32>
    %357 = vector.broadcast %356 : vector<24x1xf32> to vector<24x32xf32>
    %358 = arith.subf %348, %357 : vector<24x32xf32>
    %359 = arith.mulf %358, %358 : vector<24x32xf32>
    %cst_165 = arith.constant dense<0.000000e+00> : vector<24xf32>
    %360 = vector.multi_reduction <add>, %359, %cst_165 [1] : vector<24x32xf32> to vector<24xf32>
    %361 = vector.shape_cast %360 : vector<24xf32> to vector<24x1xf32>
    %cst_166 = arith.constant 3.200000e+01 : f32
    %362 = vector.broadcast %cst_166 : f32 to vector<24x1xf32>
    %363 = arith.divf %361, %362 : vector<24x1xf32>
    %364 = vector.broadcast %356 : vector<24x1xf32> to vector<24x32xf32>
    %365 = arith.subf %348, %364 : vector<24x32xf32>
    %cst_167 = arith.constant 9.99999974E-6 : f32
    %366 = vector.broadcast %cst_167 : f32 to vector<24x1xf32>
    %367 = arith.addf %363, %366 : vector<24x1xf32>
    %368 = math.rsqrt %367 : vector<24x1xf32>
    %369 = vector.broadcast %368 : vector<24x1xf32> to vector<24x32xf32>
    %370 = arith.mulf %365, %369 : vector<24x32xf32>
    %371 = vector.broadcast %350 : vector<1x32xf32> to vector<24x32xf32>
    %372 = arith.mulf %370, %371 : vector<24x32xf32>
    %373 = vector.broadcast %352 : vector<1x32xf32> to vector<24x32xf32>
    %374 = arith.addf %372, %373 : vector<24x32xf32>
    %375 = arith.addf %374, %319 : vector<24x32xf32>
    %c0_168 = arith.constant 0 : index
    %c0_169 = arith.constant 0 : index
    %376 = vector.load %arg11[%c0_168, %c0_169] : memref<24x32xf32, #tpu.memory_space<vmem>>, vector<24x32xf32>
    tpu.vector_store %arg11[%c0_168, %c0_169], %375 {strides = array<i32>} : memref<24x32xf32, #tpu.memory_space<vmem>>, vector<24x32xf32>,
    return
  }
  func.func @transform_0(%arg0: i32) -> (i32, i32) {
    %c0_i32 = arith.constant 0 : i32
    %c0_i32_0 = arith.constant 0 : i32
    return %arg0, %c0_i32 : i32, i32
  }
  func.func @transform_1(%arg0: i32) -> (i32, i32) {
    %c0_i32 = arith.constant 0 : i32
    %c0_i32_0 = arith.constant 0 : i32
    %c0_i32_1 = arith.constant 0 : i32
    return %c0_i32, %c0_i32_0 : i32, i32
  }
  func.func @transform_2(%arg0: i32) -> (i32, i32) {
    %c0_i32 = arith.constant 0 : i32
    %c0_i32_0 = arith.constant 0 : i32
    %c0_i32_1 = arith.constant 0 : i32
    return %c0_i32, %c0_i32_0 : i32, i32
  }
  func.func @transform_3(%arg0: i32) -> (i32, i32) {
    %c0_i32 = arith.constant 0 : i32
    %c0_i32_0 = arith.constant 0 : i32
    %c0_i32_1 = arith.constant 0 : i32
    return %c0_i32, %c0_i32_0 : i32, i32
  }
  func.func @transform_4(%arg0: i32) -> (i32, i32) {
    %c0_i32 = arith.constant 0 : i32
    %c0_i32_0 = arith.constant 0 : i32
    %c0_i32_1 = arith.constant 0 : i32
    return %c0_i32, %c0_i32_0 : i32, i32
  }
  func.func @transform_5(%arg0: i32) -> (i32, i32, i32) {
    %c0_i32 = arith.constant 0 : i32
    %c0_i32_0 = arith.constant 0 : i32
    %c0_i32_1 = arith.constant 0 : i32
    %c0_i32_2 = arith.constant 0 : i32
    return %c0_i32, %c0_i32_0, %c0_i32_1 : i32, i32, i32
  }
  func.func @transform_6(%arg0: i32) -> (i32, i32, i32) {
    %c0_i32 = arith.constant 0 : i32
    %c0_i32_0 = arith.constant 0 : i32
    %c0_i32_1 = arith.constant 0 : i32
    %c0_i32_2 = arith.constant 0 : i32
    return %c0_i32, %c0_i32_0, %c0_i32_1 : i32, i32, i32
  }
  func.func @transform_7(%arg0: i32) -> (i32, i32, i32) {
    %c0_i32 = arith.constant 0 : i32
    %c0_i32_0 = arith.constant 0 : i32
    %c0_i32_1 = arith.constant 0 : i32
    %c0_i32_2 = arith.constant 0 : i32
    return %c0_i32, %c0_i32_0, %c0_i32_1 : i32, i32, i32
  }
  func.func @transform_8(%arg0: i32) -> (i32, i32, i32) {
    %c0_i32 = arith.constant 0 : i32
    %c0_i32_0 = arith.constant 0 : i32
    %c0_i32_1 = arith.constant 0 : i32
    %c0_i32_2 = arith.constant 0 : i32
    return %c0_i32, %c0_i32_0, %c0_i32_1 : i32, i32, i32
  }
  func.func @transform_9(%arg0: i32) -> (i32, i32, i32) {
    %c0_i32 = arith.constant 0 : i32
    %c0_i32_0 = arith.constant 0 : i32
    %c0_i32_1 = arith.constant 0 : i32
    %c0_i32_2 = arith.constant 0 : i32
    return %c0_i32, %c0_i32_0, %c0_i32_1 : i32, i32, i32
  }
  func.func @transform_10(%arg0: i32) -> (i32, i32) {
    %c0_i32 = arith.constant 0 : i32
    %c0_i32_0 = arith.constant 0 : i32
    return %arg0, %c0_i32 : i32, i32
  }
}

</mosaic_0001>

<bundles_post_ra>
// kernel: tpu_custom_call.1
= control target key start
LH: loop header
LB: loop body
LE: loop exit
PB: predicated region body
PF: predicated region fallthrough
CT: control target
= control target key end

     0   :  { %s5096_s13 = smov 0   ;;  %s6695_s0 = inlined_call_operand.vmem [shape: bf16[48,64], index: 0, kind: input, shape index: {}]   ;;  %s6696_s1 = inlined_call_operand.vmem [shape: bf16[64,32], index: 1, kind: input, shape index: {}]   ;;  %s6697_s2 = inlined_call_operand.vmem [shape: f32[24,32], index: 2, kind: input, shape index: {}]   ;;  %s6698_s3 = inlined_call_operand.vmem [shape: f32[192,32], index: 3, kind: input, shape index: {}]   ;;  %s6699_s4 = inlined_call_operand.vmem [shape: f32[1,192], index: 4, kind: input, shape index: {}]   ;;  %s6700_s5 = inlined_call_operand.vmem [shape: bf16[3,32,96], index: 5, kind: input, shape index: {}]   ;;  %s6701_s6 = inlined_call_operand.vmem [shape: bf16[3,32,32], index: 6, kind: input, shape index: {}]   ;;  %s6702_s7 = inlined_call_operand.vmem [shape: bf16[3,32,32], index: 7, kind: input, shape index: {}]   ;;  %s6703_s8 = inlined_call_operand.vmem [shape: bf16[3,32,32], index: 8, kind: input, shape index: {}]   ;;  %s6704_s9 = inlined_call_operand.vmem [shape: f32[3,7,32], index: 9, kind: input, shape index: {}]   ;;  %s6705_s10 = inlined_call_operand.vmem [shape: f32[48,32], index: 10, kind: output, shape index: {}]  }
   0x1 LB: > { %s3764_s14 = sadd.s32 4294967295, %s5034_s13   ;;  %p3768_p0 = scmp.ge.s32.totalorder %s5034_s13, 1  ;;  %s5034_s13 = sphi %s5096_s13, %s20_s13  }
   0x2   : > { %p313_p1 = scmp.lt.s32.totalorder %s5034_s13, 3 }
   0x4   : > { %p314_p2 = pnand %p3768_p0, %p313_p1 }
   0x6   : > { %317 = sbr.rel (%p314_p2) target bundleno = 7536 (0x1d70), region = 60 }
   0xd   : > { %v4890_v0 = vld [vmem:[%s6696_s1] sm:$0xff]   ;;  %s351_s17 = smul.u32 3, %s3764_s14  ;;  %v4891_v1 = vld [vmem:[%s6696_s1 + $0x8] sm:$0xff]   ;;  %vm407_vm0 = vcmask 523264   ;;  %v4892_v2 = vld [vmem:[%s6696_s1 + $0x10] sm:$0xff]   ;;  %s5036_s18 = smov 32  }
   0xe   : > { %4049 = vmatprep.subr.bf16.mxu0 %v4890_v0  ;;  %v4893_v3 = vld [vmem:[%s6696_s1 + $0x18] sm:$0xff]   ;;  %v4896_v6 = vld [vmem:[%s6700_s5] sm:$0xff]   ;;  %v4897_v7 = vld [vmem:[%s6700_s5 + $0x8] sm:$0xff]   ;;  %vm511_vm1 = vcmask 261120   ;;  %v6706_v53 = vmov 0.0|0.0   ;;  %s5038_s21 = smov 96  }
   0xf   : > { %p352_p3 = scmp.lt.s32.totalorder %s351_s17, 5  ;;  %4050 = vmatpush3.bf16.msra.mxu0 %v4890_v0  ;;  %4061 = vmatprep.subr.bf16.mxu1 %v4896_v6  ;;  %v5133_v8 = vld [vmem:[%s6698_s3 + $0x10] sm:$0xff]  ;;  %v5138_v9 = vld [vmem:[%s6698_s3] sm:$0xff]  ;;  %v5147_v10 = vld [vmem:[%s6698_s3 + $0x18] sm:$0xff] }
  0x10   : > { %4051 = vmatprep.subr.bf16.mxu0 %v4891_v1  ;;  %4062 = vmatpush3.bf16.msra.mxu1 %v4896_v6  ;;  %v5152_v11 = vld [vmem:[%s6698_s3 + $0x8] sm:$0xff]  ;;  %v5166_v13 = vld [vmem:[%s6698_s3 + $0x20] sm:$0xff]  ;;  %v5175_v14 = vld [vmem:[%s6698_s3 + $0x38] sm:$0xff]  ;;  %v5308_v54 = vpack.c.bf16 %v5147_v10, %v5133_v8 }
  0x11   : > { %s6911_s17 = smov (!%p352_p3, %s351_s17), 5  ;;  %4063 = vmatprep.subr.bf16.mxu1 %v4897_v7  ;;  %594 = vrot.lane.b32.xlu1 %v5133_v8, %s5036_s18  ;;  %v5161_v12 = vld [vmem:[%s6698_s3 + $0x28] sm:$0xff]  ;;  %v5180_v15 = vld [vmem:[%s6698_s3 + $0x30] sm:$0xff]  ;;  %v5194_v17 = vld [vmem:[%s6698_s3 + $0x40] sm:$0xff]  ;;  %v5298_v50 = vpack.c.bf16 %v5152_v11, %v5138_v9 }
  0x12   : > { %s3769_s24 = sshll.u32 %s6911_s17, 2  ;;  %590 = vrot.lane.b32.xlu0 %v5138_v9, %s5036_s18  ;;  %v5189_v16 = vld [vmem:[%s6698_s3 + $0x48] sm:$0xff]  ;;  %v5203_v18 = vld [vmem:[%s6698_s3 + $0x58] sm:$0xff]  ;;  %v5208_v19 = vld [vmem:[%s6698_s3 + $0x50] sm:$0xff]  ;;  %v5316_v56 = vpack.c.bf16 %v5161_v12, %v5166_v13 }
  0x13   : > { %4052 = vmatpush3.bf16.msra.mxu0 %v4891_v1  ;;  %s355_s27 = scalar_lea.vmem %s6695_s0, %s3769_s24  ;;  %v5217_v20 = vld [vmem:[%s6698_s3 + $0x68] sm:$0xff]  ;;  %v5222_v21 = vld [vmem:[%s6698_s3 + $0x60] sm:$0xff]  ;;  %v5231_v22 = vld [vmem:[%s6698_s3 + $0x78] sm:$0xff]  ;;  %s3770_s24 = sshll.u32 %s6911_s17, 3 }
  0x14   : > { %4053 = vmatprep.subr.bf16.mxu0 %v4892_v2  ;;  %v4894_v4 = vld [vmem:[%s355_s27] sm:$0xff]   ;;  %v4895_v5 = vld [vmem:[%s355_s27 + $0x8] ss:$0 sps:$4 sm:$0xff]   ;;  %4064 = vmatpush3.bf16.msra.mxu1 %v4897_v7  ;;  %v5236_v23 = vld [vmem:[%s6698_s3 + $0x70] sm:$0xff]  ;;  %s361_s27 = scalar_lea.vmem %s6705_s10, %s3770_s24 }
  0x15   : > { %4057 = vmatprep.mubr.msk.bf16.mxu0 %vm407_vm0, %v4894_v4  ;;  %596 = vrot.lane.b32.xlu1 %v5147_v10, %s5036_s18  ;;  %v5245_v24 = vld [vmem:[%s6698_s3 + $0x80] sm:$0xff]  ;;  %v464_v26 = vld [vmem:[%s6697_s2 + $0x10] sm:$0xff]  ;;  %v463_v29 = vld [vmem:[%s6697_s2 + $0x8] sm:$0xff] }
  0x16   : > { %592 = vrot.lane.b32.xlu0 %v5152_v11, %s5036_s18  ;;  %v462_v28 = vld [vmem:[%s6697_s2] sm:$0xff]  ;;  %4157 = vmatprep.subr.bf16.mxu1 %v6706_v53  ;;  %vm5480_vm2 = vmpackc.low %vm511_vm1, %vm511_vm1 }
  0x17   : > { %4054 = vmatpush3.bf16.msra.mxu0 %v4892_v2 }
  0x18   : > { %4055 = vmatprep.subr.bf16.mxu0 %v4893_v3 }
  0x19   : > { %600 = vrot.lane.b32.xlu1 %v5161_v12, %s5036_s18 }
  0x1a   : > { %598 = vrot.lane.b32.xlu0 %v5166_v13, %s5036_s18 }
  0x1b   : > { %4056 = vmatpush3.bf16.msra.mxu0 %v4893_v3 }
  0x1c   : > { %4205 = vmatprep.subr.bf16.mxu0 %v6706_v53 }
  0x1d   : > { %604 = vrot.lane.b32.xlu1 %v5175_v14, %s5036_s18 }
  0x1e   : > { %4058 = vmatmul.mubr.msk.bf16.vlgmr.msra.gmra.mrb[0].mxu0 %vm407_vm0, %v4895_v5  ;;  %602 = vrot.lane.b32.xlu0 %v5180_v15, %s5036_s18 }
  0x1f   : > { %4207 = vmatpush1.bf16.msra.mxu0 %v5298_v50 }
  0x20   : > { %4208 = vmatprep.subr.bf16.mxu0 %v6706_v53 }
  0x21   : > { %608 = vrot.lane.b32.xlu1 %v5189_v16, %s5036_s18 }
  0x22   : > { %606 = vrot.lane.b32.xlu0 %v5194_v17, %s5036_s18 }
  0x23   : > { %4210 = vmatpush1.bf16.msra.mxu0 %v5308_v54 }
  0x24   : > { %4211 = vmatprep.subr.bf16.mxu0 %v6706_v53  ;;  %v5369_v53 = vld [vmem:[%s6698_s3 + $0x98] sm:$0xff] }
  0x25   : > { %612 = vrot.lane.b32.xlu1 %v5203_v18, %s5036_s18 }
  0x26   : > { %610 = vrot.lane.b32.xlu0 %v5208_v19, %s5036_s18 }
  0x27   : > { %4213 = vmatpush1.bf16.msra.mxu0 %v5316_v56 }
  0x29   : > { %616 = vrot.lane.b32.xlu1 %v5217_v20, %s5036_s18 }
  0x2a   : > { %614 = vrot.lane.b32.xlu0 %v5222_v21, %s5036_s18 }
  0x2d   : > { %620 = vrot.lane.b32.xlu1 %v5231_v22, %s5036_s18 }
  0x2e   : > { %618 = vrot.lane.b32.xlu0 %v5236_v23, %s5036_s18 }
  0x31   : > { %622 = vrot.lane.b32.xlu1 %v5245_v24, %s5036_s18 }
  0x83   : > { %v5272_v38 = vpop.permute.xlu1 %594 }
  0x84   : > { %v5270_v37 = vpop.permute.xlu0 %590 }
  0x85   : > { %6786 = vst [vmem:[#allocation2_spill] sm:$0xff] %v5270_v37 }
  0x87   : > { %v5276_v40 = vpop.permute.xlu1 %596 }
  0x88   : > { %v5274_v39 = vpop.permute.xlu0 %592  ;;  %6788 = vst [vmem:[#allocation4_spill] sm:$0xff] %v5276_v40 }
  0x89   : > { %6787 = vst [vmem:[#allocation3_spill] sm:$0xff] %v5274_v39 }
  0x8b   : > { %v5280_v42 = vpop.permute.xlu1 %600 }
  0x8c   : > { %v5278_v41 = vpop.permute.xlu0 %598 }
  0x8d   : > { %6789 = vst [vmem:[#allocation5_spill] sm:$0xff] %v5278_v41 }
  0x8f   : > { %v5284_v44 = vpop.permute.xlu1 %604 }
  0x90   : > { %v5282_v43 = vpop.permute.xlu0 %602  ;;  %6791 = vst [vmem:[#allocation7_spill] sm:$0xff] %v5284_v44 }
  0x91   : > { %6790 = vst [vmem:[#allocation6_spill] sm:$0xff] %v5282_v43 }
  0x93   : > { %v5288_v46 = vpop.permute.xlu1 %608 }
  0x94   : > { %v5286_v45 = vpop.permute.xlu0 %606  ;;  %6793 = vst [vmem:[#allocation9_spill] sm:$0xff] %v5288_v46 }
  0x95   : > { %6792 = vst [vmem:[#allocation8_spill] sm:$0xff] %v5286_v45 }
  0x97   : > { %v5292_v48 = vpop.permute.xlu1 %612 }
  0x98   : > { %v5290_v47 = vpop.permute.xlu0 %610  ;;  %6795 = vst [vmem:[#allocation11_spill] sm:$0xff] %v5292_v48 }
  0x99   : > { %6794 = vst [vmem:[#allocation10_spill] sm:$0xff] %v5290_v47 }
  0x9b   : > { %v5300_v51 = vpop.permute.xlu1 %616 }
  0x9c   : > { %v5294_v49 = vpop.permute.xlu0 %614  ;;  %6797 = vst [vmem:[#allocation13_spill] sm:$0xff] %v5300_v51 }
  0x9d   : > { %6796 = vst [vmem:[#allocation12_spill] sm:$0xff] %v5294_v49 }
  0x9f   : > { %v5318_v57 = vpop.permute.xlu1 %620 }
  0xa0   : > { %v5302_v52 = vpop.permute.xlu0 %618  ;;  %6799 = vst [vmem:[#allocation15_spill] sm:$0xff] %v5318_v57 }
  0xa1   : > { %6798 = vst [vmem:[#allocation14_spill] sm:$0xff] %v5302_v52 }
  0xf1   : > { %v4059_v25 = vpop.f32.mrb[0].mxu0 }
  0xf2   : > { %v448_v27 = vpop.f32.mrb[1].mxu0  ;;  %v5258_v31 = vadd.f32 %v4059_v25, %v464_v26 }
  0xf3   : > { %v4060_v30 = vpop.f32.mrb[2].mxu0  ;;  %v5260_v33 = vadd.f32 %v462_v28, %v448_v27 }
  0xf4   : > { %v451_v32 = vpop.f32.mrb[3].mxu0  ;;  %v494_v36 = vpack.c.bf16 %v5258_v31, %v5258_v31 }
  0xf5   : > { %v5262_v34 = vadd.f32 %v463_v29, %v451_v32 }
  0xf7   : > { %v493_v35 = vpack.c.bf16 %v5262_v34, %v5260_v33 }
  0xf9   : > { %4065 = vmatprep.mubr.msk.bf16.mxu1 %vm511_vm1, %v493_v35 }
  0xfa   : > { %4066 = vmatmul.mubr.msk.bf16.vlgmr.msra.gmra.mrb[0].mxu1 %vm511_vm1, %v494_v36 }
 0x1cd   : > { %v5311_v55 = vpop.f32.mrb[0].mxu1 }
 0x1ce   : > { %v5320_v58 = vpop.f32.mrb[1].mxu1  ;;  %v664_v59 = vmul.f32 %v5311_v55, %v5272_v38  ;;  %v667_v60 = vmul.f32 %v5311_v55, %v5280_v42  ;;  %v5328_v61 = vmul.f32 %v5311_v55, %v5302_v52  ;;  %v673_v1 = vmul.f32 %v5311_v55, %v5292_v48 }
 0x1cf   : > { %v4068_v62 = vpop.f32.mrb[2].mxu1  ;;  %v665_v63 = vmul.f32 %v5276_v40, %v5320_v58  ;;  %v662_v0 = vmul.f32 %v5270_v37, %v5320_v58  ;;  %v677_v2 = vmul.f32 %v5318_v57, %v5320_v58  ;;  %v668_v4 = vmul.f32 %v5282_v43, %v5320_v58 }
 0x1d0   : > { %v5338_v3 = vpop.f32.mrb[3].mxu1  ;;  %v670_v5 = vmul.f32 %v5311_v55, %v5286_v45  ;;  %v671_v6 = vmul.f32 %v5288_v46, %v5320_v58  ;;  %v674_v7 = vmul.f32 %v5294_v49, %v5320_v58  ;;  %v6803_v49 = vmov 0 }
 0x1d1   : > { %v4535_v25 = vpack.i.bf16 %v665_v63, %v664_v59  ;;  %v663_v26 = vmul.f32 %v5274_v39, %v5338_v3  ;;  %v669_v27 = vmul.f32 %v5284_v44, %v5338_v3  ;;  %v666_v28 = vmul.f32 %v5278_v41, %v5338_v3 }
 0x1d2   : > { %v672_v29 = vmul.f32 %v5290_v47, %v5338_v3  ;;  %v4565_v30 = vpack.i.bf16 %v677_v2, %v5328_v61  ;;  %v4550_v32 = vpack.i.bf16 %v671_v6, %v670_v5  ;;  %v675_v35 = vmul.f32 %v5300_v51, %v5338_v3 }
 0x1d3   : > { %4536 = vrot.lane.b32.xlu1 %v4535_v25, %s5038_s21  ;;  %v4530_v36 = vpack.i.bf16 %v663_v26, %v662_v0  ;;  %v4545_v59 = vpack.i.bf16 %v669_v27, %v668_v4  ;;  %v4540_v62 = vpack.i.bf16 %v667_v60, %v666_v28  ;;  %v5364_v63 = vpack.c.bf16 %v5175_v14, %v5180_v15  ;;  %v5377_v60 = vld [vmem:[%s6698_s3 + $0x88] sm:$0xff]  ;;  %v5397_v4 = vld [vmem:[%s6698_s3 + $0x90] sm:$0xff]  ;;  %v5417_v25 = vld [vmem:[%s6698_s3 + $0xb8] sm:$0xff] }
 0x1d4   : > { %v4555_v61 = vpack.i.bf16 %v673_v1, %v672_v29  ;;  %v4560_v2 = vpack.i.bf16 %v675_v35, %v674_v7  ;;  %v6800_v5 = vmov 0.0|0.0   ;;  %v5383_v0 = vpack.c.bf16 %v5189_v16, %v5194_v17  ;;  %v5388_v1 = vld [vmem:[%s6698_s3 + $0xa0] sm:$0xff]  ;;  %v5425_v26 = vld [vmem:[%s6698_s3 + $0xa8] sm:$0xff]  ;;  %v5440_v28 = vld [vmem:[%s6698_s3 + $0xb0] sm:$0xff] }
 0x1d5   : > { %4531 = vrot.lane.b32.xlu0 %v4530_v36, %s5038_s21  ;;  %4214 = vmatprep.subr.bf16.mxu0 %v6800_v5  ;;  %v5403_v6 = vpack.c.bf16 %v5203_v18, %v5208_v19  ;;  %v5412_v7 = vpack.c.bf16 %v5217_v20, %v5222_v21  ;;  %v5431_v27 = vpack.c.bf16 %v5231_v22, %v5236_v23  ;;  %v6804_v49 = vsel %vm5480_vm2, 4294967295, %v6803_v49 }
 0x1d6   : > { %4216 = vmatpush1.bf16.msra.mxu0 %v5364_v63  ;;  %v5445_v29 = vpack.c.bf16 %v5377_v60, %v5245_v24  ;;  %v5454_v35 = vpack.c.bf16 %v5369_v53, %v5397_v4  ;;  %v5461_v36 = vpack.c.bf16 %v5425_v26, %v5388_v1  ;;  %6805 = vst [vmem:[#allocation18_spill] sm:$0xff] %v6804_v49  ;;  %v783_v49 = vlaneseq }
 0x1d7   : > { %628 = vrot.lane.b32.xlu1 %v5369_v53, %s5036_s18  ;;  %4217 = vmatprep.subr.bf16.mxu0 %v6800_v5 }
 0x1d9   : > { %624 = vrot.lane.b32.xlu0 %v5377_v60, %s5036_s18 }
 0x1da   : > { %4219 = vmatpush1.bf16.msra.mxu0 %v5383_v0 }
 0x1db   : > { %630 = vrot.lane.b32.xlu1 %v5388_v1, %s5036_s18  ;;  %4220 = vmatprep.subr.bf16.mxu0 %v6800_v5 }
 0x1dd   : > { %626 = vrot.lane.b32.xlu0 %v5397_v4, %s5036_s18 }
 0x1de   : > { %4222 = vmatpush1.bf16.msra.mxu0 %v5403_v6 }
 0x1df   : > { %4546 = vrot.lane.b32.xlu1 %v4545_v59, %s5038_s21  ;;  %4223 = vmatprep.subr.bf16.mxu0 %v6800_v5 }
 0x1e1   : > { %4541 = vrot.lane.b32.xlu0 %v4540_v62, %s5038_s21 }
 0x1e2   : > { %4225 = vmatpush1.bf16.msra.mxu0 %v5412_v7 }
 0x1e3   : > { %636 = vrot.lane.b32.xlu1 %v5417_v25, %s5036_s18  ;;  %4226 = vmatprep.subr.bf16.mxu0 %v6800_v5 }
 0x1e5   : > { %632 = vrot.lane.b32.xlu0 %v5425_v26, %s5036_s18 }
 0x1e6   : > { %4228 = vmatpush1.bf16.msra.mxu0 %v5431_v27 }
 0x1e7   : > { %4556 = vrot.lane.b32.xlu1 %v4555_v61, %s5038_s21  ;;  %4229 = vmatprep.subr.bf16.mxu0 %v6800_v5 }
 0x1e9   : > { %634 = vrot.lane.b32.xlu0 %v5440_v28, %s5036_s18  ;;  %s5039_s18 = smov 64  }
 0x1ea   : > { %4231 = vmatpush1.bf16.msra.mxu0 %v5445_v29 }
 0x1eb   : > { %4566 = vrot.lane.b32.xlu1 %v4565_v30, %s5038_s21  ;;  %4232 = vmatprep.subr.bf16.mxu0 %v6800_v5  ;;  %v5468_v30 = vpack.c.bf16 %v5417_v25, %v5440_v28 }
 0x1ed   : > { %4551 = vrot.lane.b32.xlu0 %v4550_v32, %s5038_s21  ;;  %v5474_v32 = vpop.permute.xlu1 %622 }
 0x1ee   : > { %4234 = vmatpush1.bf16.msra.mxu0 %v5454_v35  ;;  %6801 = vst [vmem:[#allocation16_spill] sm:$0xff] %v5474_v32 }
 0x1ef   : > { %4235 = vmatprep.subr.bf16.mxu0 %v6800_v5 }
 0x1f1   : > { %4561 = vrot.lane.b32.xlu0 %v4560_v2, %s5038_s21 }
 0x1f2   : > { %4237 = vmatpush1.bf16.msra.mxu0 %v5461_v36 }
 0x1f3   : > { %4238 = vmatprep.subr.bf16.mxu0 %v6800_v5 }
 0x1f6   : > { %4240 = vmatpush1.bf16.msra.mxu0 %v5468_v30 }
 0x1f7   : > { %4241 = vmatprep.subr.bf16.mxu0 %v6800_v5 }
 0x245   : > { %v4537_v59 = vpop.permute.xlu1 %4536 }
 0x246   : > { %v4539_v46 = vunpack.i.h.bf16 %v4537_v59  ;;  %v4538_v45 = vunpack.i.l.bf16 %v4537_v59 }
 0x247   : > { %v4532_v62 = vpop.permute.xlu0 %4531 }
 0x248   : > { %v4534_v61 = vunpack.i.h.bf16 %v4532_v62  ;;  %v4533_v2 = vunpack.i.l.bf16 %v4532_v62  ;;  %v678_v62 = vmul.f32 %v5474_v32, %v5338_v3 }
 0x249   : > { %v5476_v51 = vpop.permute.xlu1 %628 }
 0x24a   : > { %6802 = vst [vmem:[#allocation17_spill] sm:$0xff] %v5476_v51  ;;  %v4158_v44 = vpack.c.bf16 %v4534_v61, %v4533_v2  ;;  %v681_v61 = vmul.f32 %v5476_v51, %v5338_v3 }
 0x24b   : > { %v5484_v41 = vpop.permute.xlu0 %624 }
 0x24c   : > { %6806 = vst [vmem:[#allocation19_spill] sm:$0xff] %v5484_v41  ;;  %v679_v47 = vmul.f32 %v5311_v55, %v5484_v41  ;;  %4160 = vmatpush1.bf16.xpose.msk.msra.mxu1 %vm5480_vm2, %v4158_v44  ;;  %v4162_v44 = vpack.c.bf16 %v4539_v46, %v4538_v45 }
 0x24d   : > { %v5492_v39 = vpop.permute.xlu1 %630  ;;  %4161 = vmatprep.subr.bf16.mxu1 %v6800_v5 }
 0x24e   : > { %6807 = vst [vmem:[#allocation20_spill] sm:$0xff] %v5492_v39  ;;  %v4570_v43 = vpack.i.bf16 %v679_v47, %v678_v62  ;;  %v682_v51 = vmul.f32 %v5311_v55, %v5492_v39 }
 0x24f   : > { %v5495_v57 = vpop.permute.xlu0 %626 }
 0x250   : > { %6808 = vst [vmem:[#allocation21_spill] sm:$0xff] %v5495_v57  ;;  %v680_v2 = vmul.f32 %v5495_v57, %v5320_v58  ;;  %4571 = vrot.lane.b32.xlu0 %v4570_v43, %s5038_s21 }
 0x251   : > { %v4547_v32 = vpop.permute.xlu1 %4546 }
 0x252   : > { %v4575_v41 = vpack.i.bf16 %v681_v61, %v680_v2  ;;  %v4548_v39 = vunpack.i.l.bf16 %v4547_v32 }
 0x253   : > { %v4542_v37 = vpop.permute.xlu0 %4541 }
 0x254   : > { %4576 = vrot.lane.b32.xlu1 %v4575_v41, %s5038_s21  ;;  %4164 = vmatpush1.bf16.xpose.msk.msra.mxu1 %vm5480_vm2, %v4162_v44  ;;  %v4544_v47 = vunpack.i.h.bf16 %v4542_v37  ;;  %v4543_v59 = vunpack.i.l.bf16 %v4542_v37 }
 0x255   : > { %4165 = vmatprep.subr.bf16.mxu1 %v6800_v5  ;;  %v5512_v45 = vpop.permute.xlu1 %636 }
 0x256   : > { %6810 = vst [vmem:[#allocation23_spill] sm:$0xff] %v5512_v45  ;;  %v4166_v46 = vpack.c.bf16 %v4544_v47, %v4543_v59  ;;  %v685_v2 = vmul.f32 %v5311_v55, %v5512_v45  ;;  %v6740_v59 = vmov 0.0  }
 0x257   : > { %v5506_v62 = vpop.permute.xlu0 %632  ;;  %986 = vmatprep.mubr.f32.mxu1 %v6740_v59 }
 0x258   : > { %6809 = vst [vmem:[#allocation22_spill] sm:$0xff] %v5506_v62  ;;  %v683_v43 = vmul.f32 %v5506_v62, %v5320_v58  ;;  %v4549_v62 = vunpack.i.h.bf16 %v4547_v32 }
 0x25a   : > { %v4580_v61 = vpack.i.bf16 %v683_v43, %v682_v51  ;;  %v4170_v51 = vpack.c.bf16 %v4549_v62, %v4548_v39  ;;  %v4557_v39 = vpop.permute.xlu1 %4556 }
 0x25b   : > { %v5514_v41 = vpop.permute.xlu0 %634  ;;  %v4558_v62 = vunpack.i.l.bf16 %v4557_v39 }
 0x25c   : > { %v684_v37 = vmul.f32 %v5514_v41, %v5338_v3  ;;  %4581 = vrot.lane.b32.xlu0 %v4580_v61, %s5038_s21  ;;  %4168 = vmatpush1.bf16.xpose.msk.msra.mxu1 %vm5480_vm2, %v4166_v46 }
 0x25d   : > { %4169 = vmatprep.subr.bf16.mxu1 %v6800_v5 }
 0x25e   : > { %v4585_v44 = vpack.i.bf16 %v685_v2, %v684_v37 }
 0x25f   : > { %v4552_v47 = vpop.permute.xlu0 %4551 }
 0x260   : > { %686 = vrot.lane.b32.xlu0 %v5138_v9, %s5039_s18  ;;  %4586 = vrot.lane.b32.xlu1 %v4585_v44, %s5038_s21  ;;  %v4554_v32 = vunpack.i.h.bf16 %v4552_v47  ;;  %v4553_v9 = vunpack.i.l.bf16 %v4552_v47 }
 0x264   : > { %690 = vrot.lane.b32.xlu0 %v5133_v8, %s5039_s18  ;;  %688 = vrot.lane.b32.xlu1 %v5152_v11, %s5039_s18  ;;  %v4174_v8 = vpack.c.bf16 %v4554_v32, %v4553_v9  ;;  %v4559_v11 = vunpack.i.h.bf16 %v4557_v39 }
 0x265   : > { %4172 = vmatpush1.bf16.xpose.msk.msra.mxu1 %vm5480_vm2, %v4170_v51 }
 0x266   : > { %4173 = vmatprep.subr.bf16.mxu1 %v6800_v5 }
 0x268   : > { %694 = vrot.lane.b32.xlu0 %v5166_v13, %s5039_s18  ;;  %692 = vrot.lane.b32.xlu1 %v5147_v10, %s5039_s18  ;;  %v4178_v10 = vpack.c.bf16 %v4559_v11, %v4558_v62  ;;  %v4562_v13 = vpop.permute.xlu0 %4561 }
 0x26c   : > { %698 = vrot.lane.b32.xlu0 %v5180_v15, %s5039_s18  ;;  %696 = vrot.lane.b32.xlu1 %v5161_v12, %s5039_s18  ;;  %v4564_v12 = vunpack.i.h.bf16 %v4562_v13  ;;  %v4563_v15 = vunpack.i.l.bf16 %v4562_v13 }
 0x26d   : > { %4176 = vmatpush1.bf16.xpose.msk.msra.mxu1 %vm5480_vm2, %v4174_v8 }
 0x26e   : > { %4177 = vmatprep.subr.bf16.mxu1 %v6800_v5 }
 0x270   : > { %702 = vrot.lane.b32.xlu0 %v5194_v17, %s5039_s18  ;;  %700 = vrot.lane.b32.xlu1 %v5175_v14, %s5039_s18  ;;  %v4182_v14 = vpack.c.bf16 %v4564_v12, %v4563_v15  ;;  %v4567_v17 = vpop.permute.xlu1 %4566 }
 0x274   : > { %706 = vrot.lane.b32.xlu0 %v5208_v19, %s5039_s18  ;;  %704 = vrot.lane.b32.xlu1 %v5189_v16, %s5039_s18  ;;  %v4569_v16 = vunpack.i.h.bf16 %v4567_v17  ;;  %v4568_v19 = vunpack.i.l.bf16 %v4567_v17 }
 0x275   : > { %4180 = vmatpush1.bf16.xpose.msk.msra.mxu1 %vm5480_vm2, %v4178_v10 }
 0x276   : > { %4181 = vmatprep.subr.bf16.mxu1 %v6800_v5 }
 0x278   : > { %710 = vrot.lane.b32.xlu0 %v5222_v21, %s5039_s18  ;;  %708 = vrot.lane.b32.xlu1 %v5203_v18, %s5039_s18  ;;  %v4186_v18 = vpack.c.bf16 %v4569_v16, %v4568_v19 }
 0x27c   : > { %714 = vrot.lane.b32.xlu0 %v5236_v23, %s5039_s18  ;;  %712 = vrot.lane.b32.xlu1 %v5217_v20, %s5039_s18 }
 0x27d   : > { %4184 = vmatpush1.bf16.xpose.msk.msra.mxu1 %vm5480_vm2, %v4182_v14 }
 0x27e   : > { %4185 = vmatprep.subr.bf16.mxu1 %v6800_v5 }
 0x280   : > { %718 = vrot.lane.b32.xlu0 %v5245_v24, %s5039_s18  ;;  %716 = vrot.lane.b32.xlu1 %v5231_v22, %s5039_s18 }
 0x284   : > { %720 = vrot.lane.b32.xlu1 %v5377_v60, %s5039_s18 }
 0x285   : > { %4188 = vmatpush1.bf16.xpose.msk.msra.mxu1 %vm5480_vm2, %v4186_v18 }
 0x286   : > { %4189 = vmatprep.subr.bf16.mxu1 %v6800_v5 }
 0x288   : > { %722 = vrot.lane.b32.xlu1 %v5397_v4, %s5039_s18 }
 0x28c   : > { %724 = vrot.lane.b32.xlu1 %v5369_v53, %s5039_s18 }
 0x290   : > { %726 = vrot.lane.b32.xlu1 %v5388_v1, %s5039_s18 }
 0x294   : > { %728 = vrot.lane.b32.xlu1 %v5425_v26, %s5039_s18 }
 0x298   : > { %730 = vrot.lane.b32.xlu1 %v5440_v28, %s5039_s18 }
 0x29c   : > { %732 = vrot.lane.b32.xlu1 %v5417_v25, %s5039_s18 }
 0x2c2   : > { %v4572_v20 = vpop.permute.xlu0 %4571 }
 0x2c3   : > { %v4574_v21 = vunpack.i.h.bf16 %v4572_v20  ;;  %v4573_v22 = vunpack.i.l.bf16 %v4572_v20 }
 0x2c5   : > { %v4190_v23 = vpack.c.bf16 %v4574_v21, %v4573_v22 }
 0x2c6   : > { %v4577_v24 = vpop.permute.xlu1 %4576 }
 0x2c7   : > { %4192 = vmatpush1.bf16.xpose.msk.msra.mxu1 %vm5480_vm2, %v4190_v23  ;;  %v4579_v53 = vunpack.i.h.bf16 %v4577_v24  ;;  %v4578_v60 = vunpack.i.l.bf16 %v4577_v24 }
 0x2c8   : > { %4193 = vmatprep.subr.bf16.mxu1 %v6800_v5 }
 0x2c9   : > { %v4194_v1 = vpack.c.bf16 %v4579_v53, %v4578_v60 }
 0x2ce   : > { %v4582_v4 = vpop.permute.xlu0 %4581 }
 0x2cf   : > { %4196 = vmatpush1.bf16.xpose.msk.msra.mxu1 %vm5480_vm2, %v4194_v1  ;;  %v4584_v25 = vunpack.i.h.bf16 %v4582_v4  ;;  %v4583_v26 = vunpack.i.l.bf16 %v4582_v4 }
 0x2d0   : > { %4197 = vmatprep.subr.bf16.mxu1 %v6800_v5 }
 0x2d1   : > { %v4198_v46 = vpack.c.bf16 %v4584_v25, %v4583_v26 }
 0x2d2   : > { %v4587_v28 = vpop.permute.xlu1 %4586  ;;  %v5595_v43 = vpop.permute.xlu0 %686 }
 0x2d3   : > { %v758_v37 = vmul.f32 %v5595_v43, %v5320_v58  ;;  %v4589_v51 = vunpack.i.h.bf16 %v4587_v28  ;;  %v4588_v47 = vunpack.i.l.bf16 %v4587_v28 }
 0x2d5   : > { %v4202_v62 = vpack.c.bf16 %v4589_v51, %v4588_v47 }
 0x2d6   : > { %v5597_v61 = vpop.permute.xlu1 %688  ;;  %v5599_v2 = vpop.permute.xlu0 %690 }
 0x2d7   : > { %6811 = vst [vmem:[#allocation24_spill] sm:$0xff] %v5599_v2  ;;  %v759_v44 = vmul.f32 %v5597_v61, %v5338_v3  ;;  %4200 = vmatpush1.bf16.xpose.msk.msra.mxu1 %vm5480_vm2, %v4198_v46  ;;  %v760_v39 = vmul.f32 %v5311_v55, %v5599_v2 }
 0x2d8   : > { %4201 = vmatprep.subr.bf16.mxu1 %v6800_v5 }
 0x2d9   : > { %v4595_v32 = vpack.i.bf16 %v759_v44, %v758_v37 }
 0x2da   : > { %v5608_v9 = vpop.permute.xlu1 %692  ;;  %v5610_v8 = vpop.permute.xlu0 %694 }
 0x2db   : > { %6812 = vst [vmem:[#allocation25_spill] sm:$0xff] %v5608_v9  ;;  %6813 = vst [vmem:[#allocation26_spill] sm:$0xff] %v5610_v8  ;;  %v761_v11 = vmul.f32 %v5608_v9, %v5320_v58  ;;  %v762_v15 = vmul.f32 %v5610_v8, %v5338_v3 }
 0x2dd   : > { %v4590_v10 = vpack.i.bf16 %v761_v11, %v760_v39 }
 0x2de   : > { %v5616_v13 = vpop.permute.xlu1 %696  ;;  %v5618_v12 = vpop.permute.xlu0 %698 }
 0x2df   : > { %6814 = vst [vmem:[#allocation27_spill] sm:$0xff] %v5616_v13  ;;  %6815 = vst [vmem:[#allocation28_spill] sm:$0xff] %v5618_v12  ;;  %v763_v14 = vmul.f32 %v5311_v55, %v5616_v13  ;;  %4591 = vrot.lane.b32.xlu1 %v4590_v10, %s5039_s18  ;;  %4204 = vmatpush1.bf16.xpose.msk.msra.mxu1 %vm5480_vm2, %v4202_v62  ;;  %v5633_v18 = vmul.f32 %v5618_v12, %v5320_v58 }
 0x2e1   : > { %v4600_v17 = vpack.i.bf16 %v763_v14, %v762_v15 }
 0x2e2   : > { %v5627_v16 = vpop.permute.xlu1 %700  ;;  %v5629_v19 = vpop.permute.xlu0 %702 }
 0x2e3   : > { %6816 = vst [vmem:[#allocation29_spill] sm:$0xff] %v5627_v16  ;;  %6817 = vst [vmem:[#allocation30_spill] sm:$0xff] %v5629_v19  ;;  %v5637_v20 = vmul.f32 %v5627_v16, %v5338_v3  ;;  %4596 = vrot.lane.b32.xlu1 %v4595_v32, %s5039_s18  ;;  %4601 = vrot.lane.b32.xlu0 %v4600_v17, %s5039_s18  ;;  %v766_v24 = vmul.f32 %v5311_v55, %v5629_v19 }
 0x2e6   : > { %v5643_v22 = vpop.permute.xlu1 %704  ;;  %v5645_v23 = vpop.permute.xlu0 %706  ;;  %3807 = vmatmul.mubr.msk.f32.vlgmr.msra.gmra.mrb[4].mxu1 %vm511_vm1, %v5320_v58 }
 0x2e7   : > { %6818 = vst [vmem:[#allocation31_spill] sm:$0xff] %v5643_v22  ;;  %6819 = vst [vmem:[#allocation32_spill] sm:$0xff] %v5645_v23  ;;  %v767_v53 = vmul.f32 %v5643_v22, %v5320_v58  ;;  %992 = vmatprep.mubr.f32.mxu1 %v6740_v59  ;;  %v768_v25 = vmul.f32 %v5645_v23, %v5338_v3 }
 0x2e9   : > { %v4610_v60 = vpack.i.bf16 %v767_v53, %v766_v24 }
 0x2ea   : > { %v5654_v1 = vpop.permute.xlu1 %708  ;;  %v5656_v4 = vpop.permute.xlu0 %710  ;;  %3808 = vmatmul.mubr.msk.f32.gmra.mrb[6].mxu1 %vm511_vm1, %v5338_v3 }
 0x2eb   : > { %6820 = vst [vmem:[#allocation33_spill] sm:$0xff] %v5654_v1  ;;  %6821 = vst [vmem:[#allocation34_spill] sm:$0xff] %v5656_v4  ;;  %v769_v26 = vmul.f32 %v5311_v55, %v5654_v1  ;;  %4611 = vrot.lane.b32.xlu1 %v4610_v60, %s5039_s18  ;;  %998 = vmatprep.mubr.f32.mxu1 %v6740_v59  ;;  %v770_v44 = vmul.f32 %v5656_v4, %v5320_v58 }
 0x2ed   : > { %v4615_v28 = vpack.i.bf16 %v769_v26, %v768_v25 }
 0x2ee   : > { %v5666_v46 = vpop.permute.xlu1 %712  ;;  %v5668_v37 = vpop.permute.xlu0 %714  ;;  %3809 = vmatmul.mubr.msk.f32.gmra.mrb[8].mxu1 %vm511_vm1, %v5311_v55 }
 0x2ef   : > { %6822 = vst [vmem:[#allocation35_spill] sm:$0xff] %v5666_v46  ;;  %6823 = vst [vmem:[#allocation36_spill] sm:$0xff] %v5668_v37  ;;  %v771_v51 = vmul.f32 %v5666_v46, %v5338_v3  ;;  %4616 = vrot.lane.b32.xlu1 %v4615_v28, %s5039_s18  ;;  %v772_v39 = vmul.f32 %v5311_v55, %v5668_v37 }
 0x2f1   : > { %v4620_v47 = vpack.i.bf16 %v771_v51, %v770_v44 }
 0x2f2   : > { %v5677_v32 = vpop.permute.xlu1 %716  ;;  %v5683_v62 = vpop.permute.xlu0 %718 }
 0x2f3   : > { %6824 = vst [vmem:[#allocation37_spill] sm:$0xff] %v5677_v32  ;;  %v773_v11 = vmul.f32 %v5677_v32, %v5320_v58  ;;  %6825 = vst [vmem:[#allocation38_spill] sm:$0xff] %v5683_v62  ;;  %v774_v14 = vmul.f32 %v5683_v62, %v5338_v3 }
 0x2f5   : > { %v4625_v10 = vpack.i.bf16 %v773_v11, %v772_v39 }
 0x2f6   : > { %v5685_v15 = vpop.permute.xlu1 %720 }
 0x2f7   : > { %6826 = vst [vmem:[#allocation39_spill] sm:$0xff] %v5685_v15  ;;  %v775_v17 = vmul.f32 %v5311_v55, %v5685_v15  ;;  %v492_v15 = vld [vmem:[%s6699_s4] sm:$0x3] }
 0x2f9   : > { %v4630_v24 = vpack.i.bf16 %v775_v17, %v774_v14 }
 0x2fa   : > { %v5691_v53 = vpop.permute.xlu1 %722 }
 0x2fb   : > { %6827 = vst [vmem:[#allocation40_spill] sm:$0xff] %v5691_v53  ;;  %v776_v25 = vmul.f32 %v5691_v53, %v5320_v58 }
 0x2fe   : > { %v5693_v60 = vpop.permute.xlu1 %724 }
 0x2ff   : > { %6828 = vst [vmem:[#allocation41_spill] sm:$0xff] %v5693_v60  ;;  %v777_v26 = vmul.f32 %v5693_v60, %v5338_v3  ;;  %v784_v60 = vshrl.u32 %v783_v49, 7 }
 0x301   : > { %v4635_v28 = vpack.i.bf16 %v777_v26, %v776_v25  ;;  %v789_v53 = vsub.s32 1, %v784_v60 }
 0x302   : > { %v5699_v44 = vpop.permute.xlu1 %726 }
 0x303   : > { %6829 = vst [vmem:[#allocation42_spill] sm:$0xff] %v5699_v44  ;;  %v778_v39 = vmul.f32 %v5311_v55, %v5699_v44 }
 0x306   : > { %v5701_v51 = vpop.permute.xlu1 %728 }
 0x307   : > { %6830 = vst [vmem:[#allocation43_spill] sm:$0xff] %v5701_v51  ;;  %v779_v11 = vmul.f32 %v5701_v51, %v5320_v58  ;;  %v785_v58 = vsub.s32 0, %v784_v60 }
 0x309   : > { %v4640_v14 = vpack.i.bf16 %v779_v11, %v778_v39  ;;  %v5718_v39 = vrot.slane %v492_v15, %v789_v53  ;;  %v5720_v11 = vrot.slane %v492_v15, %v785_v58 }
 0x30a   : > { %v5707_v17 = vpop.permute.xlu1 %730 }
 0x30b   : > { %6831 = vst [vmem:[#allocation44_spill] sm:$0xff] %v5707_v17  ;;  %v780_v21 = vmul.f32 %v5707_v17, %v5338_v3  ;;  %6833 = vst [vmem:[#allocation46_spill] sm:$0xff] %v5718_v39 }
 0x30c   : > { %6834 = vst [vmem:[#allocation47_spill] sm:$0xff] %v5720_v11 }
 0x30e   : > { %v5709_v59 = vpop.permute.xlu1 %732 }
 0x30f   : > { %6832 = vst [vmem:[#allocation45_spill] sm:$0xff] %v5709_v59  ;;  %v781_v25 = vmul.f32 %v5311_v55, %v5709_v59 }
 0x311   : > { %v4645_v26 = vpack.i.bf16 %v781_v25, %v780_v21 }
 0x3b9   : > { %v988_v62 = vpop.f32.mrb[4].mxu1 }
 0x3ba   : > { %v990_v51 = vpop.f32.mrb[5].mxu1  ;;  %v989_v17 = vadd.f32 %v988_v62, %v5720_v11  ;;  %v6835_v62 = vpack.i.bf16 %v5637_v20, %v5633_v18  ;;  %v4592_v20 = vpop.permute.xlu1 %4591 }
 0x3bb   : > { %v991_v3 = vadd.f32 %v990_v51, %v5718_v39  ;;  %v4594_v37 = vunpack.i.h.bf16 %v4592_v20 }
 0x3bd   : > { %v994_v55 = vpop.f32.mrb[6].mxu1  ;;  %v1005_v21 = vsel %vm407_vm0, %v991_v3, -inf }
 0x3be   : > { %v996_v49 = vpop.f32.mrb[7].mxu1  ;;  %v1006_v25 = vmax.f32 %v989_v17, %v1005_v21  ;;  %v995_v44 = vadd.f32 %v994_v55, %v5720_v11 }
 0x3bf   : > { %v997_v59 = vadd.f32 %v996_v49, %v5718_v39 }
 0x3c0   : > { %1007 = vmax.xlane.f32.xlu0 %v1006_v25 }
 0x3c1   : > { %v1000_v53 = vpop.f32.mrb[8].mxu1  ;;  %v1009_v15 = vsel %vm407_vm0, %v997_v59, -inf }
 0x3c2   : > { %v1002_v60 = vpop.f32.mrb[9].mxu1  ;;  %v1010_v58 = vmax.f32 %v995_v44, %v1009_v15 }
 0x3c3   : > { %v5738_v51 = vadd.f32 %v1002_v60, %v5718_v39 }
 0x3c4   : > { %1011 = vmax.xlane.f32.xlu1 %v1010_v58 }
 0x3c5   : > { %v1013_v55 = vsel %vm407_vm0, %v5738_v51, -inf }
 0x3d5   : > { %4626 = vrot.lane.b32.xlu1 %v4625_v10, %s5039_s18  ;;  %v5743_v10 = vadd.f32 %v1000_v53, %v5720_v11 }
 0x3d6   : > { %4606 = vrot.lane.b32.xlu0 %v6835_v62, %s5039_s18 }
 0x3d7   : > { %v1014_v18 = vmax.f32 %v5743_v10, %v1013_v55 }
 0x3d9   : > { %4631 = vrot.lane.b32.xlu1 %v4630_v24, %s5039_s18  ;;  %v4597_v24 = vpop.permute.xlu1 %4596 }
 0x3dd   : > { %4636 = vrot.lane.b32.xlu1 %v4635_v28, %s5039_s18  ;;  %v4612_v28 = vpop.permute.xlu1 %4611 }
 0x3e1   : > { %4641 = vrot.lane.b32.xlu1 %v4640_v14, %s5039_s18  ;;  %v4602_v14 = vpop.permute.xlu0 %4601  ;;  %v4617_v21 = vpop.permute.xlu1 %4616 }
 0x3e5   : > { %4646 = vrot.lane.b32.xlu1 %v4645_v26, %s5039_s18 }
 0x3f5   : > { %1015 = vmax.xlane.f32.xlu0 %v1014_v18  ;;  %v4598_v18 = vunpack.i.l.bf16 %v4597_v24 }
 0x40b   : > { %4621 = vrot.lane.b32.xlu0 %v4620_v47, %s5039_s18  ;;  %v4599_v47 = vunpack.i.h.bf16 %v4597_v24  ;;  %v4604_v24 = vunpack.i.h.bf16 %v4602_v14 }
 0x44d   : > { %v1008_v26 = vpop.xlane.xlu0 %1007 }
 0x44e   : > { %v1017_v49 = vsub.f32 %v989_v17, %v1008_v26  ;;  %v1018_v25 = vsub.f32 %v991_v3, %v1008_v26  ;;  %v4593_v17 = vunpack.i.l.bf16 %v4592_v20  ;;  %v4242_v3 = vpack.c.bf16 %v4599_v47, %v4598_v18 }
 0x44f   : > { %v4603_v26 = vunpack.i.l.bf16 %v4602_v14 }
 0x450   : > { %v1023_v15 = vmul.f32 1.442695, %v1017_v49  ;;  %v1025_v60 = vmul.f32 1.442695, %v1018_v25 }
 0x451   : > { %v1012_v58 = vpop.xlane.xlu1 %1011  ;;  %v4607_v20 = vpop.permute.xlu0 %4606  ;;  %v4248_v49 = vpack.c.bf16 %v4604_v24, %v4603_v26 }
 0x452   : > { %4920 = vpow2.f32 %v1023_v15  ;;  %v1019_v62 = vsub.f32 %v995_v44, %v1012_v58  ;;  %v1020_v53 = vsub.f32 %v997_v59, %v1012_v58  ;;  %v4609_v25 = vunpack.i.h.bf16 %v4607_v20 }
 0x453   : > { %4922 = vpow2.f32 %v1025_v60  ;;  %v4608_v15 = vunpack.i.l.bf16 %v4607_v20  ;;  %v4614_v60 = vunpack.i.h.bf16 %v4612_v28  ;;  %v4613_v58 = vunpack.i.l.bf16 %v4612_v28 }
 0x454   : > { %v1027_v11 = vmul.f32 1.442695, %v1019_v62  ;;  %v1029_v55 = vmul.f32 1.442695, %v1020_v53  ;;  %v4619_v62 = vunpack.i.h.bf16 %v4617_v21  ;;  %v4618_v53 = vunpack.i.l.bf16 %v4617_v21 }
 0x455   : > { %v4254_v14 = vpack.c.bf16 %v4614_v60, %v4613_v58  ;;  %v4627_v47 = vpop.permute.xlu1 %4626 }
 0x456   : > { %4924 = vpow2.f32 %v1027_v11  ;;  %v4245_v11 = vpack.c.bf16 %v4594_v37, %v4593_v17  ;;  %v4251_v37 = vpack.c.bf16 %v4609_v25, %v4608_v15  ;;  %v4628_v25 = vunpack.i.l.bf16 %v4627_v47 }
 0x457   : > { %4926 = vpow2.f32 %v1029_v55  ;;  %v4257_v55 = vpack.c.bf16 %v4619_v62, %v4618_v53 }
 0x45c   : > { %v5747_v39 = vpop.eup %4920 }
 0x45d   : > { %v5749_v32 = vpop.eup %4922 }
 0x45e   : > { %3810 = vmatprep.mubr.msk.f32.mxu0 %vm407_vm0, %v5749_v32 }
 0x45f   : > { %1109 = vmatmul.mubr.f32.vlgmr.msra.gmra.mrb[4].mxu0 %v5747_v39 }
 0x460   : > { %v5754_v59 = vpop.eup %4924  ;;  %4243 = vmatpush1.bf16.msra.mxu0 %v4242_v3  ;;  %v4632_v3 = vpop.permute.xlu1 %4631 }
 0x461   : > { %v5756_v44 = vpop.eup %4926  ;;  %4244 = vmatprep.subr.bf16.mxu0 %v6800_v5 }
 0x462   : > { %3811 = vmatprep.mubr.msk.f32.mxu0 %vm407_vm0, %v5756_v44 }
 0x463   : > { %1114 = vmatmul.mubr.f32.gmra.mrb[6].mxu0 %v5754_v59 }
 0x464   : > { %4246 = vmatpush1.bf16.msra.mxu0 %v4245_v11  ;;  %v4637_v60 = vpop.permute.xlu1 %4636 }
 0x465   : > { %4247 = vmatprep.subr.bf16.mxu0 %v6800_v5  ;;  %v4639_v53 = vunpack.i.h.bf16 %v4637_v60 }
 0x468   : > { %4249 = vmatpush1.bf16.msra.mxu0 %v4248_v49  ;;  %v4629_v49 = vunpack.i.h.bf16 %v4627_v47 }
 0x469   : > { %4250 = vmatprep.subr.bf16.mxu0 %v6800_v5 }
 0x46a   : > { %v4263_v58 = vpack.c.bf16 %v4629_v49, %v4628_v25 }
 0x46c   : > { %4252 = vmatpush1.bf16.msra.mxu0 %v4251_v37  ;;  %v4634_v37 = vunpack.i.h.bf16 %v4632_v3 }
 0x46d   : > { %4253 = vmatprep.subr.bf16.mxu0 %v6800_v5 }
 0x470   : > { %4255 = vmatpush1.bf16.msra.mxu0 %v4254_v14 }
 0x471   : > { %4256 = vmatprep.subr.bf16.mxu0 %v6800_v5 }
 0x474   : > { %4258 = vmatpush1.bf16.msra.mxu0 %v4257_v55  ;;  %v4638_v55 = vunpack.i.l.bf16 %v4637_v60 }
 0x475   : > { %4259 = vmatprep.subr.bf16.mxu0 %v6800_v5 }
 0x476   : > { %v4269_v47 = vpack.c.bf16 %v4639_v53, %v4638_v55 }
 0x482   : > { %v1016_v18 = vpop.xlane.xlu0 %1015 }
 0x483   : > { %v1021_v17 = vsub.f32 %v5743_v10, %v1016_v18  ;;  %v1022_v28 = vsub.f32 %v5738_v51, %v1016_v18  ;;  %v4633_v10 = vunpack.i.l.bf16 %v4632_v3  ;;  %v4642_v51 = vpop.permute.xlu1 %4641 }
 0x485   : > { %v1031_v11 = vmul.f32 1.442695, %v1021_v17  ;;  %v1033_v24 = vmul.f32 1.442695, %v1022_v28  ;;  %v4266_v62 = vpack.c.bf16 %v4634_v37, %v4633_v10  ;;  %v4644_v17 = vunpack.i.h.bf16 %v4642_v51 }
 0x486   : > { %v4622_v26 = vpop.permute.xlu0 %4621  ;;  %v4643_v28 = vunpack.i.l.bf16 %v4642_v51 }
 0x487   : > { %4928 = vpow2.f32 %v1031_v11  ;;  %v4624_v20 = vunpack.i.h.bf16 %v4622_v26  ;;  %v4623_v21 = vunpack.i.l.bf16 %v4622_v26  ;;  %v4647_v3 = vpop.permute.xlu1 %4646 }
 0x488   : > { %4930 = vpow2.f32 %v1033_v24  ;;  %v4272_v11 = vpack.c.bf16 %v4644_v17, %v4643_v28  ;;  %v4649_v24 = vunpack.i.h.bf16 %v4647_v3  ;;  %v4648_v26 = vunpack.i.l.bf16 %v4647_v3 }
 0x489   : > { %v4260_v15 = vpack.c.bf16 %v4624_v20, %v4623_v21  ;;  %v4899_v21 = vld [vmem:[%s6701_s6 + $0x8] sm:$0xff]  }
 0x48a   : > { %v4275_v20 = vpack.c.bf16 %v4649_v24, %v4648_v26 }
 0x48b   : > { %4261 = vmatpush1.bf16.msra.mxu0 %v4260_v15 }
 0x48c   : > { %4262 = vmatprep.subr.bf16.mxu0 %v6800_v5 }
 0x48f   : > { %4264 = vmatpush1.bf16.msra.mxu0 %v4263_v58 }
 0x490   : > { %4265 = vmatprep.subr.bf16.mxu0 %v6800_v5 }
 0x491   : > { %v4929_v14 = vpop.eup %4928 }
 0x492   : > { %v4931_v18 = vpop.eup %4930 }
 0x493   : > { %3812 = vmatprep.mubr.msk.f32.mxu0 %vm407_vm0, %v4931_v18  ;;  %4267 = vmatpush1.bf16.msra.mxu0 %v4266_v62 }
 0x494   : > { %1119 = vmatmul.mubr.f32.gmra.mrb[8].mxu0 %v4929_v14  ;;  %4268 = vmatprep.subr.bf16.mxu0 %v6800_v5 }
 0x495   : > { %3813 = vmatprep.mubr.msk.f32.mxu0 %vm407_vm0, %v5749_v32  ;;  %v4898_v32 = vld [vmem:[%s6701_s6] sm:$0xff]  }
 0x496   : > { %4069 = vmatprep.subr.bf16.mxu1 %v4898_v32 }
 0x497   : > { %4270 = vmatpush1.bf16.msra.mxu0 %v4269_v47  ;;  %4070 = vmatpush3.bf16.msra.mxu1 %v4898_v32 }
 0x498   : > { %4271 = vmatprep.subr.bf16.mxu0 %v6800_v5  ;;  %4071 = vmatprep.subr.bf16.mxu1 %v4899_v21 }
 0x49b   : > { %4273 = vmatpush1.bf16.msra.mxu0 %v4272_v11  ;;  %4072 = vmatpush3.bf16.msra.mxu1 %v4899_v21  ;;  %v3816_v11 = vld [vmem:[%s6704_s9] ss:$0 sm:$0xff] }
 0x49c   : > { %4274 = vmatprep.subr.bf16.mxu0 %v6800_v5 }
 0x49f   : > { %4276 = vmatpush1.bf16.msra.mxu0 %v4275_v20 }
 0x4a2   : > { %1285 = vmatmul.mubr.f32.vlgmr.msra.gmra.mrb[10].mxu0 %v5747_v39 }
 0x4a3   : > { %3814 = vmatprep.mubr.msk.f32.mxu0 %vm407_vm0, %v5756_v44 }
 0x4a6   : > { %1290 = vmatmul.mubr.f32.gmra.mrb[12].mxu0 %v5754_v59 }
 0x4a7   : > { %3815 = vmatprep.mubr.msk.f32.mxu0 %vm407_vm0, %v4931_v18 }
 0x4aa   : > { %1295 = vmatmul.mubr.f32.gmra.mrb[14].mxu0 %v4929_v14 }
 0x532   : > { %v1110_v39 = vpop.f32.mrb[4].mxu0 }
 0x533   : > { %v1112_v49 = vpop.f32.mrb[5].mxu0  ;;  %4932 = vrcp.f32 %v1110_v39 }
 0x536   : > { %v1115_v44 = vpop.f32.mrb[6].mxu0 }
 0x537   : > { %v1117_v25 = vpop.f32.mrb[7].mxu0  ;;  %4934 = vrcp.f32 %v1115_v44 }
 0x53d   : > { %v4933_v60 = vpop.eup %4932 }
 0x541   : > { %v4935_v51 = vpop.eup %4934 }
 0x567   : > { %v1120_v59 = vpop.f32.mrb[8].mxu0 }
 0x568   : > { %v1122_v15 = vpop.f32.mrb[9].mxu0  ;;  %4936 = vrcp.f32 %v1120_v59 }
 0x572   : > { %v4937_v18 = vpop.eup %4936 }
 0x575   : > { %v1286_v58 = vpop.f32.mrb[10].mxu0 }
 0x576   : > { %v1303_v37 = vmul.f32 %v4933_v60, %v1286_v58  ;;  %v1288_v10 = vpop.f32.mrb[11].mxu0 }
 0x579   : > { %v1291_v14 = vpop.f32.mrb[12].mxu0 }
 0x57a   : > { %v1304_v62 = vmul.f32 %v4935_v51, %v1291_v14  ;;  %v1293_v53 = vpop.f32.mrb[13].mxu0 }
 0x57c   : > { %v1306_v55 = vpack.c.bf16 %v1304_v62, %v1303_v37 }
 0x57d   : > { %v1296_v47 = vpop.f32.mrb[14].mxu0 }
 0x57e   : > { %v1305_v17 = vmul.f32 %v4937_v18, %v1296_v47  ;;  %v1298_v28 = vpop.f32.mrb[15].mxu0  ;;  %4073 = vmatprep.mubr.msk.bf16.mxu1 %vm511_vm1, %v1306_v55 }
 0x580   : > { %v1307_v3 = vpack.c.bf16 %v1305_v17, %v1305_v17 }
 0x582   : > { %4074 = vmatmul.mubr.msk.bf16.vlgmr.msra.gmra.mrb[12].mxu1 %vm511_vm1, %v1307_v3 }
 0x655   : > { %v4075_v24 = vpop.f32.mrb[12].mxu1 }
 0x656   : > { %v1369_v26 = vpop.f32.mrb[13].mxu1  ;;  %v1378_v44 = vadd.f32 %v4075_v24, %v3816_v11  ;;  %v4901_v24 = vld [vmem:[%s6702_s7 + $0x8] sm:$0xff]  }
 0x657   : > { %v1370_v20 = vadd.f32 %v3816_v11, %v1369_v26  ;;  %v4076_v32 = vpop.f32.mrb[14].mxu1 }
 0x658   : > { %v1372_v21 = vpop.f32.mrb[15].mxu1  ;;  %v1391_v59 = vsel %vm511_vm1, %v1378_v44, 0.0 }
 0x659   : > { %v1373_v39 = vadd.f32 %v3816_v11, %v1372_v21  ;;  %v1385_v49 = vsel %vm511_vm1, %v1370_v20, 0.0  ;;  %v4900_v11 = vld [vmem:[%s6702_s7] sm:$0xff]  }
 0x65a   : > { %1386 = vadd.xlane.f32.xlu1 %v1385_v49  ;;  %4077 = vmatprep.subr.bf16.mxu0 %v4900_v11 }
 0x65b   : > { %v1388_v25 = vsel %vm511_vm1, %v1373_v39, 0.0  ;;  %4078 = vmatpush3.bf16.msra.mxu0 %v4900_v11 }
 0x65c   : > { %1389 = vadd.xlane.f32.xlu0 %v1388_v25  ;;  %4079 = vmatprep.subr.bf16.mxu0 %v4901_v24 }
 0x65f   : > { %4080 = vmatpush3.bf16.msra.mxu0 %v4901_v24 }
 0x660   : > { %1392 = vadd.xlane.f32.xlu0 %v1391_v59 }
 0x6e7   : > { %v1387_v15 = vpop.xlane.xlu1 %1386 }
 0x6e8   : > { %v1395_v60 = vmul.f32 0.03125, %v1387_v15 }
 0x6e9   : > { %v1390_v58 = vpop.xlane.xlu0 %1389 }
 0x6ea   : > { %v1398_v37 = vsub.f32 %v1370_v20, %v1395_v60  ;;  %v1396_v10 = vmul.f32 0.03125, %v1390_v58  ;;  %v3821_v60 = vld [vmem:[%s6704_s9 + $0x1] ss:$0 sm:$0xff] }
 0x6ec   : > { %v1399_v51 = vsub.f32 %v1373_v39, %v1396_v10  ;;  %v1401_v14 = vmul.f32 %v1398_v37, %v1398_v37 }
 0x6ed   : > { %v1393_v62 = vpop.xlane.xlu0 %1392 }
 0x6ee   : > { %v1397_v53 = vmul.f32 0.03125, %v1393_v62  ;;  %v1404_v55 = vsel %vm511_vm1, %v1401_v14, 0.0  ;;  %v1402_v18 = vmul.f32 %v1399_v51, %v1399_v51  ;;  %v3822_v14 = vld [vmem:[%s6704_s9 + $0x2] ss:$0 sm:$0xff] }
 0x6ef   : > { %1405 = vadd.xlane.f32.xlu0 %v1404_v55 }
 0x6f0   : > { %v1400_v47 = vsub.f32 %v1378_v44, %v1397_v53  ;;  %v1407_v17 = vsel %vm511_vm1, %v1402_v18, 0.0 }
 0x6f1   : > { %1408 = vadd.xlane.f32.xlu1 %v1407_v17 }
 0x6f2   : > { %v1403_v28 = vmul.f32 %v1400_v47, %v1400_v47 }
 0x6f4   : > { %v1410_v3 = vsel %vm511_vm1, %v1403_v28, 0.0 }
 0x6f5   : > { %1411 = vadd.xlane.f32.xlu0 %v1410_v3 }
 0x77c   : > { %v1406_v26 = vpop.xlane.xlu0 %1405 }
 0x77d   : > { %v1413_v20 = vmul.f32 0.03125, %v1406_v26 }
 0x77e   : > { %v1409_v32 = vpop.xlane.xlu1 %1408 }
 0x77f   : > { %v1416_v21 = vadd.f32 1e-05, %v1413_v20  ;;  %v1414_v39 = vmul.f32 0.03125, %v1409_v32 }
 0x781   : > { %4938 = vrsqrt.f32 %v1416_v21  ;;  %v1417_v49 = vadd.f32 1e-05, %v1414_v39 }
 0x782   : > { %v1412_v44 = vpop.xlane.xlu0 %1411 }
 0x783   : > { %4940 = vrsqrt.f32 %v1417_v49  ;;  %v1415_v25 = vmul.f32 0.03125, %v1412_v44 }
 0x785   : > { %v1418_v59 = vadd.f32 1e-05, %v1415_v25 }
 0x787   : > { %4942 = vrsqrt.f32 %v1418_v59 }
 0x78b   : > { %v4939_v15 = vpop.eup %4938 }
 0x78c   : > { %v1422_v58 = vmul.f32 %v4939_v15, %v1398_v37 }
 0x78d   : > { %v4941_v10 = vpop.eup %4940 }
 0x78e   : > { %v1423_v62 = vmul.f32 %v4941_v10, %v1399_v51  ;;  %v1429_v53 = vmul.f32 %v3821_v60, %v1422_v58 }
 0x790   : > { %v1430_v55 = vmul.f32 %v3821_v60, %v1423_v62  ;;  %v1436_v18 = vadd.f32 %v3822_v14, %v1429_v53 }
 0x791   : > { %v4943_v17 = vpop.eup %4942 }
 0x792   : > { %v1424_v28 = vmul.f32 %v4943_v17, %v1400_v47  ;;  %v1437_v3 = vadd.f32 %v3822_v14, %v1430_v55  ;;  %v5812_v24 = vadd.f32 %v1436_v18, %v5260_v33  ;;  %v4902_v33 = vld [vmem:[%s6703_s8] sm:$0xff]  }
 0x793   : > { %4085 = vmatprep.subr.bf16.mxu1 %v4902_v33 }
 0x794   : > { %v1431_v11 = vmul.f32 %v3821_v60, %v1424_v28  ;;  %v5815_v26 = vadd.f32 %v1437_v3, %v5262_v34  ;;  %4086 = vmatpush3.bf16.msra.mxu1 %v4902_v33  ;;  %v4903_v34 = vld [vmem:[%s6703_s8 + $0x8] sm:$0xff]  }
 0x795   : > { %4087 = vmatprep.subr.bf16.mxu1 %v4903_v34 }
 0x796   : > { %v1438_v37 = vadd.f32 %v3822_v14, %v1431_v11  ;;  %v1442_v20 = vpack.c.bf16 %v5815_v26, %v5812_v24 }
 0x798   : > { %v5820_v32 = vadd.f32 %v1438_v37, %v5258_v31  ;;  %4081 = vmatprep.mubr.msk.bf16.mxu0 %vm511_vm1, %v1442_v20  ;;  %4088 = vmatpush3.bf16.msra.mxu1 %v4903_v34  ;;  %v3823_v31 = vld [vmem:[%s6704_s9 + $0x3] ss:$0 sm:$0xff] }
 0x799   : > { %4277 = vmatprep.subr.bf16.mxu1 %v6800_v5 }
 0x79a   : > { %v1443_v51 = vpack.c.bf16 %v5820_v32, %v5820_v32 }
 0x79c   : > { %4082 = vmatmul.mubr.msk.bf16.vlgmr.msra.gmra.mrb[16].mxu0 %vm511_vm1, %v1443_v51 }
 0x86f   : > { %v4083_v47 = vpop.f32.mrb[16].mxu0 }
 0x870   : > { %v1514_v21 = vadd.f32 %v4083_v47, %v3823_v31  ;;  %v1505_v39 = vpop.f32.mrb[17].mxu0 }
 0x871   : > { %v1506_v49 = vadd.f32 %v3823_v31, %v1505_v39  ;;  %v4084_v44 = vpop.f32.mrb[18].mxu0 }
 0x872   : > { %v1521_v25 = vmul.f32 %v1514_v21, %v1514_v21  ;;  %v1508_v59 = vpop.f32.mrb[19].mxu0 }
 0x873   : > { %v1519_v15 = vmul.f32 %v1506_v49, %v1506_v49  ;;  %v1509_v60 = vadd.f32 %v3823_v31, %v1508_v59 }
 0x874   : > { %v1524_v58 = vmul.f32 %v1521_v25, %v1514_v21 }
 0x875   : > { %v1522_v10 = vmul.f32 %v1519_v15, %v1506_v49  ;;  %v1520_v14 = vmul.f32 %v1509_v60, %v1509_v60 }
 0x876   : > { %v1527_v62 = vmul.f32 0.044715, %v1524_v58 }
 0x877   : > { %v1525_v53 = vmul.f32 0.044715, %v1522_v10  ;;  %v1523_v55 = vmul.f32 %v1520_v14, %v1509_v60 }
 0x878   : > { %v1530_v18 = vadd.f32 %v1527_v62, %v1514_v21 }
 0x879   : > { %v1528_v17 = vadd.f32 %v1525_v53, %v1506_v49  ;;  %v1526_v28 = vmul.f32 0.044715, %v1523_v55  ;;  %v6836_v53 = vmov 0.0   ;;  %v3828_v55 = vld [vmem:[%s6704_s9 + $0x4] ss:$0 sm:$0xff] }
 0x87a   : > { %v1533_v3 = vmul.f32 0.7978846, %v1530_v18 }
 0x87b   : > { %v1531_v11 = vmul.f32 0.7978846, %v1528_v17  ;;  %v1529_v37 = vadd.f32 %v1526_v28, %v1509_v60 }
 0x87c   : > { %4944 = vtanh.f32 %v1533_v3 }
 0x87d   : > { %4946 = vtanh.f32 %v1531_v11  ;;  %v1532_v20 = vmul.f32 0.7978846, %v1529_v37 }
 0x87f   : > { %4948 = vtanh.f32 %v1532_v20 }
 0x886   : > { %v4945_v51 = vpop.eup %4944 }
 0x887   : > { %v4947_v33 = vpop.eup %4946  ;;  %v1539_v34 = vadd.f32 1.0, %v4945_v51 }
 0x888   : > { %v1537_v31 = vadd.f32 1.0, %v4947_v33 }
 0x889   : > { %v4949_v47 = vpop.eup %4948  ;;  %v1542_v39 = vmul.f32 0.5, %v1539_v34 }
 0x88a   : > { %v1540_v44 = vmul.f32 0.5, %v1537_v31  ;;  %v1538_v25 = vadd.f32 1.0, %v4949_v47 }
 0x88b   : > { %v1545_v15 = vmul.f32 %v1542_v39, %v1514_v21 }
 0x88c   : > { %v1541_v59 = vmul.f32 0.5, %v1538_v25  ;;  %v1543_v58 = vmul.f32 %v1540_v44, %v1506_v49 }
 0x88d   : > { %v1547_v62 = vpack.c.bf16 %v1545_v15, %v1545_v15 }
 0x88e   : > { %v1544_v10 = vmul.f32 %v1541_v59, %v1509_v60 }
 0x890   : > { %v1546_v14 = vpack.c.bf16 %v1544_v10, %v1543_v58 }
 0x892   : > { %4089 = vmatprep.mubr.msk.bf16.mxu1 %vm511_vm1, %v1546_v14 }
 0x893   : > { %4090 = vmatmul.mubr.msk.bf16.vlgmr.msra.gmra.mrb[16].mxu1 %vm511_vm1, %v1547_v62 }
 0x894   : > { %1995 = vmatprep.mubr.f32.mxu1 %v6836_v53 }
 0x966   : > { %v4091_v18 = vpop.f32.mrb[16].mxu1 }
 0x967   : > { %v1609_v17 = vpop.f32.mrb[17].mxu1  ;;  %v1618_v21 = vadd.f32 %v4091_v18, %v3828_v55  ;;  %v4904_v18 = vld [vmem:[%s6700_s5 + $0x10] sm:$0xff]  }
 0x968   : > { %v1610_v28 = vadd.f32 %v3828_v55, %v1609_v17  ;;  %v4092_v3 = vpop.f32.mrb[18].mxu1  ;;  %v4905_v17 = vld [vmem:[%s6700_s5 + $0x18] sm:$0xff]   ;;  %4093 = vmatprep.subr.bf16.mxu0 %v4904_v18 }
 0x969   : > { %v1612_v11 = vpop.f32.mrb[19].mxu1  ;;  %v1631_v20 = vsel %vm511_vm1, %v1618_v21, 0.0  ;;  %4094 = vmatpush3.bf16.msra.mxu0 %v4904_v18 }
 0x96a   : > { %v1613_v49 = vadd.f32 %v3828_v55, %v1612_v11  ;;  %v1625_v60 = vsel %vm511_vm1, %v1610_v28, 0.0  ;;  %4095 = vmatprep.subr.bf16.mxu0 %v4905_v17 }
 0x96b   : > { %1626 = vadd.xlane.f32.xlu1 %v1625_v60 }
 0x96c   : > { %v1628_v37 = vsel %vm511_vm1, %v1613_v49, 0.0 }
 0x96d   : > { %1629 = vadd.xlane.f32.xlu0 %v1628_v37  ;;  %4096 = vmatpush3.bf16.msra.mxu0 %v4905_v17 }
 0x96e   : > { %4325 = vmatprep.subr.bf16.mxu0 %v6800_v5 }
 0x96f   : > { %1632 = vadd.xlane.f32.xlu1 %v1631_v20 }
 0x9f8   : > { %v1627_v51 = vpop.xlane.xlu1 %1626 }
 0x9f9   : > { %v1634_v33 = vmul.f32 0.03125, %v1627_v51 }
 0x9fa   : > { %v1630_v34 = vpop.xlane.xlu0 %1629 }
 0x9fb   : > { %v1637_v31 = vsub.f32 %v1610_v28, %v1634_v33  ;;  %v1635_v47 = vmul.f32 0.03125, %v1630_v34  ;;  %v3833_v34 = vld [vmem:[%s6704_s9 + $0x5] ss:$0 sm:$0xff] }
 0x9fc   : > { %v1633_v39 = vpop.xlane.xlu1 %1632 }
 0x9fd   : > { %v1638_v44 = vsub.f32 %v1613_v49, %v1635_v47  ;;  %v1636_v25 = vmul.f32 0.03125, %v1633_v39  ;;  %v1640_v59 = vmul.f32 %v1637_v31, %v1637_v31 }
 0x9ff   : > { %v1639_v15 = vsub.f32 %v1618_v21, %v1636_v25  ;;  %v1643_v58 = vsel %vm511_vm1, %v1640_v59, 0.0  ;;  %v1641_v10 = vmul.f32 %v1638_v44, %v1638_v44  ;;  %v3834_v25 = vld [vmem:[%s6704_s9 + $0x6] ss:$0 sm:$0xff] }
 0xa00   : > { %1644 = vadd.xlane.f32.xlu0 %v1643_v58 }
 0xa01   : > { %v1646_v14 = vsel %vm511_vm1, %v1641_v10, 0.0  ;;  %v1642_v62 = vmul.f32 %v1639_v15, %v1639_v15 }
 0xa02   : > { %1647 = vadd.xlane.f32.xlu1 %v1646_v14 }
 0xa03   : > { %v1649_v55 = vsel %vm511_vm1, %v1642_v62, 0.0 }
 0xa04   : > { %1650 = vadd.xlane.f32.xlu0 %v1649_v55 }
 0xa8d   : > { %v1645_v28 = vpop.xlane.xlu0 %1644 }
 0xa8e   : > { %v1652_v3 = vmul.f32 0.03125, %v1645_v28 }
 0xa8f   : > { %v1648_v11 = vpop.xlane.xlu1 %1647 }
 0xa90   : > { %v1655_v21 = vadd.f32 1e-05, %v1652_v3  ;;  %v1653_v49 = vmul.f32 0.03125, %v1648_v11 }
 0xa91   : > { %v1651_v60 = vpop.xlane.xlu0 %1650 }
 0xa92   : > { %4950 = vrsqrt.f32 %v1655_v21  ;;  %v1656_v37 = vadd.f32 1e-05, %v1653_v49  ;;  %v1654_v20 = vmul.f32 0.03125, %v1651_v60 }
 0xa94   : > { %4952 = vrsqrt.f32 %v1656_v37  ;;  %v1657_v51 = vadd.f32 1e-05, %v1654_v20 }
 0xa96   : > { %4954 = vrsqrt.f32 %v1657_v51  ;;  %v6837_v51 = vld [vmem:[#allocation2_spill] sm:$0xff] }
 0xa9c   : > { %v4951_v33 = vpop.eup %4950 }
 0xa9d   : > { %v1661_v47 = vmul.f32 %v4951_v33, %v1637_v31 }
 0xa9e   : > { %v4953_v39 = vpop.eup %4952 }
 0xa9f   : > { %v1662_v59 = vmul.f32 %v4953_v39, %v1638_v44  ;;  %v1668_v58 = vmul.f32 %v3833_v34, %v1661_v47  ;;  %v6839_v39 = vld [vmem:[#allocation6_spill] sm:$0xff] }
 0xaa0   : > { %v4955_v10 = vpop.eup %4954 }
 0xaa1   : > { %v1663_v14 = vmul.f32 %v4955_v10, %v1639_v15  ;;  %v1669_v62 = vmul.f32 %v3833_v34, %v1662_v59  ;;  %v1675_v55 = vadd.f32 %v3834_v25, %v1668_v58  ;;  %v6840_v10 = vld [vmem:[#allocation8_spill] sm:$0xff] }
 0xaa3   : > { %v1670_v18 = vmul.f32 %v3833_v34, %v1663_v14  ;;  %v1676_v17 = vadd.f32 %v3834_v25, %v1669_v62  ;;  %v5862_v28 = vadd.f32 %v1675_v55, %v5812_v24  ;;  %v6838_v34 = vld [vmem:[#allocation15_spill] sm:$0xff]  ;;  %v6841_v62 = vld [vmem:[#allocation9_spill] sm:$0xff] }
 0xaa5   : > { %v5865_v3 = vadd.f32 %v1676_v17, %v5815_v26  ;;  %v1677_v31 = vadd.f32 %v3834_v25, %v1670_v18 }
 0xaa7   : > { %v1681_v11 = vpack.c.bf16 %v5865_v3, %v5862_v28  ;;  %v5870_v21 = vadd.f32 %v1677_v31, %v5820_v32  ;;  %v6842_v31 = vld [vmem:[#allocation3_spill] sm:$0xff] }
 0xaa9   : > { %4097 = vmatprep.mubr.msk.bf16.mxu0 %vm511_vm1, %v1681_v11  ;;  %v1682_v44 = vpack.c.bf16 %v5870_v21, %v5870_v21 }
 0xaab   : > { %4098 = vmatmul.mubr.msk.bf16.vlgmr.msra.gmra.mrb[20].mxu0 %vm511_vm1, %v1682_v44  ;;  %v6843_v44 = vld [vmem:[#allocation10_spill] sm:$0xff] }
 0xaac   : > { %4327 = vmatpush1.bf16.msra.mxu0 %v5298_v50 }
 0xaad   : > { %4328 = vmatprep.subr.bf16.mxu0 %v6800_v5 }
 0xab0   : > { %4330 = vmatpush1.bf16.msra.mxu0 %v5308_v54 }
 0xab1   : > { %4331 = vmatprep.subr.bf16.mxu0 %v6800_v5 }
 0xab4   : > { %4333 = vmatpush1.bf16.msra.mxu0 %v5316_v56 }
 0xab5   : > { %4334 = vmatprep.subr.bf16.mxu0 %v6800_v5 }
 0xab8   : > { %4336 = vmatpush1.bf16.msra.mxu0 %v5364_v63 }
 0xab9   : > { %4337 = vmatprep.subr.bf16.mxu0 %v6800_v5 }
 0xabc   : > { %4339 = vmatpush1.bf16.msra.mxu0 %v5383_v0 }
 0xabd   : > { %4340 = vmatprep.subr.bf16.mxu0 %v6800_v5 }
 0xac0   : > { %4342 = vmatpush1.bf16.msra.mxu0 %v5403_v6 }
 0xac1   : > { %4343 = vmatprep.subr.bf16.mxu0 %v6800_v5 }
 0xac4   : > { %4345 = vmatpush1.bf16.msra.mxu0 %v5412_v7 }
 0xac5   : > { %4346 = vmatprep.subr.bf16.mxu0 %v6800_v5 }
 0xac8   : > { %4348 = vmatpush1.bf16.msra.mxu0 %v5431_v27 }
 0xac9   : > { %4349 = vmatprep.subr.bf16.mxu0 %v6800_v5 }
 0xacc   : > { %4351 = vmatpush1.bf16.msra.mxu0 %v5445_v29 }
 0xacd   : > { %4352 = vmatprep.subr.bf16.mxu0 %v6800_v5 }
 0xad0   : > { %4354 = vmatpush1.bf16.msra.mxu0 %v5454_v35 }
 0xad1   : > { %4355 = vmatprep.subr.bf16.mxu0 %v6800_v5 }
 0xad4   : > { %4357 = vmatpush1.bf16.msra.mxu0 %v5461_v36 }
 0xad5   : > { %4358 = vmatprep.subr.bf16.mxu0 %v6800_v5 }
 0xad8   : > { %4360 = vmatpush1.bf16.msra.mxu0 %v5468_v30 }
 0xad9   : > { %4361 = vmatprep.subr.bf16.mxu0 %v6800_v5 }
 0xb7e   : > { %v5900_v24 = vpop.f32.mrb[20].mxu0 }
 0xb7f   : > { %v5902_v26 = vpop.f32.mrb[21].mxu0  ;;  %v1756_v32 = vmul.f32 %v5900_v24, %v5272_v38  ;;  %v1765_v15 = vmul.f32 %v5900_v24, %v5292_v48  ;;  %v1759_v49 = vmul.f32 %v5900_v24, %v5280_v42  ;;  %v1768_v60 = vmul.f32 %v5900_v24, %v5302_v52 }
 0xb80   : > { %v4100_v37 = vpop.f32.mrb[22].mxu0  ;;  %v1757_v20 = vmul.f32 %v5902_v26, %v5276_v40  ;;  %v1754_v33 = vmul.f32 %v5902_v26, %v6837_v51  ;;  %v1769_v47 = vmul.f32 %v5902_v26, %v6838_v34  ;;  %v1760_v25 = vmul.f32 %v5902_v26, %v6839_v39  ;;  %v6845_v39 = vld [vmem:[#allocation7_spill] sm:$0xff] }
 0xb81   : > { %v5920_v59 = vpop.f32.mrb[23].mxu0  ;;  %v5924_v58 = vmul.f32 %v5902_v26, %v5495_v57  ;;  %v5928_v14 = vmul.f32 %v5900_v24, %v6840_v10  ;;  %v5932_v55 = vmul.f32 %v5902_v26, %v6841_v62  ;;  %v5936_v18 = vmul.f32 %v5900_v24, %v5512_v45  ;;  %v6844_v57 = vld [vmem:[#allocation5_spill] sm:$0xff] }
 0xb82   : > { %v4655_v17 = vpack.i.bf16 %v1757_v20, %v1756_v32  ;;  %v1755_v11 = vmul.f32 %v5920_v59, %v6842_v31  ;;  %v1764_v37 = vmul.f32 %v5920_v59, %v6843_v44  ;;  %v1758_v34 = vmul.f32 %v5920_v59, %v6844_v57  ;;  %v6846_v62 = vld [vmem:[#allocation17_spill] sm:$0xff] }
 0xb83   : > { %v4685_v52 = vpack.i.bf16 %v1769_v47, %v1768_v60  ;;  %v1761_v51 = vmul.f32 %v5920_v59, %v6845_v39  ;;  %v1773_v40 = vmul.f32 %v5920_v59, %v6846_v62  ;;  %v4670_v45 = vpack.i.bf16 %v5932_v55, %v5928_v14  ;;  %v6847_v47 = vld [vmem:[#allocation12_spill] sm:$0xff]  ;;  %v6848_v57 = vld [vmem:[#allocation13_spill] sm:$0xff] }
 0xb84   : > { %4656 = vrot.lane.b32.xlu0 %v4655_v17, %s5038_s21  ;;  %v4650_v32 = vpack.i.bf16 %v1755_v11, %v1754_v33  ;;  %v4675_v20 = vpack.i.bf16 %v1765_v15, %v1764_v37  ;;  %v4660_v31 = vpack.i.bf16 %v1759_v49, %v1758_v34  ;;  %v1776_v44 = vmul.f32 %v5920_v59, %v5514_v41  ;;  %v6849_v33 = vld [vmem:[#allocation16_spill] sm:$0xff]  ;;  %v6850_v34 = vld [vmem:[#allocation19_spill] sm:$0xff] }
 0xb85   : > { %v4665_v48 = vpack.i.bf16 %v1761_v51, %v1760_v25  ;;  %v4695_v60 = vpack.i.bf16 %v1773_v40, %v5924_v58  ;;  %v1766_v39 = vmul.f32 %v5902_v26, %v6847_v47  ;;  %v1767_v62 = vmul.f32 %v5920_v59, %v6848_v57  ;;  %v6851_v17 = vld [vmem:[#allocation20_spill] sm:$0xff] }
 0xb86   : > { %4651 = vrot.lane.b32.xlu1 %v4650_v32, %s5038_s21  ;;  %v4705_v14 = vpack.i.bf16 %v5936_v18, %v1776_v44  ;;  %v1778_v15 = vmul.f32 %v5902_v26, %v5595_v43  ;;  %v1779_v49 = vmul.f32 %v5920_v59, %v5597_v61  ;;  %v1770_v51 = vmul.f32 %v5920_v59, %v6849_v33  ;;  %v6852_v44 = vld [vmem:[#allocation22_spill] sm:$0xff] }
 0xb87   : > { %v4680_v40 = vpack.i.bf16 %v1767_v62, %v1766_v39  ;;  %v1771_v25 = vmul.f32 %v5900_v24, %v6850_v34  ;;  %v1780_v58 = vmul.f32 %v5900_v24, %v5599_v2  ;;  %v1781_v55 = vmul.f32 %v5902_v26, %v5608_v9 }
 0xb88   : > { %4676 = vrot.lane.b32.xlu0 %v4675_v20, %s5038_s21  ;;  %v4710_v18 = vpack.i.bf16 %v1779_v49, %v1778_v15  ;;  %v1774_v11 = vmul.f32 %v5900_v24, %v6851_v17  ;;  %v1775_v37 = vmul.f32 %v5902_v26, %v6852_v44  ;;  %v1782_v39 = vmul.f32 %v5920_v59, %v5610_v8 }
 0xb89   : > { %v4690_v62 = vpack.i.bf16 %v1771_v25, %v1770_v51  ;;  %v4715_v32 = vpack.i.bf16 %v1781_v55, %v1780_v58  ;;  %v1783_v2 = vmul.f32 %v5900_v24, %v5616_v13  ;;  %v1786_v9 = vmul.f32 %v5900_v24, %v5629_v19 }
 0xb8a   : > { %4661 = vrot.lane.b32.xlu1 %v4660_v31, %s5038_s21  ;;  %v4700_v20 = vpack.i.bf16 %v1775_v37, %v1774_v11  ;;  %v1787_v15 = vmul.f32 %v5902_v26, %v5643_v22  ;;  %v5988_v49 = vmul.f32 %v5902_v26, %v5618_v12  ;;  %v5992_v51 = vmul.f32 %v5920_v59, %v5627_v16  ;;  %v6854_v16 = vld [vmem:[#allocation37_spill] sm:$0xff]  ;;  %v6858_v12 = vld [vmem:[#allocation39_spill] sm:$0xff] }
 0xb8b   : > { %v4720_v25 = vpack.i.bf16 %v1783_v2, %v1782_v39  ;;  %v5996_v58 = vmul.f32 %v5920_v59, %v5645_v23  ;;  %v6000_v31 = vmul.f32 %v5900_v24, %v5654_v1  ;;  %v6004_v55 = vmul.f32 %v5902_v26, %v5656_v4  ;;  %v6853_v39 = vld [vmem:[#allocation36_spill] sm:$0xff]  ;;  %v6860_v23 = vld [vmem:[#allocation41_spill] sm:$0xff] }
 0xb8c   : > { %4686 = vrot.lane.b32.xlu0 %v4685_v52, %s5038_s21  ;;  %v4730_v11 = vpack.i.bf16 %v1787_v15, %v1786_v9  ;;  %v6011_v2 = vmul.f32 %v5920_v59, %v5666_v46  ;;  %v6015_v22 = vmul.f32 %v5900_v24, %v6853_v39  ;;  %v6021_v4 = vmul.f32 %v5902_v26, %v6854_v16  ;;  %v6855_v52 = vld [vmem:[#allocation42_spill] sm:$0xff]  ;;  %v6856_v15 = vld [vmem:[#allocation43_spill] sm:$0xff]  ;;  %v6859_v1 = vld [vmem:[#allocation40_spill] sm:$0xff] }
 0xb8d   : > { %v6025_v9 = vmul.f32 %v5900_v24, %v6855_v52  ;;  %v6029_v37 = vmul.f32 %v5902_v26, %v6856_v15  ;;  %v6857_v46 = vld [vmem:[#allocation38_spill] sm:$0xff]  ;;  %v6040_v16 = vmul.f32 %v5900_v24, %v6858_v12  ;;  %v6044_v52 = vmul.f32 %v5902_v26, %v6859_v1  ;;  %v6862_v12 = vld [vmem:[#allocation45_spill] sm:$0xff] }
 0xb8e   : > { %4666 = vrot.lane.b32.xlu1 %v4665_v48, %s5038_s21  ;;  %v6036_v19 = vmul.f32 %v5920_v59, %v6857_v46  ;;  %v6052_v39 = vmul.f32 %v5920_v59, %v6860_v23  ;;  %v6861_v46 = vld [vmem:[#allocation44_spill] sm:$0xff]  ;;  %v6063_v8 = vmul.f32 %v5900_v24, %v6862_v12 }
 0xb8f   : > { %v6056_v13 = vmul.f32 %v5920_v59, %v6861_v46 }
 0xb90   : > { %4696 = vrot.lane.b32.xlu0 %v4695_v60, %s5038_s21 }
 0xb92   : > { %4671 = vrot.lane.b32.xlu1 %v4670_v45, %s5038_s21 }
 0xb94   : > { %4706 = vrot.lane.b32.xlu0 %v4705_v14, %s5038_s21 }
 0xb96   : > { %4681 = vrot.lane.b32.xlu1 %v4680_v40, %s5038_s21 }
 0xb98   : > { %4711 = vrot.lane.b32.xlu0 %v4710_v18, %s5039_s18 }
 0xb9a   : > { %4691 = vrot.lane.b32.xlu1 %v4690_v62, %s5038_s21 }
 0xb9c   : > { %4716 = vrot.lane.b32.xlu0 %v4715_v32, %s5039_s18 }
 0xb9e   : > { %4701 = vrot.lane.b32.xlu1 %v4700_v20, %s5038_s21 }
 0xba0   : > { %4721 = vrot.lane.b32.xlu0 %v4720_v25, %s5039_s18 }
 0xba4   : > { %4731 = vrot.lane.b32.xlu0 %v4730_v11, %s5039_s18 }
 0xbf6   : > { %v4657_v1 = vpop.permute.xlu0 %4656 }
 0xbf7   : > { %v4659_v40 = vunpack.i.h.bf16 %v4657_v1  ;;  %v4658_v18 = vunpack.i.l.bf16 %v4657_v1 }
 0xbf8   : > { %v4652_v45 = vpop.permute.xlu1 %4651 }
 0xbf9   : > { %v4654_v60 = vunpack.i.h.bf16 %v4652_v45  ;;  %v4653_v48 = vunpack.i.l.bf16 %v4652_v45  ;;  %v4282_v62 = vpack.c.bf16 %v4659_v40, %v4658_v18 }
 0xbfb   : > { %v4278_v15 = vpack.c.bf16 %v4654_v60, %v4653_v48 }
 0xbfc   : > { %v4662_v32 = vpop.permute.xlu1 %4661 }
 0xbfd   : > { %4280 = vmatpush1.bf16.xpose.msk.msra.mxu1 %vm5480_vm2, %v4278_v15  ;;  %v4664_v20 = vunpack.i.h.bf16 %v4662_v32  ;;  %v4663_v25 = vunpack.i.l.bf16 %v4662_v32  ;;  %v4677_v32 = vpop.permute.xlu0 %4676 }
 0xbfe   : > { %4281 = vmatprep.subr.bf16.mxu1 %v6800_v5 }
 0xbff   : > { %v4286_v11 = vpack.c.bf16 %v4664_v20, %v4663_v25  ;;  %v4679_v20 = vunpack.i.h.bf16 %v4677_v32  ;;  %v4678_v25 = vunpack.i.l.bf16 %v4677_v32 }
 0xc00   : > { %v4667_v45 = vpop.permute.xlu1 %4666 }
 0xc01   : > { %v4669_v15 = vunpack.i.h.bf16 %v4667_v45  ;;  %v4668_v48 = vunpack.i.l.bf16 %v4667_v45 }
 0xc03   : > { %v4290_v60 = vpack.c.bf16 %v4669_v15, %v4668_v48 }
 0xc04   : > { %v4672_v1 = vpop.permute.xlu1 %4671 }
 0xc05   : > { %4284 = vmatpush1.bf16.xpose.msk.msra.mxu1 %vm5480_vm2, %v4282_v62  ;;  %v4674_v40 = vunpack.i.h.bf16 %v4672_v1  ;;  %v4673_v18 = vunpack.i.l.bf16 %v4672_v1  ;;  %v4687_v1 = vpop.permute.xlu0 %4686 }
 0xc06   : > { %4285 = vmatprep.subr.bf16.mxu1 %v6800_v5 }
 0xc07   : > { %v4294_v62 = vpack.c.bf16 %v4674_v40, %v4673_v18  ;;  %v4689_v40 = vunpack.i.h.bf16 %v4687_v1  ;;  %v4688_v18 = vunpack.i.l.bf16 %v4687_v1 }
 0xc08   : > { %v4682_v45 = vpop.permute.xlu1 %4681 }
 0xc09   : > { %v4684_v15 = vunpack.i.h.bf16 %v4682_v45  ;;  %v4683_v48 = vunpack.i.l.bf16 %v4682_v45  ;;  %v4697_v45 = vpop.permute.xlu0 %4696 }
 0xc0c   : > { %v4692_v32 = vpop.permute.xlu1 %4691 }
 0xc0d   : > { %4288 = vmatpush1.bf16.xpose.msk.msra.mxu1 %vm5480_vm2, %v4286_v11  ;;  %v4298_v11 = vpack.c.bf16 %v4679_v20, %v4678_v25  ;;  %v4694_v20 = vunpack.i.h.bf16 %v4692_v32  ;;  %v4693_v25 = vunpack.i.l.bf16 %v4692_v32  ;;  %v4707_v32 = vpop.permute.xlu0 %4706 }
 0xc0e   : > { %4289 = vmatprep.subr.bf16.mxu1 %v6800_v5 }
 0xc10   : > { %v4702_v1 = vpop.permute.xlu1 %4701 }
 0xc15   : > { %4292 = vmatpush1.bf16.xpose.msk.msra.mxu1 %vm5480_vm2, %v4290_v60  ;;  %v4302_v60 = vpack.c.bf16 %v4684_v15, %v4683_v48  ;;  %v4699_v15 = vunpack.i.h.bf16 %v4697_v45  ;;  %v4698_v48 = vunpack.i.l.bf16 %v4697_v45 }
 0xc16   : > { %4293 = vmatprep.subr.bf16.mxu1 %v6800_v5 }
 0xc1d   : > { %4296 = vmatpush1.bf16.xpose.msk.msra.mxu1 %vm5480_vm2, %v4294_v62  ;;  %v4306_v62 = vpack.c.bf16 %v4689_v40, %v4688_v18  ;;  %v4704_v40 = vunpack.i.h.bf16 %v4702_v1  ;;  %v4703_v18 = vunpack.i.l.bf16 %v4702_v1  ;;  %v6865_v1 = vld [vmem:[#allocation47_spill] sm:$0xff] }
 0xc1e   : > { %4297 = vmatprep.subr.bf16.mxu1 %v6800_v5 }
 0xc25   : > { %4300 = vmatpush1.bf16.xpose.msk.msra.mxu1 %vm5480_vm2, %v4298_v11  ;;  %v4310_v11 = vpack.c.bf16 %v4694_v20, %v4693_v25  ;;  %v4709_v20 = vunpack.i.h.bf16 %v4707_v32  ;;  %v4708_v25 = vunpack.i.l.bf16 %v4707_v32 }
 0xc26   : > { %4301 = vmatprep.subr.bf16.mxu1 %v6800_v5 }
 0xc2d   : > { %4304 = vmatpush1.bf16.xpose.msk.msra.mxu1 %vm5480_vm2, %v4302_v60  ;;  %v4314_v60 = vpack.c.bf16 %v4699_v15, %v4698_v48  ;;  %v6864_v48 = vld [vmem:[#allocation46_spill] sm:$0xff] }
 0xc2e   : > { %4305 = vmatprep.subr.bf16.mxu1 %v6800_v5 }
 0xc35   : > { %4308 = vmatpush1.bf16.xpose.msk.msra.mxu1 %vm5480_vm2, %v4306_v62  ;;  %v4318_v62 = vpack.c.bf16 %v4704_v40, %v4703_v18 }
 0xc36   : > { %4309 = vmatprep.subr.bf16.mxu1 %v6800_v5 }
 0xc3d   : > { %4312 = vmatpush1.bf16.xpose.msk.msra.mxu1 %vm5480_vm2, %v4310_v11  ;;  %v4322_v11 = vpack.c.bf16 %v4709_v20, %v4708_v25 }
 0xc3e   : > { %4313 = vmatprep.subr.bf16.mxu1 %v6800_v5 }
 0xc45   : > { %4316 = vmatpush1.bf16.xpose.msk.msra.mxu1 %vm5480_vm2, %v4314_v60 }
 0xc46   : > { %4317 = vmatprep.subr.bf16.mxu1 %v6800_v5 }
 0xc4d   : > { %4320 = vmatpush1.bf16.xpose.msk.msra.mxu1 %vm5480_vm2, %v4318_v62 }
 0xc4e   : > { %4321 = vmatprep.subr.bf16.mxu1 %v6800_v5 }
 0xc55   : > { %4324 = vmatpush1.bf16.xpose.msk.msra.mxu1 %vm5480_vm2, %v4322_v11 }
 0xc5c   : > { %3867 = vmatmul.mubr.msk.f32.vlgmr.msra.gmra.mrb[10].mxu1 %vm511_vm1, %v5902_v26 }
 0xc5d   : > { %2001 = vmatprep.mubr.f32.mxu1 %v6836_v53 }
 0xc60   : > { %3868 = vmatmul.mubr.msk.f32.gmra.mrb[20].mxu1 %vm511_vm1, %v5920_v59 }
 0xc61   : > { %2007 = vmatprep.mubr.f32.mxu1 %v6836_v53 }
 0xc64   : > { %3869 = vmatmul.mubr.msk.f32.gmra.mrb[22].mxu1 %vm511_vm1, %v5900_v24 }
 0xd2f   : > { %v1997_v45 = vpop.f32.mrb[10].mxu1 }
 0xd30   : > { %v1999_v15 = vpop.f32.mrb[11].mxu1  ;;  %v1998_v40 = vadd.f32 %v1997_v45, %v6865_v1 }
 0xd31   : > { %v2000_v60 = vadd.f32 %v1999_v15, %v6864_v48 }
 0xd33   : > { %v2014_v18 = vsel %vm407_vm0, %v2000_v60, -inf  ;;  %v2003_v62 = vpop.f32.mrb[20].mxu1 }
 0xd34   : > { %v2015_v26 = vmax.f32 %v1998_v40, %v2014_v18  ;;  %v2005_v32 = vpop.f32.mrb[21].mxu1  ;;  %v2004_v59 = vadd.f32 %v2003_v62, %v6865_v1  ;;  %v6866_v18 = vpack.i.bf16 %v5992_v51, %v5988_v49  ;;  %v6867_v62 = vpack.i.bf16 %v6000_v31, %v5996_v58 }
 0xd35   : > { %v2006_v20 = vadd.f32 %v2005_v32, %v6864_v48  ;;  %v6871_v49 = vpack.i.bf16 %v6040_v16, %v6036_v19  ;;  %v6872_v51 = vpack.i.bf16 %v6052_v39, %v6044_v52 }
 0xd36   : > { %2016 = vmax.xlane.f32.xlu1 %v2015_v26  ;;  %v6868_v26 = vpack.i.bf16 %v6011_v2, %v6004_v55 }
 0xd37   : > { %v2009_v25 = vpop.f32.mrb[22].mxu1  ;;  %v2018_v11 = vsel %vm407_vm0, %v2006_v20, -inf }
 0xd38   : > { %v2011_v24 = vpop.f32.mrb[23].mxu1  ;;  %v2019_v14 = vmax.f32 %v2004_v59, %v2018_v11  ;;  %v2010_v15 = vadd.f32 %v2009_v25, %v6865_v1 }
 0xd39   : > { %v2012_v12 = vadd.f32 %v2011_v24, %v6864_v48 }
 0xd3a   : > { %2020 = vmax.xlane.f32.xlu0 %v2019_v14  ;;  %v6869_v14 = vpack.i.bf16 %v6021_v4, %v6015_v22  ;;  %v6873_v22 = vpack.i.bf16 %v6063_v8, %v6056_v13  ;;  %v4712_v4 = vpop.permute.xlu0 %4711 }
 0xd3b   : > { %v2022_v45 = vsel %vm407_vm0, %v2012_v12, -inf }
 0xd3c   : > { %v2023_v46 = vmax.f32 %v2010_v15, %v2022_v45 }
 0xd3e   : > { %2024 = vmax.xlane.f32.xlu0 %v2023_v46  ;;  %v6870_v46 = vpack.i.bf16 %v6029_v37, %v6025_v9  ;;  %v4717_v58 = vpop.permute.xlu0 %4716 }
 0xd42   : > { %v4722_v31 = vpop.permute.xlu0 %4721 }
 0xd46   : > { %v4732_v55 = vpop.permute.xlu0 %4731 }
 0xd47   : > { %4726 = vrot.lane.b32.xlu1 %v6866_v18, %s5039_s18 }
 0xd4b   : > { %4736 = vrot.lane.b32.xlu1 %v6867_v62, %s5039_s18  ;;  %v4714_v62 = vunpack.i.h.bf16 %v4712_v4 }
 0xd4f   : > { %4741 = vrot.lane.b32.xlu1 %v6868_v26, %s5039_s18  ;;  %v4713_v26 = vunpack.i.l.bf16 %v4712_v4 }
 0xd53   : > { %4746 = vrot.lane.b32.xlu1 %v6869_v14, %s5039_s18 }
 0xd54   : > { %4761 = vrot.lane.b32.xlu0 %v6870_v46, %s5039_s18  ;;  %v4718_v46 = vunpack.i.l.bf16 %v4717_v58 }
 0xd57   : > { %4751 = vrot.lane.b32.xlu1 %v6871_v49, %s5039_s18 }
 0xd5b   : > { %4756 = vrot.lane.b32.xlu1 %v6872_v51, %s5039_s18  ;;  %v4724_v51 = vunpack.i.h.bf16 %v4722_v31 }
 0xd5f   : > { %4766 = vrot.lane.b32.xlu1 %v6873_v22, %s5039_s18  ;;  %v4723_v22 = vunpack.i.l.bf16 %v4722_v31 }
 0xdc3   : > { %v2017_v37 = vpop.xlane.xlu1 %2016 }
 0xdc4   : > { %v2026_v2 = vsub.f32 %v1998_v40, %v2017_v37  ;;  %v2027_v9 = vsub.f32 %v2000_v60, %v2017_v37 }
 0xdc6   : > { %v2032_v32 = vmul.f32 1.442695, %v2026_v2  ;;  %v2034_v16 = vmul.f32 1.442695, %v2027_v9  ;;  %v4368_v2 = vpack.c.bf16 %v4724_v51, %v4723_v22 }
 0xdc7   : > { %v2021_v19 = vpop.xlane.xlu0 %2020  ;;  %v4727_v14 = vpop.permute.xlu1 %4726 }
 0xdc8   : > { %4956 = vpow2.f32 %v2032_v32  ;;  %v2028_v25 = vsub.f32 %v2004_v59, %v2021_v19  ;;  %v2029_v11 = vsub.f32 %v2006_v20, %v2021_v19  ;;  %v4362_v59 = vpack.c.bf16 %v4714_v62, %v4713_v26 }
 0xdc9   : > { %4958 = vpow2.f32 %v2034_v16  ;;  %v4719_v20 = vunpack.i.h.bf16 %v4717_v58  ;;  %v4729_v9 = vunpack.i.h.bf16 %v4727_v14  ;;  %v4728_v32 = vunpack.i.l.bf16 %v4727_v14 }
 0xdca   : > { %v2036_v39 = vmul.f32 1.442695, %v2028_v25  ;;  %v2038_v52 = vmul.f32 1.442695, %v2029_v11  ;;  %v4734_v16 = vunpack.i.h.bf16 %v4732_v55  ;;  %v4733_v19 = vunpack.i.l.bf16 %v4732_v55 }
 0xdcb   : > { %v2025_v24 = vpop.xlane.xlu0 %2024  ;;  %v4365_v49 = vpack.c.bf16 %v4719_v20, %v4718_v46  ;;  %v4737_v4 = vpop.permute.xlu1 %4736  ;;  %v4371_v25 = vpack.c.bf16 %v4729_v9, %v4728_v32 }
 0xdcc   : > { %4960 = vpow2.f32 %v2036_v39  ;;  %v2030_v8 = vsub.f32 %v2010_v15, %v2025_v24  ;;  %v2031_v13 = vsub.f32 %v2012_v12, %v2025_v24  ;;  %v4374_v11 = vpack.c.bf16 %v4734_v16, %v4733_v19 }
 0xdcd   : > { %4962 = vpow2.f32 %v2038_v52  ;;  %v4739_v39 = vunpack.i.h.bf16 %v4737_v4  ;;  %v4738_v52 = vunpack.i.l.bf16 %v4737_v4 }
 0xdce   : > { %v2040_v45 = vmul.f32 1.442695, %v2030_v8  ;;  %v2042_v18 = vmul.f32 1.442695, %v2031_v13 }
 0xdcf   : > { %v4742_v31 = vpop.permute.xlu1 %4741  ;;  %v4377_v8 = vpack.c.bf16 %v4739_v39, %v4738_v52  ;;  %v4762_v22 = vpop.permute.xlu0 %4761  ;;  %v4907_v39 = vld [vmem:[%s6701_s6 + $0x18] sm:$0xff]  }
 0xdd0   : > { %4964 = vpow2.f32 %v2040_v45  ;;  %v4744_v13 = vunpack.i.h.bf16 %v4742_v31  ;;  %v4743_v45 = vunpack.i.l.bf16 %v4742_v31  ;;  %v4764_v4 = vunpack.i.h.bf16 %v4762_v22 }
 0xdd1   : > { %4966 = vpow2.f32 %v2042_v18 }
 0xdd2   : > { %v6162_v60 = vpop.eup %4956  ;;  %v4380_v62 = vpack.c.bf16 %v4744_v13, %v4743_v45 }
 0xdd3   : > { %v4959_v40 = vpop.eup %4958  ;;  %v4747_v24 = vpop.permute.xlu1 %4746 }
 0xdd4   : > { %3870 = vmatprep.mubr.msk.f32.mxu0 %vm407_vm0, %v4959_v40  ;;  %v4749_v55 = vunpack.i.h.bf16 %v4747_v24  ;;  %v4748_v26 = vunpack.i.l.bf16 %v4747_v24 }
 0xdd5   : > { %2118 = vmatmul.mubr.f32.vlgmr.msra.gmra.mrb[24].mxu0 %v6162_v60 }
 0xdd6   : > { %v6166_v15 = vpop.eup %4960  ;;  %4363 = vmatpush1.bf16.msra.mxu0 %v4362_v59 }
 0xdd7   : > { %v6168_v12 = vpop.eup %4962  ;;  %4364 = vmatprep.subr.bf16.mxu0 %v6800_v5  ;;  %v4752_v18 = vpop.permute.xlu1 %4751 }
 0xdd8   : > { %3871 = vmatprep.mubr.msk.f32.mxu0 %vm407_vm0, %v6168_v12  ;;  %v4754_v14 = vunpack.i.h.bf16 %v4752_v18  ;;  %v4753_v59 = vunpack.i.l.bf16 %v4752_v18 }
 0xdd9   : > { %2123 = vmatmul.mubr.f32.gmra.mrb[26].mxu0 %v6166_v15 }
 0xdda   : > { %v6174_v58 = vpop.eup %4964  ;;  %4366 = vmatpush1.bf16.msra.mxu0 %v4365_v49  ;;  %v4386_v46 = vpack.c.bf16 %v4754_v14, %v4753_v59 }
 0xddb   : > { %v4967_v37 = vpop.eup %4966  ;;  %4367 = vmatprep.subr.bf16.mxu0 %v6800_v5  ;;  %v4757_v20 = vpop.permute.xlu1 %4756 }
 0xddc   : > { %3872 = vmatprep.mubr.msk.f32.mxu0 %vm407_vm0, %v4967_v37  ;;  %v4759_v49 = vunpack.i.h.bf16 %v4757_v20  ;;  %v4758_v51 = vunpack.i.l.bf16 %v4757_v20 }
 0xddd   : > { %2128 = vmatmul.mubr.f32.gmra.mrb[28].mxu0 %v6174_v58 }
 0xdde   : > { %4369 = vmatpush1.bf16.msra.mxu0 %v4368_v2  ;;  %3873 = vmatprep.mubr.msk.f32.mxu0 %vm407_vm0, %v4959_v40  ;;  %v4383_v40 = vpack.c.bf16 %v4749_v55, %v4748_v26  ;;  %v4763_v2 = vunpack.i.l.bf16 %v4762_v22  ;;  %v4389_v9 = vpack.c.bf16 %v4759_v49, %v4758_v51  ;;  %v3881_v51 = vld [vmem:[%s6704_s9 + $0x8] ss:$0 sm:$0xff] }
 0xddf   : > { %4370 = vmatprep.subr.bf16.mxu0 %v6800_v5  ;;  %v4767_v32 = vpop.permute.xlu1 %4766 }
 0xde0   : > { %v4392_v31 = vpack.c.bf16 %v4764_v4, %v4763_v2  ;;  %v4769_v16 = vunpack.i.h.bf16 %v4767_v32  ;;  %v4768_v19 = vunpack.i.l.bf16 %v4767_v32 }
 0xde2   : > { %4372 = vmatpush1.bf16.msra.mxu0 %v4371_v25  ;;  %v4395_v25 = vpack.c.bf16 %v4769_v16, %v4768_v19 }
 0xde3   : > { %4373 = vmatprep.subr.bf16.mxu0 %v6800_v5 }
 0xde6   : > { %4375 = vmatpush1.bf16.msra.mxu0 %v4374_v11  ;;  %v4906_v11 = vld [vmem:[%s6701_s6 + $0x10] sm:$0xff]  }
 0xde7   : > { %4376 = vmatprep.subr.bf16.mxu0 %v6800_v5  ;;  %4101 = vmatprep.subr.bf16.mxu1 %v4906_v11 }
 0xde8   : > { %4102 = vmatpush3.bf16.msra.mxu1 %v4906_v11 }
 0xde9   : > { %4103 = vmatprep.subr.bf16.mxu1 %v4907_v39 }
 0xdea   : > { %4378 = vmatpush1.bf16.msra.mxu0 %v4377_v8 }
 0xdeb   : > { %4379 = vmatprep.subr.bf16.mxu0 %v6800_v5 }
 0xdec   : > { %4104 = vmatpush3.bf16.msra.mxu1 %v4907_v39 }
 0xdee   : > { %4381 = vmatpush1.bf16.msra.mxu0 %v4380_v62 }
 0xdef   : > { %4382 = vmatprep.subr.bf16.mxu0 %v6800_v5 }
 0xdf2   : > { %4384 = vmatpush1.bf16.msra.mxu0 %v4383_v40 }
 0xdf3   : > { %4385 = vmatprep.subr.bf16.mxu0 %v6800_v5 }
 0xdf6   : > { %4387 = vmatpush1.bf16.msra.mxu0 %v4386_v46 }
 0xdf7   : > { %4388 = vmatprep.subr.bf16.mxu0 %v6800_v5 }
 0xdfa   : > { %4390 = vmatpush1.bf16.msra.mxu0 %v4389_v9 }
 0xdfb   : > { %4391 = vmatprep.subr.bf16.mxu0 %v6800_v5 }
 0xdfe   : > { %4393 = vmatpush1.bf16.msra.mxu0 %v4392_v31 }
 0xdff   : > { %4394 = vmatprep.subr.bf16.mxu0 %v6800_v5 }
 0xe02   : > { %4396 = vmatpush1.bf16.msra.mxu0 %v4395_v25 }
 0xe05   : > { %2294 = vmatmul.mubr.f32.vlgmr.msra.gmra.mrb[30].mxu0 %v6162_v60 }
 0xe06   : > { %3874 = vmatprep.mubr.msk.f32.mxu0 %vm407_vm0, %v6168_v12 }
 0xe09   : > { %2299 = vmatmul.mubr.f32.gmra.mrb[32].mxu0 %v6166_v15 }
 0xe0a   : > { %3875 = vmatprep.mubr.msk.f32.mxu0 %vm407_vm0, %v4967_v37 }
 0xe0d   : > { %2304 = vmatmul.mubr.f32.gmra.mrb[34].mxu0 %v6174_v58 }
 0xea8   : > { %v2119_v60 = vpop.f32.mrb[24].mxu0 }
 0xea9   : > { %v2121_v12 = vpop.f32.mrb[25].mxu0  ;;  %4968 = vrcp.f32 %v2119_v60 }
 0xeac   : > { %v2124_v52 = vpop.f32.mrb[26].mxu0 }
 0xead   : > { %v2126_v15 = vpop.f32.mrb[27].mxu0  ;;  %4970 = vrcp.f32 %v2124_v52 }
 0xeb0   : > { %v2129_v24 = vpop.f32.mrb[28].mxu0 }
 0xeb1   : > { %v2131_v37 = vpop.f32.mrb[29].mxu0  ;;  %4972 = vrcp.f32 %v2129_v24 }
 0xeb3   : > { %v4969_v58 = vpop.eup %4968 }
 0xeb7   : > { %v4971_v18 = vpop.eup %4970 }
 0xebb   : > { %v4973_v14 = vpop.eup %4972 }
 0xed8   : > { %v2295_v8 = vpop.f32.mrb[30].mxu0 }
 0xed9   : > { %v2312_v13 = vmul.f32 %v4969_v58, %v2295_v8  ;;  %v2297_v45 = vpop.f32.mrb[31].mxu0 }
 0xedc   : > { %v2300_v62 = vpop.f32.mrb[32].mxu0 }
 0xedd   : > { %v2313_v55 = vmul.f32 %v4971_v18, %v2300_v62  ;;  %v2302_v26 = vpop.f32.mrb[33].mxu0 }
 0xedf   : > { %v2315_v40 = vpack.c.bf16 %v2313_v55, %v2312_v13 }
 0xee0   : > { %v2305_v59 = vpop.f32.mrb[34].mxu0 }
 0xee1   : > { %v2314_v20 = vmul.f32 %v4973_v14, %v2305_v59  ;;  %v2307_v46 = vpop.f32.mrb[35].mxu0  ;;  %4105 = vmatprep.mubr.msk.bf16.mxu1 %vm511_vm1, %v2315_v40  ;;  %v4908_v40 = vld [vmem:[%s6702_s7 + $0x10] sm:$0xff]   ;;  %v4909_v14 = vld [vmem:[%s6702_s7 + $0x18] sm:$0xff]  }
 0xee2   : > { %4109 = vmatprep.subr.bf16.mxu0 %v4908_v40 }
 0xee3   : > { %v2316_v49 = vpack.c.bf16 %v2314_v20, %v2314_v20  ;;  %4110 = vmatpush3.bf16.msra.mxu0 %v4908_v40 }
 0xee4   : > { %4111 = vmatprep.subr.bf16.mxu0 %v4909_v14 }
 0xee5   : > { %4106 = vmatmul.mubr.msk.bf16.vlgmr.msra.gmra.mrb[24].mxu1 %vm511_vm1, %v2316_v49 }
 0xee7   : > { %4112 = vmatpush3.bf16.msra.mxu0 %v4909_v14 }
 0xfb8   : > { %v4107_v22 = vpop.f32.mrb[24].mxu1 }
 0xfb9   : > { %v2380_v4 = vpop.f32.mrb[25].mxu1  ;;  %v2389_v31 = vadd.f32 %v4107_v22, %v3881_v51 }
 0xfba   : > { %v2381_v2 = vadd.f32 %v3881_v51, %v2380_v4  ;;  %v4108_v9 = vpop.f32.mrb[26].mxu1 }
 0xfbb   : > { %v2383_v32 = vpop.f32.mrb[27].mxu1  ;;  %v2402_v11 = vsel %vm511_vm1, %v2389_v31, 0.0 }
 0xfbc   : > { %v2384_v16 = vadd.f32 %v3881_v51, %v2383_v32  ;;  %v2396_v19 = vsel %vm511_vm1, %v2381_v2, 0.0 }
 0xfbd   : > { %2397 = vadd.xlane.f32.xlu0 %v2396_v19 }
 0xfbe   : > { %v2399_v25 = vsel %vm511_vm1, %v2384_v16, 0.0 }
 0xfbf   : > { %2400 = vadd.xlane.f32.xlu1 %v2399_v25 }
 0xfc1   : > { %2403 = vadd.xlane.f32.xlu0 %v2402_v11 }
0x104a   : > { %v2398_v39 = vpop.xlane.xlu0 %2397 }
0x104b   : > { %v2405_v60 = vmul.f32 0.03125, %v2398_v39 }
0x104c   : > { %v2401_v12 = vpop.xlane.xlu1 %2400 }
0x104d   : > { %v2408_v52 = vsub.f32 %v2381_v2, %v2405_v60  ;;  %v2406_v15 = vmul.f32 0.03125, %v2401_v12  ;;  %v3889_v60 = vld [vmem:[%s6704_s9 + $0xa] ss:$0 sm:$0xff] }
0x104e   : > { %v2404_v24 = vpop.xlane.xlu0 %2403 }
0x104f   : > { %v2409_v37 = vsub.f32 %v2384_v16, %v2406_v15  ;;  %v2407_v58 = vmul.f32 0.03125, %v2404_v24  ;;  %v2411_v8 = vmul.f32 %v2408_v52, %v2408_v52  ;;  %v3888_v16 = vld [vmem:[%s6704_s9 + $0x9] ss:$0 sm:$0xff] }
0x1051   : > { %v2410_v13 = vsub.f32 %v2389_v31, %v2407_v58  ;;  %v2414_v45 = vsel %vm511_vm1, %v2411_v8, 0.0  ;;  %v2412_v18 = vmul.f32 %v2409_v37, %v2409_v37 }
0x1052   : > { %2415 = vadd.xlane.f32.xlu0 %v2414_v45 }
0x1053   : > { %v2413_v62 = vmul.f32 %v2410_v13, %v2410_v13  ;;  %v2417_v55 = vsel %vm511_vm1, %v2412_v18, 0.0 }
0x1055   : > { %v2420_v26 = vsel %vm511_vm1, %v2413_v62, 0.0 }
0x1056   : > { %2418 = vadd.xlane.f32.xlu0 %v2417_v55  ;;  %2421 = vadd.xlane.f32.xlu1 %v2420_v26 }
0x10df   : > { %v2416_v59 = vpop.xlane.xlu0 %2415 }
0x10e0   : > { %v2423_v20 = vmul.f32 0.03125, %v2416_v59 }
0x10e2   : > { %v2426_v46 = vadd.f32 1e-05, %v2423_v20 }
0x10e3   : > { %v2422_v49 = vpop.xlane.xlu1 %2421  ;;  %v2419_v51 = vpop.xlane.xlu0 %2418 }
0x10e4   : > { %4974 = vrsqrt.f32 %v2426_v46  ;;  %v2425_v22 = vmul.f32 0.03125, %v2422_v49  ;;  %v2424_v4 = vmul.f32 0.03125, %v2419_v51 }
0x10e6   : > { %v2428_v2 = vadd.f32 1e-05, %v2425_v22  ;;  %v2427_v9 = vadd.f32 1e-05, %v2424_v4 }
0x10e8   : > { %4976 = vrsqrt.f32 %v2428_v2 }
0x10e9   : > { %4978 = vrsqrt.f32 %v2427_v9 }
0x10ee   : > { %v4975_v32 = vpop.eup %4974 }
0x10ef   : > { %v2432_v31 = vmul.f32 %v4975_v32, %v2408_v52 }
0x10f1   : > { %v2439_v25 = vmul.f32 %v3888_v16, %v2432_v31 }
0x10f2   : > { %v4977_v19 = vpop.eup %4976 }
0x10f3   : > { %v4979_v11 = vpop.eup %4978  ;;  %v2434_v39 = vmul.f32 %v4977_v19, %v2410_v13  ;;  %v2446_v58 = vadd.f32 %v3889_v60, %v2439_v25 }
0x10f4   : > { %v2433_v12 = vmul.f32 %v4979_v11, %v2409_v37 }
0x10f5   : > { %v2441_v15 = vmul.f32 %v3888_v16, %v2434_v39  ;;  %v6228_v18 = vadd.f32 %v2446_v58, %v5862_v28  ;;  %v4911_v28 = vld [vmem:[%s6703_s8 + $0x18] sm:$0xff]  }
0x10f6   : > { %v2440_v24 = vmul.f32 %v3888_v16, %v2433_v12 }
0x10f7   : > { %v2448_v8 = vadd.f32 %v3889_v60, %v2441_v15 }
0x10f8   : > { %v2447_v45 = vadd.f32 %v3889_v60, %v2440_v24 }
0x10f9   : > { %v6225_v52 = vadd.f32 %v2448_v8, %v5870_v21  ;;  %v4910_v21 = vld [vmem:[%s6703_s8 + $0x10] sm:$0xff]  }
0x10fa   : > { %v6231_v62 = vadd.f32 %v2447_v45, %v5865_v3  ;;  %4117 = vmatprep.subr.bf16.mxu1 %v4910_v21  ;;  %v3895_v3 = vld [vmem:[%s6704_s9 + $0xb] ss:$0 sm:$0xff] }
0x10fb   : > { %v2453_v13 = vpack.c.bf16 %v6225_v52, %v6225_v52  ;;  %4118 = vmatpush3.bf16.msra.mxu1 %v4910_v21 }
0x10fc   : > { %v2452_v37 = vpack.c.bf16 %v6231_v62, %v6228_v18  ;;  %4119 = vmatprep.subr.bf16.mxu1 %v4911_v28 }
0x10fe   : > { %4113 = vmatprep.mubr.msk.bf16.mxu0 %vm511_vm1, %v2452_v37 }
0x10ff   : > { %4114 = vmatmul.mubr.msk.bf16.vlgmr.msra.gmra.mrb[36].mxu0 %vm511_vm1, %v2453_v13  ;;  %4120 = vmatpush3.bf16.msra.mxu1 %v4911_v28 }
0x1100   : > { %4397 = vmatprep.subr.bf16.mxu1 %v6800_v5 }
0x11d2   : > { %v4115_v55 = vpop.f32.mrb[36].mxu0 }
0x11d3   : > { %v2525_v26 = vadd.f32 %v4115_v55, %v3895_v3  ;;  %v2516_v40 = vpop.f32.mrb[37].mxu0 }
0x11d4   : > { %v2517_v14 = vadd.f32 %v3895_v3, %v2516_v40  ;;  %v4116_v59 = vpop.f32.mrb[38].mxu0 }
0x11d5   : > { %v2532_v20 = vmul.f32 %v2525_v26, %v2525_v26  ;;  %v2519_v46 = vpop.f32.mrb[39].mxu0 }
0x11d6   : > { %v2530_v49 = vmul.f32 %v2517_v14, %v2517_v14  ;;  %v2520_v51 = vadd.f32 %v3895_v3, %v2519_v46  ;;  %v3905_v46 = vld [vmem:[%s6704_s9 + $0xc] ss:$0 sm:$0xff] }
0x11d7   : > { %v2535_v22 = vmul.f32 %v2532_v20, %v2525_v26 }
0x11d8   : > { %v2533_v4 = vmul.f32 %v2530_v49, %v2517_v14  ;;  %v2531_v2 = vmul.f32 %v2520_v51, %v2520_v51 }
0x11d9   : > { %v2538_v9 = vmul.f32 0.044715, %v2535_v22 }
0x11da   : > { %v2536_v32 = vmul.f32 0.044715, %v2533_v4  ;;  %v2534_v31 = vmul.f32 %v2531_v2, %v2520_v51 }
0x11db   : > { %v2541_v16 = vadd.f32 %v2538_v9, %v2525_v26 }
0x11dc   : > { %v2539_v19 = vadd.f32 %v2536_v32, %v2517_v14  ;;  %v2537_v25 = vmul.f32 0.044715, %v2534_v31 }
0x11dd   : > { %v2544_v11 = vmul.f32 0.7978846, %v2541_v16 }
0x11de   : > { %v2542_v39 = vmul.f32 0.7978846, %v2539_v19  ;;  %v2540_v60 = vadd.f32 %v2537_v25, %v2520_v51 }
0x11df   : > { %4980 = vtanh.f32 %v2544_v11 }
0x11e0   : > { %4982 = vtanh.f32 %v2542_v39  ;;  %v2543_v12 = vmul.f32 0.7978846, %v2540_v60 }
0x11e2   : > { %4984 = vtanh.f32 %v2543_v12 }
0x11e9   : > { %v4981_v15 = vpop.eup %4980 }
0x11ea   : > { %v4983_v24 = vpop.eup %4982  ;;  %v2550_v58 = vadd.f32 1.0, %v4981_v15 }
0x11eb   : > { %v2548_v8 = vadd.f32 1.0, %v4983_v24 }
0x11ec   : > { %v4985_v45 = vpop.eup %4984  ;;  %v2553_v13 = vmul.f32 0.5, %v2550_v58 }
0x11ed   : > { %v2551_v37 = vmul.f32 0.5, %v2548_v8  ;;  %v2549_v21 = vadd.f32 1.0, %v4985_v45 }
0x11ee   : > { %v2556_v3 = vmul.f32 %v2553_v13, %v2525_v26 }
0x11ef   : > { %v2552_v28 = vmul.f32 0.5, %v2549_v21  ;;  %v2554_v55 = vmul.f32 %v2551_v37, %v2517_v14 }
0x11f0   : > { %v2558_v20 = vpack.c.bf16 %v2556_v3, %v2556_v3  ;;  %v4913_v3 = vld [vmem:[%s6700_s5 + $0x28] sm:$0xff]  }
0x11f1   : > { %v2555_v40 = vmul.f32 %v2552_v28, %v2520_v51  ;;  %v4912_v28 = vld [vmem:[%s6700_s5 + $0x20] sm:$0xff]  }
0x11f2   : > { %4125 = vmatprep.subr.bf16.mxu0 %v4912_v28 }
0x11f3   : > { %v2557_v59 = vpack.c.bf16 %v2555_v40, %v2554_v55  ;;  %4126 = vmatpush3.bf16.msra.mxu0 %v4912_v28 }
0x11f4   : > { %4127 = vmatprep.subr.bf16.mxu0 %v4913_v3 }
0x11f5   : > { %4121 = vmatprep.mubr.msk.bf16.mxu1 %vm511_vm1, %v2557_v59 }
0x11f6   : > { %4122 = vmatmul.mubr.msk.bf16.vlgmr.msra.gmra.mrb[28].mxu1 %vm511_vm1, %v2558_v20 }
0x11f7   : > { %3007 = vmatprep.mubr.f32.mxu1 %v6836_v53  ;;  %4128 = vmatpush3.bf16.msra.mxu0 %v4913_v3  ;;  %v6880_v3 = vld [vmem:[#allocation15_spill] sm:$0xff] }
0x11f8   : > { %4445 = vmatprep.subr.bf16.mxu0 %v6800_v5 }
0x12c9   : > { %v4123_v49 = vpop.f32.mrb[28].mxu1 }
0x12ca   : > { %v2621_v22 = vpop.f32.mrb[29].mxu1  ;;  %v2630_v26 = vadd.f32 %v4123_v49, %v3905_v46 }
0x12cb   : > { %v2622_v4 = vadd.f32 %v3905_v46, %v2621_v22  ;;  %v4124_v2 = vpop.f32.mrb[30].mxu1 }
0x12cc   : > { %v2624_v9 = vpop.f32.mrb[31].mxu1  ;;  %v2643_v31 = vsel %vm511_vm1, %v2630_v26, 0.0 }
0x12cd   : > { %v2625_v14 = vadd.f32 %v3905_v46, %v2624_v9  ;;  %v2637_v51 = vsel %vm511_vm1, %v2622_v4, 0.0 }
0x12ce   : > { %2638 = vadd.xlane.f32.xlu0 %v2637_v51 }
0x12cf   : > { %v2640_v32 = vsel %vm511_vm1, %v2625_v14, 0.0 }
0x12d0   : > { %2641 = vadd.xlane.f32.xlu1 %v2640_v32  ;;  %v3913_v32 = vld [vmem:[%s6704_s9 + $0xe] ss:$0 sm:$0xff] }
0x12d2   : > { %2644 = vadd.xlane.f32.xlu0 %v2643_v31 }
0x135b   : > { %v2639_v16 = vpop.xlane.xlu0 %2638 }
0x135c   : > { %v2646_v19 = vmul.f32 0.03125, %v2639_v16 }
0x135d   : > { %v2642_v25 = vpop.xlane.xlu1 %2641 }
0x135e   : > { %v2649_v11 = vsub.f32 %v2622_v4, %v2646_v19  ;;  %v2647_v39 = vmul.f32 0.03125, %v2642_v25 }
0x135f   : > { %v2645_v60 = vpop.xlane.xlu0 %2644 }
0x1360   : > { %v2650_v12 = vsub.f32 %v2625_v14, %v2647_v39  ;;  %v2648_v15 = vmul.f32 0.03125, %v2645_v60  ;;  %v2652_v24 = vmul.f32 %v2649_v11, %v2649_v11 }
0x1362   : > { %v2651_v58 = vsub.f32 %v2630_v26, %v2648_v15  ;;  %v2655_v8 = vsel %vm511_vm1, %v2652_v24, 0.0  ;;  %v2653_v45 = vmul.f32 %v2650_v12, %v2650_v12  ;;  %v3912_v26 = vld [vmem:[%s6704_s9 + $0xd] ss:$0 sm:$0xff] }
0x1363   : > { %2656 = vadd.xlane.f32.xlu1 %v2655_v8 }
0x1364   : > { %v2658_v13 = vsel %vm511_vm1, %v2653_v45, 0.0  ;;  %v2654_v37 = vmul.f32 %v2651_v58, %v2651_v58 }
0x1365   : > { %2659 = vadd.xlane.f32.xlu0 %v2658_v13 }
0x1366   : > { %v2661_v21 = vsel %vm511_vm1, %v2654_v37, 0.0 }
0x1367   : > { %2662 = vadd.xlane.f32.xlu1 %v2661_v21  ;;  %v6879_v21 = vld [vmem:[#allocation14_spill] sm:$0xff] }
0x13f0   : > { %v2657_v55 = vpop.xlane.xlu1 %2656 }
0x13f1   : > { %v2664_v40 = vmul.f32 0.03125, %v2657_v55 }
0x13f2   : > { %v2660_v59 = vpop.xlane.xlu0 %2659 }
0x13f3   : > { %v2667_v20 = vadd.f32 1e-05, %v2664_v40  ;;  %v2665_v46 = vmul.f32 0.03125, %v2660_v59  ;;  %v6881_v59 = vld [vmem:[#allocation3_spill] sm:$0xff] }
0x13f4   : > { %v2663_v49 = vpop.xlane.xlu1 %2662 }
0x13f5   : > { %4986 = vrsqrt.f32 %v2667_v20  ;;  %v2668_v22 = vadd.f32 1e-05, %v2665_v46  ;;  %v2666_v4 = vmul.f32 0.03125, %v2663_v49  ;;  %v6882_v46 = vld [vmem:[#allocation5_spill] sm:$0xff] }
0x13f7   : > { %4988 = vrsqrt.f32 %v2668_v22  ;;  %v2669_v2 = vadd.f32 1e-05, %v2666_v4  ;;  %v6883_v22 = vld [vmem:[#allocation7_spill] sm:$0xff] }
0x13f9   : > { %4990 = vrsqrt.f32 %v2669_v2  ;;  %v6884_v2 = vld [vmem:[#allocation10_spill] sm:$0xff] }
0x13ff   : > { %v4987_v9 = vpop.eup %4986 }
0x1400   : > { %v2673_v14 = vmul.f32 %v4987_v9, %v2649_v11 }
0x1401   : > { %v4989_v51 = vpop.eup %4988 }
0x1402   : > { %v2674_v31 = vmul.f32 %v4989_v51, %v2650_v12  ;;  %v2680_v16 = vmul.f32 %v3912_v26, %v2673_v14 }
0x1403   : > { %v4991_v19 = vpop.eup %4990 }
0x1404   : > { %v2675_v25 = vmul.f32 %v4991_v19, %v2651_v58  ;;  %v2681_v39 = vmul.f32 %v3912_v26, %v2674_v31  ;;  %v2687_v60 = vadd.f32 %v3913_v32, %v2680_v16 }
0x1406   : > { %v2682_v15 = vmul.f32 %v3912_v26, %v2675_v25  ;;  %v2688_v24 = vadd.f32 %v3913_v32, %v2681_v39  ;;  %v6275_v8 = vadd.f32 %v2687_v60, %v6228_v18  ;;  %v6878_v18 = vld [vmem:[#allocation6_spill] sm:$0xff]  ;;  %v6885_v39 = vld [vmem:[#allocation21_spill] sm:$0xff] }
0x1408   : > { %v6278_v45 = vadd.f32 %v2688_v24, %v6231_v62  ;;  %v2689_v11 = vadd.f32 %v3913_v32, %v2682_v15  ;;  %v6886_v15 = vld [vmem:[#allocation17_spill] sm:$0xff] }
0x140a   : > { %v2693_v13 = vpack.c.bf16 %v6278_v45, %v6275_v8  ;;  %v6283_v37 = vadd.f32 %v2689_v11, %v6225_v52  ;;  %v6877_v52 = vld [vmem:[#allocation9_spill] sm:$0xff]  ;;  %v6887_v11 = vld [vmem:[#allocation23_spill] sm:$0xff] }
0x140c   : > { %4129 = vmatprep.mubr.msk.bf16.mxu0 %vm511_vm1, %v2693_v13  ;;  %v2694_v12 = vpack.c.bf16 %v6283_v37, %v6283_v37 }
0x140e   : > { %4130 = vmatmul.mubr.msk.bf16.vlgmr.msra.gmra.mrb[40].mxu0 %vm511_vm1, %v2694_v12 }
0x140f   : > { %4447 = vmatpush1.bf16.msra.mxu0 %v5298_v50 }
0x1410   : > { %4448 = vmatprep.subr.bf16.mxu0 %v6800_v5 }
0x1413   : > { %4450 = vmatpush1.bf16.msra.mxu0 %v5308_v54 }
0x1414   : > { %4451 = vmatprep.subr.bf16.mxu0 %v6800_v5 }
0x1417   : > { %4453 = vmatpush1.bf16.msra.mxu0 %v5316_v56 }
0x1418   : > { %4454 = vmatprep.subr.bf16.mxu0 %v6800_v5 }
0x141b   : > { %4456 = vmatpush1.bf16.msra.mxu0 %v5364_v63 }
0x141c   : > { %4457 = vmatprep.subr.bf16.mxu0 %v6800_v5 }
0x141f   : > { %4459 = vmatpush1.bf16.msra.mxu0 %v5383_v0 }
0x1420   : > { %4460 = vmatprep.subr.bf16.mxu0 %v6800_v5 }
0x1423   : > { %4462 = vmatpush1.bf16.msra.mxu0 %v5403_v6  ;;  %v6874_v6 = vld [vmem:[#allocation11_spill] sm:$0xff] }
0x1424   : > { %4463 = vmatprep.subr.bf16.mxu0 %v6800_v5 }
0x1427   : > { %4465 = vmatpush1.bf16.msra.mxu0 %v5412_v7 }
0x1428   : > { %4466 = vmatprep.subr.bf16.mxu0 %v6800_v5 }
0x142b   : > { %4468 = vmatpush1.bf16.msra.mxu0 %v5431_v27 }
0x142c   : > { %4469 = vmatprep.subr.bf16.mxu0 %v6800_v5 }
0x142f   : > { %4471 = vmatpush1.bf16.msra.mxu0 %v5445_v29  ;;  %v6875_v29 = vld [vmem:[#allocation4_spill] sm:$0xff] }
0x1430   : > { %4472 = vmatprep.subr.bf16.mxu0 %v6800_v5 }
0x1433   : > { %4474 = vmatpush1.bf16.msra.mxu0 %v5454_v35 }
0x1434   : > { %4475 = vmatprep.subr.bf16.mxu0 %v6800_v5 }
0x1437   : > { %4477 = vmatpush1.bf16.msra.mxu0 %v5461_v36  ;;  %v6876_v36 = vld [vmem:[#allocation2_spill] sm:$0xff] }
0x1438   : > { %4478 = vmatprep.subr.bf16.mxu0 %v6800_v5 }
0x143b   : > { %4480 = vmatpush1.bf16.msra.mxu0 %v5468_v30 }
0x143c   : > { %4481 = vmatprep.subr.bf16.mxu0 %v6800_v5 }
0x14e1   : > { %v6313_v50 = vpop.f32.mrb[40].mxu0 }
0x14e2   : > { %v6315_v54 = vpop.f32.mrb[41].mxu0  ;;  %v2768_v56 = vmul.f32 %v6313_v50, %v5272_v38  ;;  %v2771_v63 = vmul.f32 %v6313_v50, %v5280_v42  ;;  %v2774_v0 = vmul.f32 %v6313_v50, %v6840_v10  ;;  %v6325_v7 = vmul.f32 %v6313_v50, %v6874_v6 }
0x14e3   : > { %v4132_v27 = vpop.f32.mrb[42].mxu0  ;;  %v2769_v35 = vmul.f32 %v6315_v54, %v6875_v29  ;;  %v2766_v30 = vmul.f32 %v6315_v54, %v6876_v36  ;;  %v2775_v38 = vmul.f32 %v6315_v54, %v6877_v52  ;;  %v2772_v42 = vmul.f32 %v6315_v54, %v6878_v18  ;;  %v6892_v52 = vld [vmem:[#allocation32_spill] sm:$0xff]  ;;  %v6893_v18 = vld [vmem:[#allocation33_spill] sm:$0xff] }
0x14e4   : > { %v6335_v62 = vpop.f32.mrb[43].mxu0  ;;  %v2778_v10 = vmul.f32 %v6315_v54, %v6847_v47  ;;  %v6341_v58 = vmul.f32 %v6313_v50, %v6850_v34  ;;  %v6345_v28 = vmul.f32 %v6313_v50, %v6879_v21  ;;  %v6349_v55 = vmul.f32 %v6315_v54, %v6880_v3  ;;  %v6895_v21 = vld [vmem:[#allocation29_spill] sm:$0xff] }
0x14e5   : > { %v4775_v40 = vpack.i.bf16 %v2769_v35, %v2768_v56  ;;  %v2767_v20 = vmul.f32 %v6335_v62, %v6881_v59  ;;  %v2770_v49 = vmul.f32 %v6335_v62, %v6882_v46  ;;  %v4790_v47 = vpack.i.bf16 %v2775_v38, %v2774_v0  ;;  %v6897_v59 = vld [vmem:[#allocation43_spill] sm:$0xff]  ;;  %v6898_v46 = vld [vmem:[#allocation30_spill] sm:$0xff] }
0x14e6   : > { %v2773_v34 = vmul.f32 %v6335_v62, %v6883_v22  ;;  %v2779_v4 = vmul.f32 %v6335_v62, %v6848_v57  ;;  %v2776_v9 = vmul.f32 %v6335_v62, %v6884_v2  ;;  %v2782_v26 = vmul.f32 %v6335_v62, %v6849_v33  ;;  %v6900_v2 = vld [vmem:[#allocation34_spill] sm:$0xff] }
0x14e7   : > { %4776 = vrot.lane.b32.xlu1 %v4775_v40, %s5038_s21  ;;  %v4770_v14 = vpack.i.bf16 %v2767_v20, %v2766_v30  ;;  %v4780_v51 = vpack.i.bf16 %v2771_v63, %v2770_v49  ;;  %v4805_v32 = vpack.i.bf16 %v6349_v55, %v6345_v28  ;;  %v2786_v31 = vmul.f32 %v6313_v50, %v6851_v17  ;;  %v6888_v63 = vld [vmem:[#allocation24_spill] sm:$0xff]  ;;  %v6891_v30 = vld [vmem:[#allocation27_spill] sm:$0xff]  ;;  %v6896_v55 = vld [vmem:[#allocation42_spill] sm:$0xff] }
0x14e8   : > { %v4785_v16 = vpack.i.bf16 %v2773_v34, %v2772_v42  ;;  %v4800_v19 = vpack.i.bf16 %v2779_v4, %v2778_v10  ;;  %v4795_v57 = vpack.i.bf16 %v6325_v7, %v2776_v9  ;;  %v4810_v25 = vpack.i.bf16 %v6341_v58, %v2782_v26  ;;  %v6889_v7 = vld [vmem:[#allocation25_spill] sm:$0xff]  ;;  %v6894_v10 = vld [vmem:[#allocation28_spill] sm:$0xff]  ;;  %v6899_v34 = vld [vmem:[#allocation31_spill] sm:$0xff] }
0x14e9   : > { %4771 = vrot.lane.b32.xlu0 %v4770_v14, %s5038_s21  ;;  %v2787_v33 = vmul.f32 %v6315_v54, %v6852_v44  ;;  %v2784_v60 = vmul.f32 %v6315_v54, %v6885_v39  ;;  %v2785_v24 = vmul.f32 %v6335_v62, %v6886_v15  ;;  %v2788_v17 = vmul.f32 %v6335_v62, %v5514_v41  ;;  %v6890_v41 = vld [vmem:[#allocation26_spill] sm:$0xff]  ;;  %v6901_v14 = vld [vmem:[#allocation35_spill] sm:$0xff] }
0x14ea   : > { %v2789_v13 = vmul.f32 %v6313_v50, %v6887_v11  ;;  %v2790_v12 = vmul.f32 %v6315_v54, %v5595_v43  ;;  %v2791_v56 = vmul.f32 %v6335_v62, %v5597_v61  ;;  %v2792_v44 = vmul.f32 %v6313_v50, %v6888_v63  ;;  %v6904_v15 = vld [vmem:[#allocation38_spill] sm:$0xff] }
0x14eb   : > { %4781 = vrot.lane.b32.xlu1 %v4780_v51, %s5038_s21  ;;  %v4820_v0 = vpack.i.bf16 %v2787_v33, %v2786_v31  ;;  %v4815_v6 = vpack.i.bf16 %v2785_v24, %v2784_v60  ;;  %v2793_v27 = vmul.f32 %v6315_v54, %v6889_v7  ;;  %v2794_v29 = vmul.f32 %v6335_v62, %v6890_v41  ;;  %v6902_v31 = vld [vmem:[#allocation36_spill] sm:$0xff]  ;;  %v6903_v33 = vld [vmem:[#allocation37_spill] sm:$0xff] }
0x14ec   : > { %v4825_v35 = vpack.i.bf16 %v2789_v13, %v2788_v17  ;;  %v4830_v36 = vpack.i.bf16 %v2791_v56, %v2790_v12  ;;  %v2795_v43 = vmul.f32 %v6313_v50, %v6891_v30  ;;  %v2800_v61 = vmul.f32 %v6335_v62, %v6892_v52  ;;  %v6905_v17 = vld [vmem:[#allocation39_spill] sm:$0xff]  ;;  %v6906_v13 = vld [vmem:[#allocation40_spill] sm:$0xff]  ;;  %v6908_v41 = vld [vmem:[#allocation45_spill] sm:$0xff] }
0x14ed   : > { %4791 = vrot.lane.b32.xlu0 %v4790_v47, %s5038_s21  ;;  %v4835_v38 = vpack.i.bf16 %v2793_v27, %v2792_v44  ;;  %v2801_v42 = vmul.f32 %v6313_v50, %v6893_v18  ;;  %v6401_v58 = vmul.f32 %v6315_v54, %v6894_v10  ;;  %v6405_v28 = vmul.f32 %v6335_v62, %v6895_v21  ;;  %v6907_v44 = vld [vmem:[#allocation44_spill] sm:$0xff] }
0x14ee   : > { %v4840_v3 = vpack.i.bf16 %v2795_v43, %v2794_v29  ;;  %v6409_v40 = vmul.f32 %v6313_v50, %v6896_v55  ;;  %v6413_v20 = vmul.f32 %v6315_v54, %v6897_v59  ;;  %v6417_v49 = vmul.f32 %v6313_v50, %v6898_v46 }
0x14ef   : > { %4786 = vrot.lane.b32.xlu1 %v4785_v16, %s5038_s21  ;;  %v4855_v47 = vpack.i.bf16 %v2801_v42, %v2800_v61  ;;  %v4845_v22 = vpack.i.bf16 %v6405_v28, %v6401_v58  ;;  %v6424_v4 = vmul.f32 %v6315_v54, %v6899_v34  ;;  %v6428_v9 = vmul.f32 %v6315_v54, %v6900_v2 }
0x14f0   : > { %v4880_v26 = vpack.i.bf16 %v6413_v20, %v6409_v40  ;;  %v6434_v51 = vmul.f32 %v6335_v62, %v6901_v14  ;;  %v6438_v16 = vmul.f32 %v6313_v50, %v6902_v31  ;;  %v6442_v39 = vmul.f32 %v6315_v54, %v6903_v33 }
0x14f1   : > { %4801 = vrot.lane.b32.xlu0 %v4800_v19, %s5038_s21  ;;  %v4850_v60 = vpack.i.bf16 %v6424_v4, %v6417_v49  ;;  %v6449_v24 = vmul.f32 %v6335_v62, %v6904_v15  ;;  %v6453_v11 = vmul.f32 %v6313_v50, %v6905_v17  ;;  %v6457_v12 = vmul.f32 %v6315_v54, %v6906_v13 }
0x14f2   : > { %v4860_v56 = vpack.i.bf16 %v6434_v51, %v6428_v9  ;;  %v4865_v19 = vpack.i.bf16 %v6442_v39, %v6438_v16  ;;  %v6465_v63 = vmul.f32 %v6335_v62, %v6860_v23  ;;  %v6469_v7 = vmul.f32 %v6335_v62, %v6907_v44 }
0x14f3   : > { %4796 = vrot.lane.b32.xlu1 %v4795_v57, %s5038_s21  ;;  %v4870_v27 = vpack.i.bf16 %v6453_v11, %v6449_v24  ;;  %v6476_v29 = vmul.f32 %v6313_v50, %v6908_v41 }
0x14f4   : > { %v4875_v30 = vpack.i.bf16 %v6465_v63, %v6457_v12 }
0x14f5   : > { %4811 = vrot.lane.b32.xlu0 %v4810_v25, %s5038_s21  ;;  %v4885_v23 = vpack.i.bf16 %v6476_v29, %v6469_v7 }
0x14f7   : > { %4806 = vrot.lane.b32.xlu1 %v4805_v32, %s5038_s21 }
0x14f9   : > { %4821 = vrot.lane.b32.xlu0 %v4820_v0, %s5038_s21 }
0x14fb   : > { %4816 = vrot.lane.b32.xlu1 %v4815_v6, %s5038_s21 }
0x14ff   : > { %4826 = vrot.lane.b32.xlu1 %v4825_v35, %s5038_s21 }
0x1503   : > { %4831 = vrot.lane.b32.xlu1 %v4830_v36, %s5039_s18 }
0x1507   : > { %4836 = vrot.lane.b32.xlu1 %v4835_v38, %s5039_s18 }
0x150b   : > { %4841 = vrot.lane.b32.xlu1 %v4840_v3, %s5039_s18 }
0x150f   : > { %4856 = vrot.lane.b32.xlu1 %v4855_v47, %s5039_s18 }
0x1559   : > { %v4777_v61 = vpop.permute.xlu1 %4776 }
0x155a   : > { %v4779_v0 = vunpack.i.h.bf16 %v4777_v61  ;;  %v4778_v6 = vunpack.i.l.bf16 %v4777_v61 }
0x155b   : > { %v4772_v57 = vpop.permute.xlu0 %4771 }
0x155c   : > { %v4774_v25 = vunpack.i.h.bf16 %v4772_v57  ;;  %v4773_v43 = vunpack.i.l.bf16 %v4772_v57  ;;  %v4402_v35 = vpack.c.bf16 %v4779_v0, %v4778_v6 }
0x155d   : > { %v4782_v36 = vpop.permute.xlu1 %4781 }
0x155e   : > { %v4398_v52 = vpack.c.bf16 %v4774_v25, %v4773_v43  ;;  %v4784_v38 = vunpack.i.h.bf16 %v4782_v36  ;;  %v4783_v18 = vunpack.i.l.bf16 %v4782_v36 }
0x155f   : > { %v4792_v59 = vpop.permute.xlu0 %4791 }
0x1560   : > { %4400 = vmatpush1.bf16.xpose.msk.msra.mxu1 %vm5480_vm2, %v4398_v52  ;;  %v4406_v42 = vpack.c.bf16 %v4784_v38, %v4783_v18  ;;  %v4794_v46 = vunpack.i.h.bf16 %v4792_v59  ;;  %v4793_v47 = vunpack.i.l.bf16 %v4792_v59 }
0x1561   : > { %4401 = vmatprep.subr.bf16.mxu1 %v6800_v5  ;;  %v4787_v10 = vpop.permute.xlu1 %4786 }
0x1562   : > { %v4789_v21 = vunpack.i.h.bf16 %v4787_v10  ;;  %v4788_v3 = vunpack.i.l.bf16 %v4787_v10  ;;  %v4414_v34 = vpack.c.bf16 %v4794_v46, %v4793_v47 }
0x1563   : > { %v4802_v15 = vpop.permute.xlu0 %4801 }
0x1564   : > { %v4410_v55 = vpack.c.bf16 %v4789_v21, %v4788_v3  ;;  %v4804_v17 = vunpack.i.h.bf16 %v4802_v15  ;;  %v4803_v13 = vunpack.i.l.bf16 %v4802_v15 }
0x1565   : > { %v4797_v2 = vpop.permute.xlu1 %4796 }
0x1566   : > { %v4799_v14 = vunpack.i.h.bf16 %v4797_v2  ;;  %v4798_v31 = vunpack.i.l.bf16 %v4797_v2  ;;  %v4422_v44 = vpack.c.bf16 %v4804_v17, %v4803_v13 }
0x1567   : > { %v4812_v52 = vpop.permute.xlu0 %4811 }
0x1568   : > { %4404 = vmatpush1.bf16.xpose.msk.msra.mxu1 %vm5480_vm2, %v4402_v35  ;;  %v4418_v33 = vpack.c.bf16 %v4799_v14, %v4798_v31  ;;  %v4814_v61 = vunpack.i.h.bf16 %v4812_v52  ;;  %v4813_v0 = vunpack.i.l.bf16 %v4812_v52 }
0x1569   : > { %4405 = vmatprep.subr.bf16.mxu1 %v6800_v5  ;;  %v4807_v41 = vpop.permute.xlu1 %4806 }
0x156a   : > { %v4809_v57 = vunpack.i.h.bf16 %v4807_v41  ;;  %v4808_v25 = vunpack.i.l.bf16 %v4807_v41  ;;  %v4430_v6 = vpack.c.bf16 %v4814_v61, %v4813_v0 }
0x156c   : > { %v4426_v43 = vpack.c.bf16 %v4809_v57, %v4808_v25 }
0x156d   : > { %v4817_v35 = vpop.permute.xlu1 %4816 }
0x156e   : > { %v4819_v36 = vunpack.i.h.bf16 %v4817_v35  ;;  %v4818_v38 = vunpack.i.l.bf16 %v4817_v35 }
0x1570   : > { %4408 = vmatpush1.bf16.xpose.msk.msra.mxu1 %vm5480_vm2, %v4406_v42  ;;  %v4434_v18 = vpack.c.bf16 %v4819_v36, %v4818_v38  ;;  %v4822_v42 = vpop.permute.xlu0 %4821 }
0x1571   : > { %4409 = vmatprep.subr.bf16.mxu1 %v6800_v5  ;;  %v4824_v10 = vunpack.i.h.bf16 %v4822_v42  ;;  %v4823_v21 = vunpack.i.l.bf16 %v4822_v42 }
0x1573   : > { %v4438_v3 = vpack.c.bf16 %v4824_v10, %v4823_v21 }
0x1578   : > { %4412 = vmatpush1.bf16.xpose.msk.msra.mxu1 %vm5480_vm2, %v4410_v55  ;;  %v4827_v55 = vpop.permute.xlu1 %4826 }
0x1579   : > { %4413 = vmatprep.subr.bf16.mxu1 %v6800_v5  ;;  %v4829_v59 = vunpack.i.h.bf16 %v4827_v55  ;;  %v4828_v46 = vunpack.i.l.bf16 %v4827_v55 }
0x157b   : > { %v4442_v47 = vpack.c.bf16 %v4829_v59, %v4828_v46 }
0x1580   : > { %4416 = vmatpush1.bf16.xpose.msk.msra.mxu1 %vm5480_vm2, %v4414_v34 }
0x1581   : > { %4417 = vmatprep.subr.bf16.mxu1 %v6800_v5 }
0x1588   : > { %4420 = vmatpush1.bf16.xpose.msk.msra.mxu1 %vm5480_vm2, %v4418_v33 }
0x1589   : > { %4421 = vmatprep.subr.bf16.mxu1 %v6800_v5 }
0x1590   : > { %4424 = vmatpush1.bf16.xpose.msk.msra.mxu1 %vm5480_vm2, %v4422_v44 }
0x1591   : > { %4425 = vmatprep.subr.bf16.mxu1 %v6800_v5 }
0x1598   : > { %4428 = vmatpush1.bf16.xpose.msk.msra.mxu1 %vm5480_vm2, %v4426_v43 }
0x1599   : > { %4429 = vmatprep.subr.bf16.mxu1 %v6800_v5 }
0x15a0   : > { %4432 = vmatpush1.bf16.xpose.msk.msra.mxu1 %vm5480_vm2, %v4430_v6 }
0x15a1   : > { %4433 = vmatprep.subr.bf16.mxu1 %v6800_v5 }
0x15a8   : > { %4436 = vmatpush1.bf16.xpose.msk.msra.mxu1 %vm5480_vm2, %v4434_v18 }
0x15a9   : > { %4437 = vmatprep.subr.bf16.mxu1 %v6800_v5 }
0x15b0   : > { %4440 = vmatpush1.bf16.xpose.msk.msra.mxu1 %vm5480_vm2, %v4438_v3 }
0x15b1   : > { %4441 = vmatprep.subr.bf16.mxu1 %v6800_v5 }
0x15b8   : > { %4444 = vmatpush1.bf16.xpose.msk.msra.mxu1 %vm5480_vm2, %v4442_v47 }
0x15bf   : > { %3946 = vmatmul.mubr.msk.f32.vlgmr.msra.gmra.mrb[32].mxu1 %vm511_vm1, %v6315_v54 }
0x15c0   : > { %3013 = vmatprep.mubr.f32.mxu1 %v6836_v53 }
0x15c3   : > { %3947 = vmatmul.mubr.msk.f32.gmra.mrb[34].mxu1 %vm511_vm1, %v6335_v62 }
0x15c4   : > { %3019 = vmatprep.mubr.f32.mxu1 %v6836_v53 }
0x15c7   : > { %3948 = vmatmul.mubr.msk.f32.gmra.mrb[36].mxu1 %vm511_vm1, %v6313_v50 }
0x1692   : > { %v3009_v34 = vpop.f32.mrb[32].mxu1 }
0x1693   : > { %v3011_v2 = vpop.f32.mrb[33].mxu1  ;;  %v3010_v32 = vadd.f32 %v3009_v34, %v6865_v1 }
0x1694   : > { %v3012_v14 = vadd.f32 %v3011_v2, %v6864_v48 }
0x1696   : > { %v3026_v31 = vsel %vm407_vm0, %v3012_v14, -inf  ;;  %v3015_v33 = vpop.f32.mrb[34].mxu1 }
0x1697   : > { %v3027_v54 = vmax.f32 %v3010_v32, %v3026_v31  ;;  %v3017_v15 = vpop.f32.mrb[35].mxu1  ;;  %v3016_v62 = vadd.f32 %v3015_v33, %v6865_v1 }
0x1698   : > { %v3018_v17 = vadd.f32 %v3017_v15, %v6864_v48 }
0x1699   : > { %3028 = vmax.xlane.f32.xlu0 %v3027_v54 }
0x169a   : > { %v3030_v53 = vsel %vm407_vm0, %v3018_v17, -inf  ;;  %v3021_v13 = vpop.f32.mrb[36].mxu1 }
0x169b   : > { %v3031_v50 = vmax.f32 %v3016_v62, %v3030_v53  ;;  %v3023_v44 = vpop.f32.mrb[37].mxu1  ;;  %v3022_v57 = vadd.f32 %v3021_v13, %v6865_v1 }
0x169c   : > { %v3024_v41 = vadd.f32 %v3023_v44, %v6864_v48  ;;  %v4832_v48 = vpop.permute.xlu1 %4831 }
0x169d   : > { %3032 = vmax.xlane.f32.xlu1 %v3031_v50  ;;  %v4833_v63 = vunpack.i.l.bf16 %v4832_v48 }
0x169e   : > { %v3034_v25 = vsel %vm407_vm0, %v3024_v41, -inf }
0x169f   : > { %v3035_v43 = vmax.f32 %v3022_v57, %v3034_v25 }
0x16a0   : > { %v4837_v1 = vpop.permute.xlu1 %4836 }
0x16a1   : > { %3036 = vmax.xlane.f32.xlu1 %v3035_v43  ;;  %v4838_v52 = vunpack.i.l.bf16 %v4837_v1 }
0x16a4   : > { %v4842_v58 = vpop.permute.xlu1 %4841 }
0x16a5   : > { %v4844_v35 = vunpack.i.h.bf16 %v4842_v58  ;;  %v4843_v36 = vunpack.i.l.bf16 %v4842_v58 }
0x16a7   : > { %v4488_v10 = vpack.c.bf16 %v4844_v35, %v4843_v36  ;;  %v3960_v35 = vld [vmem:[%s6704_s9 + $0x10] ss:$0 sm:$0xff] }
0x16a8   : > { %v6575_v28 = vpop.permute.xlu1 %4856 }
0x16a9   : > { %v4859_v34 = vunpack.i.h.bf16 %v6575_v28  ;;  %v4858_v2 = vunpack.i.l.bf16 %v6575_v28 }
0x16ab   : > { %v4497_v31 = vpack.c.bf16 %v4859_v34, %v4858_v2 }
0x16af   : > { %4846 = vrot.lane.b32.xlu0 %v4845_v22, %s5039_s18 }
0x16b2   : > { %4881 = vrot.lane.b32.xlu1 %v4880_v26, %s5039_s18 }
0x16b3   : > { %4851 = vrot.lane.b32.xlu0 %v4850_v60, %s5039_s18 }
0x16b7   : > { %4861 = vrot.lane.b32.xlu0 %v4860_v56, %s5039_s18 }
0x16bb   : > { %4866 = vrot.lane.b32.xlu0 %v4865_v19, %s5039_s18  ;;  %v4834_v19 = vunpack.i.h.bf16 %v4832_v48 }
0x16bf   : > { %4871 = vrot.lane.b32.xlu0 %v4870_v27, %s5039_s18 }
0x16c3   : > { %4876 = vrot.lane.b32.xlu0 %v4875_v30, %s5039_s18  ;;  %v4482_v30 = vpack.c.bf16 %v4834_v19, %v4833_v63 }
0x16c7   : > { %4886 = vrot.lane.b32.xlu0 %v4885_v23, %s5039_s18  ;;  %v4839_v23 = vunpack.i.h.bf16 %v4837_v1 }
0x16c9   : > { %v4485_v6 = vpack.c.bf16 %v4839_v23, %v4838_v52 }
0x1726   : > { %v3029_v40 = vpop.xlane.xlu0 %3028 }
0x1727   : > { %v3038_v20 = vsub.f32 %v3010_v32, %v3029_v40  ;;  %v3039_v49 = vsub.f32 %v3012_v14, %v3029_v40 }
0x1729   : > { %v3044_v22 = vmul.f32 1.442695, %v3038_v20  ;;  %v3046_v4 = vmul.f32 1.442695, %v3039_v49 }
0x172a   : > { %v3033_v9 = vpop.xlane.xlu1 %3032  ;;  %v4847_v29 = vpop.permute.xlu0 %4846 }
0x172b   : > { %4992 = vpow2.f32 %v3044_v22  ;;  %v3040_v26 = vsub.f32 %v3016_v62, %v3033_v9  ;;  %v3041_v51 = vsub.f32 %v3018_v17, %v3033_v9  ;;  %v4849_v21 = vunpack.i.h.bf16 %v4847_v29  ;;  %v4914_v9 = vld [vmem:[%s6701_s6 + $0x20] sm:$0xff]  }
0x172c   : > { %4994 = vpow2.f32 %v3046_v4  ;;  %v4848_v3 = vunpack.i.l.bf16 %v4847_v29  ;;  %4133 = vmatprep.subr.bf16.mxu1 %v4914_v9 }
0x172d   : > { %v3048_v16 = vmul.f32 1.442695, %v3040_v26  ;;  %v3050_v39 = vmul.f32 1.442695, %v3041_v51  ;;  %4134 = vmatpush3.bf16.msra.mxu1 %v4914_v9 }
0x172e   : > { %v3037_v60 = vpop.xlane.xlu1 %3036  ;;  %v4852_v38 = vpop.permute.xlu0 %4851  ;;  %v4491_v59 = vpack.c.bf16 %v4849_v21, %v4848_v3 }
0x172f   : > { %4996 = vpow2.f32 %v3048_v16  ;;  %v3042_v24 = vsub.f32 %v3022_v57, %v3037_v60  ;;  %v3043_v11 = vsub.f32 %v3024_v41, %v3037_v60  ;;  %v4854_v46 = vunpack.i.h.bf16 %v4852_v38 }
0x1730   : > { %4998 = vpow2.f32 %v3050_v39  ;;  %v4853_v47 = vunpack.i.l.bf16 %v4852_v38 }
0x1731   : > { %v3052_v12 = vmul.f32 1.442695, %v3042_v24  ;;  %v3054_v56 = vmul.f32 1.442695, %v3043_v11 }
0x1732   : > { %v4862_v55 = vpop.permute.xlu0 %4861  ;;  %v4494_v14 = vpack.c.bf16 %v4854_v46, %v4853_v47  ;;  %v4882_v48 = vpop.permute.xlu1 %4881 }
0x1733   : > { %5000 = vpow2.f32 %v3052_v12  ;;  %v4864_v33 = vunpack.i.h.bf16 %v4862_v55  ;;  %v4863_v54 = vunpack.i.l.bf16 %v4862_v55  ;;  %v4884_v1 = vunpack.i.h.bf16 %v4882_v48 }
0x1734   : > { %5002 = vpow2.f32 %v3054_v56  ;;  %v4883_v58 = vunpack.i.l.bf16 %v4882_v48 }
0x1735   : > { %v6577_v7 = vpop.eup %4992  ;;  %v4500_v17 = vpack.c.bf16 %v4864_v33, %v4863_v54 }
0x1736   : > { %v4995_v27 = vpop.eup %4994  ;;  %v4867_v32 = vpop.permute.xlu0 %4866  ;;  %v4512_v20 = vpack.c.bf16 %v4884_v1, %v4883_v58 }
0x1737   : > { %3949 = vmatprep.mubr.msk.f32.mxu0 %vm407_vm0, %v4995_v27  ;;  %v4869_v62 = vunpack.i.h.bf16 %v4867_v32  ;;  %v4868_v53 = vunpack.i.l.bf16 %v4867_v32 }
0x1738   : > { %3130 = vmatmul.mubr.f32.vlgmr.msra.gmra.mrb[44].mxu0 %v6577_v7 }
0x1739   : > { %v6581_v61 = vpop.eup %4996  ;;  %4483 = vmatpush1.bf16.msra.mxu0 %v4482_v30  ;;  %v4503_v13 = vpack.c.bf16 %v4869_v62, %v4868_v53 }
0x173a   : > { %v6583_v0 = vpop.eup %4998  ;;  %4484 = vmatprep.subr.bf16.mxu0 %v6800_v5  ;;  %v4872_v15 = vpop.permute.xlu0 %4871 }
0x173b   : > { %3950 = vmatprep.mubr.msk.f32.mxu0 %vm407_vm0, %v6583_v0  ;;  %v4874_v50 = vunpack.i.h.bf16 %v4872_v15  ;;  %v4873_v44 = vunpack.i.l.bf16 %v4872_v15 }
0x173c   : > { %3135 = vmatmul.mubr.f32.gmra.mrb[46].mxu0 %v6581_v61 }
0x173d   : > { %v6589_v18 = vpop.eup %5000  ;;  %4486 = vmatpush1.bf16.msra.mxu0 %v4485_v6  ;;  %v4506_v57 = vpack.c.bf16 %v4874_v50, %v4873_v44 }
0x173e   : > { %v5003_v42 = vpop.eup %5002  ;;  %4487 = vmatprep.subr.bf16.mxu0 %v6800_v5  ;;  %v4877_v41 = vpop.permute.xlu0 %4876 }
0x173f   : > { %3951 = vmatprep.mubr.msk.f32.mxu0 %vm407_vm0, %v5003_v42  ;;  %v4879_v25 = vunpack.i.h.bf16 %v4877_v41  ;;  %v4878_v43 = vunpack.i.l.bf16 %v4877_v41  ;;  %v4916_v41 = vld [vmem:[%s6702_s7 + $0x20] sm:$0xff]  }
0x1740   : > { %3140 = vmatmul.mubr.f32.gmra.mrb[48].mxu0 %v6589_v18 }
0x1741   : > { %4489 = vmatpush1.bf16.msra.mxu0 %v4488_v10  ;;  %3952 = vmatprep.mubr.msk.f32.mxu0 %vm407_vm0, %v4995_v27  ;;  %v4509_v28 = vpack.c.bf16 %v4879_v25, %v4878_v43 }
0x1742   : > { %4490 = vmatprep.subr.bf16.mxu0 %v6800_v5  ;;  %v4887_v40 = vpop.permute.xlu0 %4886 }
0x1743   : > { %v4889_v49 = vunpack.i.h.bf16 %v4887_v40  ;;  %v4888_v22 = vunpack.i.l.bf16 %v4887_v40 }
0x1745   : > { %4492 = vmatpush1.bf16.msra.mxu0 %v4491_v59  ;;  %v4515_v4 = vpack.c.bf16 %v4889_v49, %v4888_v22 }
0x1746   : > { %4493 = vmatprep.subr.bf16.mxu0 %v6800_v5 }
0x1749   : > { %4495 = vmatpush1.bf16.msra.mxu0 %v4494_v14 }
0x174a   : > { %4496 = vmatprep.subr.bf16.mxu0 %v6800_v5 }
0x174d   : > { %4498 = vmatpush1.bf16.msra.mxu0 %v4497_v31 }
0x174e   : > { %4499 = vmatprep.subr.bf16.mxu0 %v6800_v5 }
0x1751   : > { %4501 = vmatpush1.bf16.msra.mxu0 %v4500_v17 }
0x1752   : > { %4502 = vmatprep.subr.bf16.mxu0 %v6800_v5 }
0x1755   : > { %4504 = vmatpush1.bf16.msra.mxu0 %v4503_v13 }
0x1756   : > { %4505 = vmatprep.subr.bf16.mxu0 %v6800_v5 }
0x1759   : > { %4507 = vmatpush1.bf16.msra.mxu0 %v4506_v57  ;;  %v4917_v57 = vld [vmem:[%s6702_s7 + $0x28] sm:$0xff]  }
0x175a   : > { %4508 = vmatprep.subr.bf16.mxu0 %v6800_v5 }
0x175d   : > { %4510 = vmatpush1.bf16.msra.mxu0 %v4509_v28 }
0x175e   : > { %4511 = vmatprep.subr.bf16.mxu0 %v6800_v5 }
0x1761   : > { %4513 = vmatpush1.bf16.msra.mxu0 %v4512_v20 }
0x1762   : > { %4514 = vmatprep.subr.bf16.mxu0 %v6800_v5  ;;  %v4915_v5 = vld [vmem:[%s6701_s6 + $0x28] sm:$0xff]  }
0x1763   : > { %4135 = vmatprep.subr.bf16.mxu1 %v4915_v5 }
0x1764   : > { %4136 = vmatpush3.bf16.msra.mxu1 %v4915_v5 }
0x1765   : > { %4516 = vmatpush1.bf16.msra.mxu0 %v4515_v4  ;;  %v3967_v4 = vld [vmem:[%s6704_s9 + $0x11] ss:$0 sm:$0xff] }
0x1766   : > { %4141 = vmatprep.subr.bf16.mxu0 %v4916_v41 }
0x1768   : > { %3306 = vmatmul.mubr.f32.vlgmr.msra.gmra.mrb[50].mxu0 %v6577_v7 }
0x1769   : > { %3953 = vmatprep.mubr.msk.f32.mxu0 %vm407_vm0, %v6583_v0  ;;  %4142 = vmatpush3.bf16.msra.mxu0 %v4916_v41 }
0x176a   : > { %4143 = vmatprep.subr.bf16.mxu0 %v4917_v57 }
0x176c   : > { %3311 = vmatmul.mubr.f32.gmra.mrb[52].mxu0 %v6581_v61 }
0x176d   : > { %3954 = vmatprep.mubr.msk.f32.mxu0 %vm407_vm0, %v5003_v42  ;;  %4144 = vmatpush3.bf16.msra.mxu0 %v4917_v57 }
0x1770   : > { %3316 = vmatmul.mubr.f32.gmra.mrb[54].mxu0 %v6589_v18 }
0x180b   : > { %v3131_v26 = vpop.f32.mrb[44].mxu0 }
0x180c   : > { %v3133_v51 = vpop.f32.mrb[45].mxu0  ;;  %5004 = vrcp.f32 %v3131_v26  ;;  %v3968_v26 = vld [vmem:[%s6704_s9 + $0x12] ss:$0 sm:$0xff] }
0x180f   : > { %v3136_v16 = vpop.f32.mrb[46].mxu0 }
0x1810   : > { %v3138_v39 = vpop.f32.mrb[47].mxu0  ;;  %5006 = vrcp.f32 %v3136_v16 }
0x1813   : > { %v3141_v60 = vpop.f32.mrb[48].mxu0 }
0x1814   : > { %v3143_v24 = vpop.f32.mrb[49].mxu0  ;;  %5008 = vrcp.f32 %v3141_v60 }
0x1816   : > { %v5005_v11 = vpop.eup %5004 }
0x181a   : > { %v5007_v63 = vpop.eup %5006 }
0x181e   : > { %v5009_v23 = vpop.eup %5008 }
0x183b   : > { %v3307_v12 = vpop.f32.mrb[50].mxu0 }
0x183c   : > { %v3324_v56 = vmul.f32 %v5005_v11, %v3307_v12  ;;  %v3309_v19 = vpop.f32.mrb[51].mxu0 }
0x183f   : > { %v3312_v7 = vpop.f32.mrb[52].mxu0 }
0x1840   : > { %v3325_v27 = vmul.f32 %v5007_v63, %v3312_v7  ;;  %v3314_v29 = vpop.f32.mrb[53].mxu0 }
0x1842   : > { %v3327_v30 = vpack.c.bf16 %v3325_v27, %v3324_v56 }
0x1843   : > { %v3317_v52 = vpop.f32.mrb[54].mxu0 }
0x1844   : > { %v3326_v61 = vmul.f32 %v5009_v23, %v3317_v52  ;;  %v3319_v0 = vpop.f32.mrb[55].mxu0  ;;  %4137 = vmatprep.mubr.msk.bf16.mxu1 %vm511_vm1, %v3327_v30 }
0x1846   : > { %v3328_v6 = vpack.c.bf16 %v3326_v61, %v3326_v61 }
0x1848   : > { %4138 = vmatmul.mubr.msk.bf16.vlgmr.msra.gmra.mrb[40].mxu1 %vm511_vm1, %v3328_v6 }
0x191b   : > { %v4139_v36 = vpop.f32.mrb[40].mxu1 }
0x191c   : > { %v3392_v38 = vpop.f32.mrb[41].mxu1  ;;  %v3401_v55 = vadd.f32 %v4139_v36, %v3960_v35 }
0x191d   : > { %v3393_v18 = vadd.f32 %v3960_v35, %v3392_v38  ;;  %v4140_v42 = vpop.f32.mrb[42].mxu1 }
0x191e   : > { %v3395_v10 = vpop.f32.mrb[43].mxu1  ;;  %v3414_v46 = vsel %vm511_vm1, %v3401_v55, 0.0 }
0x191f   : > { %v3396_v21 = vadd.f32 %v3960_v35, %v3395_v10  ;;  %v3408_v3 = vsel %vm511_vm1, %v3393_v18, 0.0 }
0x1920   : > { %3409 = vadd.xlane.f32.xlu1 %v3408_v3 }
0x1921   : > { %v3411_v59 = vsel %vm511_vm1, %v3396_v21, 0.0 }
0x1922   : > { %3412 = vadd.xlane.f32.xlu0 %v3411_v59 }
0x1926   : > { %3415 = vadd.xlane.f32.xlu0 %v3414_v46 }
0x19ad   : > { %v3410_v47 = vpop.xlane.xlu1 %3409 }
0x19ae   : > { %v3417_v34 = vmul.f32 0.03125, %v3410_v47 }
0x19af   : > { %v3413_v2 = vpop.xlane.xlu0 %3412 }
0x19b0   : > { %v3420_v14 = vsub.f32 %v3393_v18, %v3417_v34  ;;  %v3418_v32 = vmul.f32 0.03125, %v3413_v2 }
0x19b2   : > { %v3421_v31 = vsub.f32 %v3396_v21, %v3418_v32  ;;  %v3423_v33 = vmul.f32 %v3420_v14, %v3420_v14 }
0x19b3   : > { %v3416_v54 = vpop.xlane.xlu0 %3415 }
0x19b4   : > { %v3419_v15 = vmul.f32 0.03125, %v3416_v54  ;;  %v3426_v17 = vsel %vm511_vm1, %v3423_v33, 0.0  ;;  %v3424_v62 = vmul.f32 %v3421_v31, %v3421_v31 }
0x19b5   : > { %3427 = vadd.xlane.f32.xlu0 %v3426_v17 }
0x19b6   : > { %v3422_v53 = vsub.f32 %v3401_v55, %v3419_v15  ;;  %v3429_v13 = vsel %vm511_vm1, %v3424_v62, 0.0 }
0x19b7   : > { %3430 = vadd.xlane.f32.xlu1 %v3429_v13 }
0x19b8   : > { %v3425_v50 = vmul.f32 %v3422_v53, %v3422_v53 }
0x19ba   : > { %v3432_v44 = vsel %vm511_vm1, %v3425_v50, 0.0 }
0x19bb   : > { %3433 = vadd.xlane.f32.xlu0 %v3432_v44 }
0x1a42   : > { %v3428_v25 = vpop.xlane.xlu0 %3427 }
0x1a43   : > { %v3435_v43 = vmul.f32 0.03125, %v3428_v25 }
0x1a44   : > { %v3431_v48 = vpop.xlane.xlu1 %3430 }
0x1a45   : > { %v3438_v1 = vadd.f32 1e-05, %v3435_v43  ;;  %v3436_v58 = vmul.f32 0.03125, %v3431_v48 }
0x1a47   : > { %5010 = vrsqrt.f32 %v3438_v1  ;;  %v3439_v28 = vadd.f32 1e-05, %v3436_v58  ;;  %v3984_v1 = vld [vmem:[%s6704_s9 + $0x14] ss:$0 sm:$0xff] }
0x1a48   : > { %v3434_v40 = vpop.xlane.xlu0 %3433 }
0x1a49   : > { %5012 = vrsqrt.f32 %v3439_v28  ;;  %v3437_v20 = vmul.f32 0.03125, %v3434_v40 }
0x1a4b   : > { %v3440_v49 = vadd.f32 1e-05, %v3437_v20 }
0x1a4d   : > { %5014 = vrsqrt.f32 %v3440_v49 }
0x1a51   : > { %v5011_v22 = vpop.eup %5010 }
0x1a52   : > { %v3444_v9 = vmul.f32 %v5011_v22, %v3420_v14 }
0x1a53   : > { %v5013_v5 = vpop.eup %5012 }
0x1a54   : > { %v3445_v51 = vmul.f32 %v5013_v5, %v3421_v31  ;;  %v3451_v16 = vmul.f32 %v3967_v4, %v3444_v9 }
0x1a56   : > { %v3452_v39 = vmul.f32 %v3967_v4, %v3445_v51  ;;  %v3458_v60 = vadd.f32 %v3968_v26, %v3451_v16 }
0x1a57   : > { %v5015_v24 = vpop.eup %5014 }
0x1a58   : > { %v3446_v11 = vmul.f32 %v5015_v24, %v3422_v53  ;;  %v3459_v12 = vadd.f32 %v3968_v26, %v3452_v39  ;;  %v6642_v19 = vadd.f32 %v3458_v60, %v6275_v8  ;;  %v4918_v8 = vld [vmem:[%s6703_s8 + $0x20] sm:$0xff]  }
0x1a59   : > { %4149 = vmatprep.subr.bf16.mxu1 %v4918_v8 }
0x1a5a   : > { %v3453_v56 = vmul.f32 %v3967_v4, %v3446_v11  ;;  %v6645_v63 = vadd.f32 %v3459_v12, %v6278_v45  ;;  %v4919_v45 = vld [vmem:[%s6703_s8 + $0x28] sm:$0xff]   ;;  %4150 = vmatpush3.bf16.msra.mxu1 %v4918_v8 }
0x1a5b   : > { %4151 = vmatprep.subr.bf16.mxu1 %v4919_v45 }
0x1a5c   : > { %v3460_v7 = vadd.f32 %v3968_v26, %v3453_v56  ;;  %v3464_v27 = vpack.c.bf16 %v6645_v63, %v6642_v19 }
0x1a5e   : > { %v6650_v29 = vadd.f32 %v3460_v7, %v6283_v37  ;;  %4145 = vmatprep.mubr.msk.bf16.mxu0 %vm511_vm1, %v3464_v27  ;;  %4152 = vmatpush3.bf16.msra.mxu1 %v4919_v45  ;;  %v3974_v37 = vld [vmem:[%s6704_s9 + $0x13] ss:$0 sm:$0xff] }
0x1a60   : > { %v3465_v30 = vpack.c.bf16 %v6650_v29, %v6650_v29 }
0x1a62   : > { %4146 = vmatmul.mubr.msk.bf16.vlgmr.msra.gmra.mrb[56].mxu0 %vm511_vm1, %v3465_v30 }
0x1b35   : > { %v4147_v23 = vpop.f32.mrb[56].mxu0 }
0x1b36   : > { %v3537_v52 = vadd.f32 %v4147_v23, %v3974_v37  ;;  %v3528_v61 = vpop.f32.mrb[57].mxu0 }
0x1b37   : > { %v3529_v0 = vadd.f32 %v3974_v37, %v3528_v61  ;;  %v4148_v6 = vpop.f32.mrb[58].mxu0 }
0x1b38   : > { %v3544_v35 = vmul.f32 %v3537_v52, %v3537_v52  ;;  %v3531_v36 = vpop.f32.mrb[59].mxu0 }
0x1b39   : > { %v3542_v38 = vmul.f32 %v3529_v0, %v3529_v0  ;;  %v3532_v18 = vadd.f32 %v3974_v37, %v3531_v36 }
0x1b3a   : > { %v3547_v42 = vmul.f32 %v3544_v35, %v3537_v52 }
0x1b3b   : > { %v3545_v10 = vmul.f32 %v3542_v38, %v3529_v0  ;;  %v3543_v21 = vmul.f32 %v3532_v18, %v3532_v18 }
0x1b3c   : > { %v3550_v3 = vmul.f32 0.044715, %v3547_v42 }
0x1b3d   : > { %v3548_v55 = vmul.f32 0.044715, %v3545_v10  ;;  %v3546_v59 = vmul.f32 %v3543_v21, %v3532_v18  ;;  %v3991_v21 = vld [vmem:[%s6704_s9 + $0x15] ss:$0 sm:$0xff] }
0x1b3e   : > { %v3553_v46 = vadd.f32 %v3550_v3, %v3537_v52 }
0x1b3f   : > { %v3551_v47 = vadd.f32 %v3548_v55, %v3529_v0  ;;  %v3549_v34 = vmul.f32 0.044715, %v3546_v59  ;;  %v3992_v59 = vld [vmem:[%s6704_s9 + $0x16] ss:$0 sm:$0xff] }
0x1b40   : > { %v3556_v2 = vmul.f32 0.7978846, %v3553_v46 }
0x1b41   : > { %v3554_v14 = vmul.f32 0.7978846, %v3551_v47  ;;  %v3552_v32 = vadd.f32 %v3549_v34, %v3532_v18 }
0x1b42   : > { %5016 = vtanh.f32 %v3556_v2 }
0x1b43   : > { %5018 = vtanh.f32 %v3554_v14  ;;  %v3555_v31 = vmul.f32 0.7978846, %v3552_v32 }
0x1b45   : > { %5020 = vtanh.f32 %v3555_v31 }
0x1b4c   : > { %v5017_v33 = vpop.eup %5016 }
0x1b4d   : > { %v5019_v54 = vpop.eup %5018  ;;  %v3562_v15 = vadd.f32 1.0, %v5017_v33 }
0x1b4e   : > { %v3560_v17 = vadd.f32 1.0, %v5019_v54 }
0x1b4f   : > { %v5021_v62 = vpop.eup %5020  ;;  %v3565_v53 = vmul.f32 0.5, %v3562_v15 }
0x1b50   : > { %v3563_v13 = vmul.f32 0.5, %v3560_v17  ;;  %v3561_v50 = vadd.f32 1.0, %v5021_v62 }
0x1b51   : > { %v3568_v41 = vmul.f32 %v3565_v53, %v3537_v52 }
0x1b52   : > { %v3564_v44 = vmul.f32 0.5, %v3561_v50  ;;  %v3566_v57 = vmul.f32 %v3563_v13, %v3529_v0 }
0x1b53   : > { %v3570_v48 = vpack.c.bf16 %v3568_v41, %v3568_v41 }
0x1b54   : > { %v3567_v25 = vmul.f32 %v3564_v44, %v3532_v18 }
0x1b56   : > { %v3569_v43 = vpack.c.bf16 %v3567_v25, %v3566_v57 }
0x1b58   : > { %4153 = vmatprep.mubr.msk.bf16.mxu1 %vm511_vm1, %v3569_v43 }
0x1b59   : > { %4154 = vmatmul.mubr.msk.bf16.vlgmr.msra.gmra.mrb[44].mxu1 %vm511_vm1, %v3570_v48 }
0x1c2c   : > { %v4155_v58 = vpop.f32.mrb[44].mxu1 }
0x1c2d   : > { %v3633_v28 = vpop.f32.mrb[45].mxu1  ;;  %v3642_v22 = vadd.f32 %v4155_v58, %v3984_v1 }
0x1c2e   : > { %v3634_v40 = vadd.f32 %v3984_v1, %v3633_v28  ;;  %v4156_v20 = vpop.f32.mrb[46].mxu1 }
0x1c2f   : > { %v3636_v49 = vpop.f32.mrb[47].mxu1  ;;  %v3655_v26 = vsel %vm511_vm1, %v3642_v22, 0.0 }
0x1c30   : > { %v3637_v4 = vadd.f32 %v3984_v1, %v3636_v49  ;;  %v3649_v9 = vsel %vm511_vm1, %v3634_v40, 0.0 }
0x1c31   : > { %3650 = vadd.xlane.f32.xlu1 %v3649_v9 }
0x1c32   : > { %v3652_v5 = vsel %vm511_vm1, %v3637_v4, 0.0 }
0x1c33   : > { %3653 = vadd.xlane.f32.xlu0 %v3652_v5 }
0x1c35   : > { %3656 = vadd.xlane.f32.xlu1 %v3655_v26 }
0x1cbe   : > { %v3651_v51 = vpop.xlane.xlu1 %3650 }
0x1cbf   : > { %v3658_v16 = vmul.f32 0.03125, %v3651_v51 }
0x1cc0   : > { %v3654_v39 = vpop.xlane.xlu0 %3653 }
0x1cc1   : > { %v3661_v60 = vsub.f32 %v3634_v40, %v3658_v16  ;;  %v3659_v24 = vmul.f32 0.03125, %v3654_v39 }
0x1cc2   : > { %v3657_v11 = vpop.xlane.xlu1 %3656 }
0x1cc3   : > { %v3662_v12 = vsub.f32 %v3637_v4, %v3659_v24  ;;  %v3660_v56 = vmul.f32 0.03125, %v3657_v11  ;;  %v3664_v7 = vmul.f32 %v3661_v60, %v3661_v60 }
0x1cc5   : > { %v3663_v27 = vsub.f32 %v3642_v22, %v3660_v56  ;;  %v3667_v30 = vsel %vm511_vm1, %v3664_v7, 0.0  ;;  %v3665_v8 = vmul.f32 %v3662_v12, %v3662_v12 }
0x1cc6   : > { %3668 = vadd.xlane.f32.xlu0 %v3667_v30 }
0x1cc7   : > { %v3670_v45 = vsel %vm511_vm1, %v3665_v8, 0.0  ;;  %v3666_v37 = vmul.f32 %v3663_v27, %v3663_v27 }
0x1cc8   : > { %3671 = vadd.xlane.f32.xlu1 %v3670_v45 }
0x1cc9   : > { %v3673_v23 = vsel %vm511_vm1, %v3666_v37, 0.0 }
0x1cca   : > { %3674 = vadd.xlane.f32.xlu0 %v3673_v23 }
0x1d53   : > { %v3669_v52 = vpop.xlane.xlu0 %3668 }
0x1d54   : > { %v3676_v61 = vmul.f32 0.03125, %v3669_v52 }
0x1d55   : > { %v3672_v0 = vpop.xlane.xlu1 %3671 }
0x1d56   : > { %v3679_v6 = vadd.f32 1e-05, %v3676_v61  ;;  %v3677_v35 = vmul.f32 0.03125, %v3672_v0 }
0x1d57   : > { %v3675_v36 = vpop.xlane.xlu0 %3674 }
0x1d58   : > { %5022 = vrsqrt.f32 %v3679_v6  ;;  %v3680_v38 = vadd.f32 1e-05, %v3677_v35  ;;  %v3678_v18 = vmul.f32 0.03125, %v3675_v36 }
0x1d5a   : > { %5024 = vrsqrt.f32 %v3680_v38  ;;  %v3681_v42 = vadd.f32 1e-05, %v3678_v18 }
0x1d5c   : > { %5026 = vrsqrt.f32 %v3681_v42 }
0x1d62   : > { %v5023_v10 = vpop.eup %5022 }
0x1d63   : > { %v3685_v3 = vmul.f32 %v5023_v10, %v3661_v60 }
0x1d64   : > { %v5025_v55 = vpop.eup %5024 }
0x1d65   : > { %v3692_v46 = vmul.f32 %v3991_v21, %v3685_v3  ;;  %v3686_v47 = vmul.f32 %v5025_v55, %v3662_v12 }
0x1d66   : > { %v5027_v34 = vpop.eup %5026 }
0x1d67   : > { %v3699_v2 = vadd.f32 %v3992_v59, %v3692_v46  ;;  %v3693_v14 = vmul.f32 %v3991_v21, %v3686_v47  ;;  %v3687_v32 = vmul.f32 %v5027_v34, %v3663_v27 }
0x1d69   : > { %v3702_v31 = vadd.f32 %v3699_v2, %v6642_v19  ;;  %v3700_v33 = vadd.f32 %v3992_v59, %v3693_v14  ;;  %v3694_v54 = vmul.f32 %v3991_v21, %v3687_v32 }
0x1d6b   : > { %3705 = vst.msk [vmem:[%s361_s27] sm:$0xff] %vm511_vm1, %v3702_v31  ;;  %v3703_v15 = vadd.f32 %v3700_v33, %v6645_v63  ;;  %v3701_v17 = vadd.f32 %v3992_v59, %v3694_v54 }
0x1d6d   : > { %3706 = vst.msk [vmem:[%s361_s27 + $0x8] sm:$0xff] %vm511_vm1, %v3703_v15  ;;  %v3704_v62 = vadd.f32 %v3701_v17, %v6650_v29 }
0x1d6f   : > { %3707 = vst.msk [vmem:[%s361_s27 + $0x10] sm:$0xff] %vm511_vm1, %v3704_v62 }
0x1d70 PF: > { %s20_s13 = sadd.s32 1, %s5034_s13  }
0x1d71   : > { %p17_p4 = scmp.ge.s32.totalorder %s20_s13, 4  }
0x1d73   :  { %19 = sbr.rel (!%p17_p4) target bundleno = 1 (0x1), region = 100 }

</bundles_post_ra>
